<compile_context>
chip_gen: v7x
topology: tpu7x:2x2x1
jax: 0.10.0
libtpu: 0.0.40
codegen_flags: <defaults>
</compile_context>

<pallas_src>
import jax
import jax.numpy as jnp
from jax.experimental import pallas as pl
from jax.experimental.pallas import tpu as pltpu

_BN_EPS = 1e-5
_MM_DTYPE = jnp.float32   # set to jnp.bfloat16 for production MXU throughput


def _gelu(x):
    # exact (erf-based) GELU == torch.nn.functional.gelu default
    return 0.5 * x * (1.0 + jax.lax.erf(x * jnp.float32(0.7071067811865476)))


def _sigmoid(x):
    return 1.0 / (1.0 + jnp.exp(-x))


def _conv3x3_bn(x, w2d, gamma, beta, masks, *, L, W):
    """3x3 'same' conv (no bias) + training-mode BatchNorm2d (batch stats).

    x     : (Cin, L) f32, L = N*H*W on the lane axis
    w2d   : (Cout, 9*Cin) f32, column index = (ky*3+kx)*Cin + ci
    gamma, beta : (Cout, 1) f32
    masks : (9, L) 0/1 f32 precomputed tap-validity masks
    returns (Cout, L) f32
    """
    taps = []
    for k in range(9):
        dy, dx = k // 3 - 1, k % 3 - 1
        off = dy * W + dx
        if dy == 0 and dx == 0:
            taps.append(x)
            continue
        # lane-axis rotate on the XLU; boundary / cross-image garbage is zeroed
        # by one precomputed 0/1 mask multiply (output-position validity).
        s = pltpu.roll(x, shift=(-off) % L, axis=1)
        taps.append(s * masks[k:k + 1, :])
    patches = jnp.concatenate(taps, axis=0)                  # (9*Cin, L)

    t = jnp.dot(w2d.astype(_MM_DTYPE), patches.astype(_MM_DTYPE),
                preferred_element_type=jnp.float32)          # (Cout, L)

    # BatchNorm2d (training mode): biased batch stats over N*H*W per channel,
    # two-pass mean/var in f32, folded into one FMA.
    inv_cnt = jnp.float32(1.0 / L)
    mu = jnp.sum(t, axis=1, keepdims=True) * inv_cnt
    d = t - mu
    var = jnp.sum(d * d, axis=1, keepdims=True) * inv_cnt
    scale = gamma * jax.lax.rsqrt(var + jnp.float32(_BN_EPS))
    return d * scale + beta


def _make_encoder_kernel(L, W):
    def kernel(masks_ref, pool_ref, bcast_ref, x_ref,
               sw_ref, sg_ref, sb_ref,
               w0_ref, g0_ref, b0_ref,
               w1_ref, g1_ref, b1_ref,
               l0_ref, l1_ref,
               out_ref):
        blk = pl.program_id(0)
        masks = masks_ref[...]                               # (9, L), loaded once

        @pl.when(blk == 0)
        def _():
            # stem: conv3x3(Cin->C) + BN + GELU as a single K=9*Cin matmul
            t0 = _conv3x3_bn(x_ref[...], sw_ref[...], sg_ref[...], sb_ref[...],
                             masks, L=L, W=W)
            out_ref[...] = _gelu(t0)

        # out_ref (constant block index) is the resident residual state (C, L);
        # no extra VMEM scratch and no duplicated store per block.
        x = out_ref[...]

        t = _gelu(_conv3x3_bn(x, w0_ref[0], g0_ref[0], b0_ref[0],
                              masks, L=L, W=W))
        t = _conv3x3_bn(t, w1_ref[0], g1_ref[0], b1_ref[0],
                        masks, L=L, W=W)

        # squeeze-excite gate, batched over N (no per-sample loop):
        #   pool (C,L)@(L,N) -> L0 -> GELU -> L1 -> sigmoid -> bcast (C,N)@(N,L)
        pooled = jnp.dot(t, pool_ref[...], preferred_element_type=jnp.float32)   # (C, N)
        h = _gelu(jnp.dot(l0_ref[0], pooled, preferred_element_type=jnp.float32))  # (Cr, N)
        g = _sigmoid(jnp.dot(l1_ref[0], h, preferred_element_type=jnp.float32))    # (C, N)
        gate = jnp.dot(g, bcast_ref[...], preferred_element_type=jnp.float32)      # (C, L)

        out_ref[...] = _gelu(x + t * gate)

    return kernel


def _conv_w2d(w):
    """torch conv weight (Co,Ci,3,3) -> (Co,9*Ci); (B,Co,Ci,3,3) -> (B,Co,9*Ci).
    Column order = (ky*3+kx)*Ci + ci, matching the kernel's im2col stacking."""
    if w.ndim == 4:
        co, ci = w.shape[0], w.shape[1]
        return jnp.transpose(w, (0, 2, 3, 1)).reshape(co, 9 * ci)
    b, co, ci = w.shape[0], w.shape[1], w.shape[2]
    return jnp.transpose(w, (0, 1, 3, 4, 2)).reshape(b, co, 9 * ci)


def encoder_forward(x_nchw, params):
    N, Cin, H, W = x_nchw.shape
    HW = H * W
    L = N * HW
    C = params['stem_conv_w'].shape[0]
    B = params['block_conv0_w'].shape[0]
    Cr = params['block_l0_w'].shape[1]

    # activations as (C, N*HW): batch+spatial on the lane axis (wrapper-side
    # layout plumbing; done once outside the kernel)
    x_flat = jnp.transpose(x_nchw, (1, 0, 2, 3)).reshape(Cin, L)

    # precomputed tap-validity masks (shared by every conv / every block)
    q = jnp.arange(L, dtype=jnp.int32)
    p = q % HW
    row = p // W
    col = p % W
    mask_list = []
    for k in range(9):
        dy, dx = k // 3 - 1, k % 3 - 1
        valid = ((row + dy >= 0) & (row + dy < H) &
                 (col + dx >= 0) & (col + dx < W))
        mask_list.append(valid.astype(jnp.float32))
    tap_masks = jnp.stack(mask_list, axis=0)                 # (9, L)

    # per-image selector matrices for the SE pool / gate broadcast
    img = q // HW
    onehot = (img[:, None] == jnp.arange(N, dtype=jnp.int32)[None, :])
    onehot = onehot.astype(jnp.float32)                      # (L, N)
    pool_mat = onehot * jnp.float32(1.0 / HW)                # (L, N): mean pool
    bcast_mat = jnp.transpose(onehot, (1, 0))                # (N, L): gate bcast

    args = (
        tap_masks,                                           # (9, L)
        pool_mat,                                            # (L, N)
        bcast_mat,                                           # (N, L)
        x_flat,                                              # (Cin, L)
        _conv_w2d(params['stem_conv_w']),                    # (C, 9*Cin)
        params['stem_bn_g'].reshape(C, 1),
        params['stem_bn_b'].reshape(C, 1),
        _conv_w2d(params['block_conv0_w']),                  # (B, C, 9*C)
        params['block_bn0_g'].reshape(B, C, 1),
        params['block_bn0_b'].reshape(B, C, 1),
        _conv_w2d(params['block_conv1_w']),                  # (B, C, 9*C)
        params['block_bn1_g'].reshape(B, C, 1),
        params['block_bn1_b'].reshape(B, C, 1),
        params['block_l0_w'],                                # (B, C//r, C)
        params['block_l1_w'],                                # (B, C, C//r)
    )

    def full_spec(shape):
        nd = len(shape)
        return pl.BlockSpec(shape, lambda b: (0,) * nd)

    def per_block_spec(shape):
        nd = len(shape)
        return pl.BlockSpec((1,) + shape, lambda b: (b,) + (0,) * nd)

    in_specs = [
        full_spec((9, L)),
        full_spec((L, N)),
        full_spec((N, L)),
        full_spec((Cin, L)),
        full_spec((C, 9 * Cin)),
        full_spec((C, 1)),
        full_spec((C, 1)),
        per_block_spec((C, 9 * C)),
        per_block_spec((C, 1)),
        per_block_spec((C, 1)),
        per_block_spec((C, 9 * C)),
        per_block_spec((C, 1)),
        per_block_spec((C, 1)),
        per_block_spec((Cr, C)),
        per_block_spec((C, Cr)),
    ]

    flops = (2 * C * 9 * Cin * L
             + B * 2 * (2 * C * 9 * C * L)
             + B * (2 * C * L * N + 2 * Cr * C * N + 2 * C * Cr * N + 2 * C * N * L))
    transcendentals = C * L * (1 + 3 * B) + B * (Cr * N + C * N)
    bytes_accessed = sum(int(a.size) * 4 for a in args) + C * L * 4

    out = pl.pallas_call(
        _make_encoder_kernel(L, W),
        out_shape=jax.ShapeDtypeStruct((C, L), jnp.float32),
        grid=(B,),
        in_specs=in_specs,
        out_specs=pl.BlockSpec((C, L), lambda b: (0, 0)),
        compiler_params=pltpu.CompilerParams(
            # residual blocks are sequentially dependent
            dimension_semantics=("arbitrary",),
            # plenty for the test shapes; for production H*W raise toward
            # 64-96 MiB on v5e/v6e (128 MiB physical) for bigger resident
            # tiles / deeper weight buffering; on v7x (64 MiB physical) keep
            # this tighter and prefer bf16 weights (_MM_DTYPE) instead.
            vmem_limit_bytes=32 * 1024 * 1024,
        ),
        cost_estimate=pl.CostEstimate(
            flops=int(flops),
            transcendentals=int(transcendentals),
            bytes_accessed=int(bytes_accessed),
        ),
    )(*args)

    return jnp.transpose(out.reshape(C, N, H, W), (1, 0, 2, 3))


def encoder_reference(x_nchw, params):
    """Pure-JAX reference mirroring the PyTorch forward (training-mode BN)."""
    def conv_bn(x, w, g, b):
        t = jax.lax.conv_general_dilated(
            x, w, window_strides=(1, 1), padding=((1, 1), (1, 1)),
            dimension_numbers=('NCHW', 'OIHW', 'NCHW'))
        mu = jnp.mean(t, axis=(0, 2, 3), keepdims=True)
        var = jnp.mean((t - mu) ** 2, axis=(0, 2, 3), keepdims=True)
        t = (t - mu) / jnp.sqrt(var + _BN_EPS)
        return t * g.reshape(1, -1, 1, 1) + b.reshape(1, -1, 1, 1)

    x = _gelu(conv_bn(x_nchw, params['stem_conv_w'],
                      params['stem_bn_g'], params['stem_bn_b']))
    B = params['block_conv0_w'].shape[0]
    for i in range(B):
        t = _gelu(conv_bn(x, params['block_conv0_w'][i],
                          params['block_bn0_g'][i], params['block_bn0_b'][i]))
        t = conv_bn(t, params['block_conv1_w'][i],
                    params['block_bn1_g'][i], params['block_bn1_b'][i])
        y = jnp.mean(t, axis=(2, 3))                          # (N, C)
        y = _gelu(y @ params['block_l0_w'][i].T)
        y = y @ params['block_l1_w'][i].T
        y = 1.0 / (1.0 + jnp.exp(-y))
        t = t * y[:, :, None, None]
        x = _gelu(x + t)
    return x


if __name__ == "__main__":
    # Encoder(input_channel_num=4, block_num=2, channel_num=32, kernel_size=3, reduction=8)
    N, Cin, H, W = 2, 4, 16, 16
    C, block_num, reduction = 32, 2, 8
    Cr = C // reduction

    key = jax.random.PRNGKey(0)
    ks = jax.random.split(key, 12)
    x = jax.random.normal(ks[0], (N, Cin, H, W), jnp.float32)

    params = dict(
        stem_conv_w=0.3 * jax.random.normal(ks[1], (C, Cin, 3, 3), jnp.float32),
        stem_bn_g=1.0 + 0.1 * jax.random.normal(ks[2], (C,), jnp.float32),
        stem_bn_b=0.1 * jax.random.normal(ks[3], (C,), jnp.float32),
        block_conv0_w=0.1 * jax.random.normal(ks[4], (block_num, C, C, 3, 3), jnp.float32),
        block_bn0_g=1.0 + 0.1 * jax.random.normal(ks[5], (block_num, C), jnp.float32),
        block_bn0_b=0.1 * jax.random.normal(ks[6], (block_num, C), jnp.float32),
        block_conv1_w=0.1 * jax.random.normal(ks[7], (block_num, C, C, 3, 3), jnp.float32),
        block_bn1_g=1.0 + 0.1 * jax.random.normal(ks[8], (block_num, C), jnp.float32),
        block_bn1_b=0.1 * jax.random.normal(ks[9], (block_num, C), jnp.float32),
        block_l0_w=0.3 * jax.random.normal(ks[10], (block_num, Cr, C), jnp.float32),
        block_l1_w=0.3 * jax.random.normal(ks[11], (block_num, C, Cr), jnp.float32),
    )

    out = encoder_forward(x, params)
    out = jax.block_until_ready(out)

    ref = encoder_reference(x, params)
    assert out.shape == (N, C, H, W)
    max_err = jnp.max(jnp.abs(out - ref))
    assert jnp.allclose(out, ref, atol=1e-3, rtol=1e-3), ("max abs err", max_err)

    print("KERNEL_OK")
</pallas_src>

<mosaic_0001>
module attributes {stable_mosaic.version = 11 : i64} {
  func.func @kernel(%arg0: i32, %arg1: memref<9x512xf32, #tpu.memory_space<vmem>>, %arg2: memref<512x2xf32, #tpu.memory_space<vmem>>, %arg3: memref<2x512xf32, #tpu.memory_space<vmem>>, %arg4: memref<4x512xf32, #tpu.memory_space<vmem>>, %arg5: memref<32x36xf32, #tpu.memory_space<vmem>>, %arg6: memref<32x1xf32, #tpu.memory_space<vmem>>, %arg7: memref<32x1xf32, #tpu.memory_space<vmem>>, %arg8: memref<1x32x288xf32, #tpu.memory_space<vmem>>, %arg9: memref<1x32x1xf32, #tpu.memory_space<vmem>>, %arg10: memref<1x32x1xf32, #tpu.memory_space<vmem>>, %arg11: memref<1x32x288xf32, #tpu.memory_space<vmem>>, %arg12: memref<1x32x1xf32, #tpu.memory_space<vmem>>, %arg13: memref<1x32x1xf32, #tpu.memory_space<vmem>>, %arg14: memref<1x4x32xf32, #tpu.memory_space<vmem>>, %arg15: memref<1x32x4xf32, #tpu.memory_space<vmem>>, %arg16: memref<32x512xf32, #tpu.memory_space<vmem>>) attributes {dimension_semantics = [#tpu.dimension_semantics<arbitrary>], iteration_bounds = array<i64: 2>, scalar_prefetch = 0 : i64, scratch_operands = 0 : i64, tpu.core_type = #tpu.core_type<tc>, window_params = [{pipeline_mode = #tpu.pipeline_mode<synchronous>, transform_indices = @transform_0, window_bounds = array<i64: 9, 512>}, {pipeline_mode = #tpu.pipeline_mode<synchronous>, transform_indices = @transform_1, window_bounds = array<i64: 512, 2>}, {pipeline_mode = #tpu.pipeline_mode<synchronous>, transform_indices = @transform_2, window_bounds = array<i64: 2, 512>}, {pipeline_mode = #tpu.pipeline_mode<synchronous>, transform_indices = @transform_3, window_bounds = array<i64: 4, 512>}, {pipeline_mode = #tpu.pipeline_mode<synchronous>, transform_indices = @transform_4, window_bounds = array<i64: 32, 36>}, {pipeline_mode = #tpu.pipeline_mode<synchronous>, transform_indices = @transform_5, window_bounds = array<i64: 32, 1>}, {pipeline_mode = #tpu.pipeline_mode<synchronous>, transform_indices = @transform_6, window_bounds = array<i64: 32, 1>}, {transform_indices = @transform_7, window_bounds = array<i64: 1, 32, 288>}, {transform_indices = @transform_8, window_bounds = array<i64: 1, 32, 1>}, {transform_indices = @transform_9, window_bounds = array<i64: 1, 32, 1>}, {transform_indices = @transform_10, window_bounds = array<i64: 1, 32, 288>}, {transform_indices = @transform_11, window_bounds = array<i64: 1, 32, 1>}, {transform_indices = @transform_12, window_bounds = array<i64: 1, 32, 1>}, {transform_indices = @transform_13, window_bounds = array<i64: 1, 4, 32>}, {transform_indices = @transform_14, window_bounds = array<i64: 1, 32, 4>}, {pipeline_mode = #tpu.pipeline_mode<synchronous>, transform_indices = @transform_15, window_bounds = array<i64: 32, 512>}]} {
    %c0 = arith.constant 0 : index
    %c0_0 = arith.constant 0 : index
    %0 = vector.load %arg1[%c0, %c0_0] : memref<9x512xf32, #tpu.memory_space<vmem>>, vector<9x512xf32>
    %c0_i32 = arith.constant 0 : i32
    %1 = arith.cmpi eq, %arg0, %c0_i32 : i32
    %2 = arith.extui %1 : i1 to i32
    %c0_i32_1 = arith.constant 0 : i32
    %3 = arith.cmpi ne, %2, %c0_i32_1 : i32
    scf.if %3 {
      %c0_69 = arith.constant 0 : index
      %c0_70 = arith.constant 0 : index
      %167 = vector.load %arg4[%c0_69, %c0_70] : memref<4x512xf32, #tpu.memory_space<vmem>>, vector<4x512xf32>
      %c0_71 = arith.constant 0 : index
      %c0_72 = arith.constant 0 : index
      %168 = vector.load %arg5[%c0_71, %c0_72] : memref<32x36xf32, #tpu.memory_space<vmem>>, vector<32x36xf32>
      %c0_73 = arith.constant 0 : index
      %c0_74 = arith.constant 0 : index
      %169 = vector.load %arg6[%c0_73, %c0_74] : memref<32x1xf32, #tpu.memory_space<vmem>>, vector<32x1xf32>
      %c0_75 = arith.constant 0 : index
      %c0_76 = arith.constant 0 : index
      %170 = vector.load %arg7[%c0_75, %c0_76] : memref<32x1xf32, #tpu.memory_space<vmem>>, vector<32x1xf32>
      %c17_i32_77 = arith.constant 17 : i32
      %171 = tpu.dynamic_rotate %167 by %c17_i32_77 dim 1 : vector<4x512xf32>, i32 -> vector<4x512xf32>
      %172 = vector.extract_strided_slice %0 {offsets = [0, 0], sizes = [1, 512], strides = [1, 1]} : vector<9x512xf32> to vector<1x512xf32>
      %173 = vector.broadcast %172 : vector<1x512xf32> to vector<4x512xf32>
      %174 = arith.mulf %171, %173 : vector<4x512xf32>
      %c16_i32_78 = arith.constant 16 : i32
      %175 = tpu.dynamic_rotate %167 by %c16_i32_78 dim 1 : vector<4x512xf32>, i32 -> vector<4x512xf32>
      %176 = vector.extract_strided_slice %0 {offsets = [1, 0], sizes = [1, 512], strides = [1, 1]} : vector<9x512xf32> to vector<1x512xf32>
      %177 = vector.broadcast %176 : vector<1x512xf32> to vector<4x512xf32>
      %178 = arith.mulf %175, %177 : vector<4x512xf32>
      %c15_i32_79 = arith.constant 15 : i32
      %179 = tpu.dynamic_rotate %167 by %c15_i32_79 dim 1 : vector<4x512xf32>, i32 -> vector<4x512xf32>
      %180 = vector.extract_strided_slice %0 {offsets = [2, 0], sizes = [1, 512], strides = [1, 1]} : vector<9x512xf32> to vector<1x512xf32>
      %181 = vector.broadcast %180 : vector<1x512xf32> to vector<4x512xf32>
      %182 = arith.mulf %179, %181 : vector<4x512xf32>
      %c1_i32_80 = arith.constant 1 : i32
      %183 = tpu.dynamic_rotate %167 by %c1_i32_80 dim 1 : vector<4x512xf32>, i32 -> vector<4x512xf32>
      %184 = vector.extract_strided_slice %0 {offsets = [3, 0], sizes = [1, 512], strides = [1, 1]} : vector<9x512xf32> to vector<1x512xf32>
      %185 = vector.broadcast %184 : vector<1x512xf32> to vector<4x512xf32>
      %186 = arith.mulf %183, %185 : vector<4x512xf32>
      %c511_i32_81 = arith.constant 511 : i32
      %187 = tpu.dynamic_rotate %167 by %c511_i32_81 dim 1 : vector<4x512xf32>, i32 -> vector<4x512xf32>
      %188 = vector.extract_strided_slice %0 {offsets = [5, 0], sizes = [1, 512], strides = [1, 1]} : vector<9x512xf32> to vector<1x512xf32>
      %189 = vector.broadcast %188 : vector<1x512xf32> to vector<4x512xf32>
      %190 = arith.mulf %187, %189 : vector<4x512xf32>
      %c497_i32_82 = arith.constant 497 : i32
      %191 = tpu.dynamic_rotate %167 by %c497_i32_82 dim 1 : vector<4x512xf32>, i32 -> vector<4x512xf32>
      %192 = vector.extract_strided_slice %0 {offsets = [6, 0], sizes = [1, 512], strides = [1, 1]} : vector<9x512xf32> to vector<1x512xf32>
      %193 = vector.broadcast %192 : vector<1x512xf32> to vector<4x512xf32>
      %194 = arith.mulf %191, %193 : vector<4x512xf32>
      %c496_i32_83 = arith.constant 496 : i32
      %195 = tpu.dynamic_rotate %167 by %c496_i32_83 dim 1 : vector<4x512xf32>, i32 -> vector<4x512xf32>
      %196 = vector.extract_strided_slice %0 {offsets = [7, 0], sizes = [1, 512], strides = [1, 1]} : vector<9x512xf32> to vector<1x512xf32>
      %197 = vector.broadcast %196 : vector<1x512xf32> to vector<4x512xf32>
      %198 = arith.mulf %195, %197 : vector<4x512xf32>
      %c495_i32_84 = arith.constant 495 : i32
      %199 = tpu.dynamic_rotate %167 by %c495_i32_84 dim 1 : vector<4x512xf32>, i32 -> vector<4x512xf32>
      %200 = vector.extract_strided_slice %0 {offsets = [8, 0], sizes = [1, 512], strides = [1, 1]} : vector<9x512xf32> to vector<1x512xf32>
      %201 = vector.broadcast %200 : vector<1x512xf32> to vector<4x512xf32>
      %202 = arith.mulf %199, %201 : vector<4x512xf32>
      %203 = tpu.concatenate %174, %178, %182, %186, %167, %190, %194, %198, %202 in 0 : vector<4x512xf32>, vector<4x512xf32>, vector<4x512xf32>, vector<4x512xf32>, vector<4x512xf32>, vector<4x512xf32>, vector<4x512xf32>, vector<4x512xf32>, vector<4x512xf32> -> vector<36x512xf32>
      %cst_85 = arith.constant dense<0.000000e+00> : vector<32x512xf32>
      %204 = tpu.matmul %168, %203, %cst_85 {dimension_numbers = #tpu.dot_dimension_numbers<[1], [0], [0], [1], [0, 0, 1, 1], [], []>} : vector<32x36xf32>, vector<36x512xf32>, vector<32x512xf32> -> vector<32x512xf32>
      %cst_86 = arith.constant dense<0.000000e+00> : vector<32xf32>
      %205 = vector.multi_reduction <add>, %204, %cst_86 [1] : vector<32x512xf32> to vector<32xf32>
      %206 = vector.shape_cast %205 : vector<32xf32> to vector<32x1xf32>
      %cst_87 = arith.constant 0.001953125 : f32
      %207 = vector.broadcast %cst_87 : f32 to vector<32x1xf32>
      %208 = arith.mulf %206, %207 : vector<32x1xf32>
      %209 = vector.broadcast %208 : vector<32x1xf32> to vector<32x512xf32>
      %210 = arith.subf %204, %209 : vector<32x512xf32>
      %211 = arith.mulf %210, %210 : vector<32x512xf32>
      %cst_88 = arith.constant dense<0.000000e+00> : vector<32xf32>
      %212 = vector.multi_reduction <add>, %211, %cst_88 [1] : vector<32x512xf32> to vector<32xf32>
      %213 = vector.shape_cast %212 : vector<32xf32> to vector<32x1xf32>
      %cst_89 = arith.constant 0.001953125 : f32
      %214 = vector.broadcast %cst_89 : f32 to vector<32x1xf32>
      %215 = arith.mulf %213, %214 : vector<32x1xf32>
      %cst_90 = arith.constant 9.99999974E-6 : f32
      %216 = vector.broadcast %cst_90 : f32 to vector<32x1xf32>
      %217 = arith.addf %215, %216 : vector<32x1xf32>
      %218 = math.rsqrt %217 : vector<32x1xf32>
      %219 = arith.mulf %169, %218 : vector<32x1xf32>
      %220 = vector.broadcast %219 : vector<32x1xf32> to vector<32x512xf32>
      %221 = arith.mulf %210, %220 : vector<32x512xf32>
      %222 = vector.broadcast %170 : vector<32x1xf32> to vector<32x512xf32>
      %223 = arith.addf %221, %222 : vector<32x512xf32>
      %cst_91 = arith.constant 5.000000e-01 : f32
      %224 = vector.broadcast %cst_91 : f32 to vector<32x512xf32>
      %225 = arith.mulf %224, %223 : vector<32x512xf32>
      %cst_92 = arith.constant 0.707106769 : f32
      %226 = vector.broadcast %cst_92 : f32 to vector<32x512xf32>
      %227 = arith.mulf %223, %226 : vector<32x512xf32>
      %228 = math.erf %227 : vector<32x512xf32>
      %cst_93 = arith.constant 1.000000e+00 : f32
      %229 = vector.broadcast %cst_93 : f32 to vector<32x512xf32>
      %230 = arith.addf %229, %228 : vector<32x512xf32>
      %231 = arith.mulf %225, %230 : vector<32x512xf32>
      %c0_94 = arith.constant 0 : index
      %c0_95 = arith.constant 0 : index
      %232 = vector.load %arg16[%c0_94, %c0_95] : memref<32x512xf32, #tpu.memory_space<vmem>>, vector<32x512xf32>
      tpu.vector_store %arg16[%c0_94, %c0_95], %231 {strides = array<i32>} : memref<32x512xf32, #tpu.memory_space<vmem>>, vector<32x512xf32>,
    } else {
    }
    %c0_2 = arith.constant 0 : index
    %c0_3 = arith.constant 0 : index
    %4 = vector.load %arg16[%c0_2, %c0_3] : memref<32x512xf32, #tpu.memory_space<vmem>>, vector<32x512xf32>
    %c0_4 = arith.constant 0 : index
    %c0_5 = arith.constant 0 : index
    %c0_6 = arith.constant 0 : index
    %5 = vector.load %arg8[%c0_4, %c0_5, %c0_6] : memref<1x32x288xf32, #tpu.memory_space<vmem>>, vector<1x32x288xf32>
    %6 = vector.shape_cast %5 : vector<1x32x288xf32> to vector<32x288xf32>
    %c0_7 = arith.constant 0 : index
    %c0_8 = arith.constant 0 : index
    %c0_9 = arith.constant 0 : index
    %7 = vector.load %arg9[%c0_7, %c0_8, %c0_9] : memref<1x32x1xf32, #tpu.memory_space<vmem>>, vector<1x32x1xf32>
    %8 = vector.shape_cast %7 : vector<1x32x1xf32> to vector<32x1xf32>
    %c0_10 = arith.constant 0 : index
    %c0_11 = arith.constant 0 : index
    %c0_12 = arith.constant 0 : index
    %9 = vector.load %arg10[%c0_10, %c0_11, %c0_12] : memref<1x32x1xf32, #tpu.memory_space<vmem>>, vector<1x32x1xf32>
    %10 = vector.shape_cast %9 : vector<1x32x1xf32> to vector<32x1xf32>
    %c17_i32 = arith.constant 17 : i32
    %11 = tpu.dynamic_rotate %4 by %c17_i32 dim 1 : vector<32x512xf32>, i32 -> vector<32x512xf32>
    %12 = vector.extract_strided_slice %0 {offsets = [0, 0], sizes = [1, 512], strides = [1, 1]} : vector<9x512xf32> to vector<1x512xf32>
    %13 = vector.broadcast %12 : vector<1x512xf32> to vector<32x512xf32>
    %14 = arith.mulf %11, %13 : vector<32x512xf32>
    %c16_i32 = arith.constant 16 : i32
    %15 = tpu.dynamic_rotate %4 by %c16_i32 dim 1 : vector<32x512xf32>, i32 -> vector<32x512xf32>
    %16 = vector.extract_strided_slice %0 {offsets = [1, 0], sizes = [1, 512], strides = [1, 1]} : vector<9x512xf32> to vector<1x512xf32>
    %17 = vector.broadcast %16 : vector<1x512xf32> to vector<32x512xf32>
    %18 = arith.mulf %15, %17 : vector<32x512xf32>
    %c15_i32 = arith.constant 15 : i32
    %19 = tpu.dynamic_rotate %4 by %c15_i32 dim 1 : vector<32x512xf32>, i32 -> vector<32x512xf32>
    %20 = vector.extract_strided_slice %0 {offsets = [2, 0], sizes = [1, 512], strides = [1, 1]} : vector<9x512xf32> to vector<1x512xf32>
    %21 = vector.broadcast %20 : vector<1x512xf32> to vector<32x512xf32>
    %22 = arith.mulf %19, %21 : vector<32x512xf32>
    %c1_i32 = arith.constant 1 : i32
    %23 = tpu.dynamic_rotate %4 by %c1_i32 dim 1 : vector<32x512xf32>, i32 -> vector<32x512xf32>
    %24 = vector.extract_strided_slice %0 {offsets = [3, 0], sizes = [1, 512], strides = [1, 1]} : vector<9x512xf32> to vector<1x512xf32>
    %25 = vector.broadcast %24 : vector<1x512xf32> to vector<32x512xf32>
    %26 = arith.mulf %23, %25 : vector<32x512xf32>
    %c511_i32 = arith.constant 511 : i32
    %27 = tpu.dynamic_rotate %4 by %c511_i32 dim 1 : vector<32x512xf32>, i32 -> vector<32x512xf32>
    %28 = vector.extract_strided_slice %0 {offsets = [5, 0], sizes = [1, 512], strides = [1, 1]} : vector<9x512xf32> to vector<1x512xf32>
    %29 = vector.broadcast %28 : vector<1x512xf32> to vector<32x512xf32>
    %30 = arith.mulf %27, %29 : vector<32x512xf32>
    %c497_i32 = arith.constant 497 : i32
    %31 = tpu.dynamic_rotate %4 by %c497_i32 dim 1 : vector<32x512xf32>, i32 -> vector<32x512xf32>
    %32 = vector.extract_strided_slice %0 {offsets = [6, 0], sizes = [1, 512], strides = [1, 1]} : vector<9x512xf32> to vector<1x512xf32>
    %33 = vector.broadcast %32 : vector<1x512xf32> to vector<32x512xf32>
    %34 = arith.mulf %31, %33 : vector<32x512xf32>
    %c496_i32 = arith.constant 496 : i32
    %35 = tpu.dynamic_rotate %4 by %c496_i32 dim 1 : vector<32x512xf32>, i32 -> vector<32x512xf32>
    %36 = vector.extract_strided_slice %0 {offsets = [7, 0], sizes = [1, 512], strides = [1, 1]} : vector<9x512xf32> to vector<1x512xf32>
    %37 = vector.broadcast %36 : vector<1x512xf32> to vector<32x512xf32>
    %38 = arith.mulf %35, %37 : vector<32x512xf32>
    %c495_i32 = arith.constant 495 : i32
    %39 = tpu.dynamic_rotate %4 by %c495_i32 dim 1 : vector<32x512xf32>, i32 -> vector<32x512xf32>
    %40 = vector.extract_strided_slice %0 {offsets = [8, 0], sizes = [1, 512], strides = [1, 1]} : vector<9x512xf32> to vector<1x512xf32>
    %41 = vector.broadcast %40 : vector<1x512xf32> to vector<32x512xf32>
    %42 = arith.mulf %39, %41 : vector<32x512xf32>
    %43 = tpu.concatenate %14, %18, %22, %26, %4, %30, %34, %38, %42 in 0 : vector<32x512xf32>, vector<32x512xf32>, vector<32x512xf32>, vector<32x512xf32>, vector<32x512xf32>, vector<32x512xf32>, vector<32x512xf32>, vector<32x512xf32>, vector<32x512xf32> -> vector<288x512xf32>
    %cst = arith.constant dense<0.000000e+00> : vector<32x512xf32>
    %44 = tpu.matmul %6, %43, %cst {dimension_numbers = #tpu.dot_dimension_numbers<[1], [0], [0], [1], [0, 0, 1, 1], [], []>} : vector<32x288xf32>, vector<288x512xf32>, vector<32x512xf32> -> vector<32x512xf32>
    %cst_13 = arith.constant dense<0.000000e+00> : vector<32xf32>
    %45 = vector.multi_reduction <add>, %44, %cst_13 [1] : vector<32x512xf32> to vector<32xf32>
    %46 = vector.shape_cast %45 : vector<32xf32> to vector<32x1xf32>
    %cst_14 = arith.constant 0.001953125 : f32
    %47 = vector.broadcast %cst_14 : f32 to vector<32x1xf32>
    %48 = arith.mulf %46, %47 : vector<32x1xf32>
    %49 = vector.broadcast %48 : vector<32x1xf32> to vector<32x512xf32>
    %50 = arith.subf %44, %49 : vector<32x512xf32>
    %51 = arith.mulf %50, %50 : vector<32x512xf32>
    %cst_15 = arith.constant dense<0.000000e+00> : vector<32xf32>
    %52 = vector.multi_reduction <add>, %51, %cst_15 [1] : vector<32x512xf32> to vector<32xf32>
    %53 = vector.shape_cast %52 : vector<32xf32> to vector<32x1xf32>
    %cst_16 = arith.constant 0.001953125 : f32
    %54 = vector.broadcast %cst_16 : f32 to vector<32x1xf32>
    %55 = arith.mulf %53, %54 : vector<32x1xf32>
    %cst_17 = arith.constant 9.99999974E-6 : f32
    %56 = vector.broadcast %cst_17 : f32 to vector<32x1xf32>
    %57 = arith.addf %55, %56 : vector<32x1xf32>
    %58 = math.rsqrt %57 : vector<32x1xf32>
    %59 = arith.mulf %8, %58 : vector<32x1xf32>
    %60 = vector.broadcast %59 : vector<32x1xf32> to vector<32x512xf32>
    %61 = arith.mulf %50, %60 : vector<32x512xf32>
    %62 = vector.broadcast %10 : vector<32x1xf32> to vector<32x512xf32>
    %63 = arith.addf %61, %62 : vector<32x512xf32>
    %cst_18 = arith.constant 5.000000e-01 : f32
    %64 = vector.broadcast %cst_18 : f32 to vector<32x512xf32>
    %65 = arith.mulf %64, %63 : vector<32x512xf32>
    %cst_19 = arith.constant 0.707106769 : f32
    %66 = vector.broadcast %cst_19 : f32 to vector<32x512xf32>
    %67 = arith.mulf %63, %66 : vector<32x512xf32>
    %68 = math.erf %67 : vector<32x512xf32>
    %cst_20 = arith.constant 1.000000e+00 : f32
    %69 = vector.broadcast %cst_20 : f32 to vector<32x512xf32>
    %70 = arith.addf %69, %68 : vector<32x512xf32>
    %71 = arith.mulf %65, %70 : vector<32x512xf32>
    %c0_21 = arith.constant 0 : index
    %c0_22 = arith.constant 0 : index
    %c0_23 = arith.constant 0 : index
    %72 = vector.load %arg11[%c0_21, %c0_22, %c0_23] : memref<1x32x288xf32, #tpu.memory_space<vmem>>, vector<1x32x288xf32>
    %73 = vector.shape_cast %72 : vector<1x32x288xf32> to vector<32x288xf32>
    %c0_24 = arith.constant 0 : index
    %c0_25 = arith.constant 0 : index
    %c0_26 = arith.constant 0 : index
    %74 = vector.load %arg12[%c0_24, %c0_25, %c0_26] : memref<1x32x1xf32, #tpu.memory_space<vmem>>, vector<1x32x1xf32>
    %75 = vector.shape_cast %74 : vector<1x32x1xf32> to vector<32x1xf32>
    %c0_27 = arith.constant 0 : index
    %c0_28 = arith.constant 0 : index
    %c0_29 = arith.constant 0 : index
    %76 = vector.load %arg13[%c0_27, %c0_28, %c0_29] : memref<1x32x1xf32, #tpu.memory_space<vmem>>, vector<1x32x1xf32>
    %77 = vector.shape_cast %76 : vector<1x32x1xf32> to vector<32x1xf32>
    %c17_i32_30 = arith.constant 17 : i32
    %78 = tpu.dynamic_rotate %71 by %c17_i32_30 dim 1 : vector<32x512xf32>, i32 -> vector<32x512xf32>
    %79 = vector.extract_strided_slice %0 {offsets = [0, 0], sizes = [1, 512], strides = [1, 1]} : vector<9x512xf32> to vector<1x512xf32>
    %80 = vector.broadcast %79 : vector<1x512xf32> to vector<32x512xf32>
    %81 = arith.mulf %78, %80 : vector<32x512xf32>
    %c16_i32_31 = arith.constant 16 : i32
    %82 = tpu.dynamic_rotate %71 by %c16_i32_31 dim 1 : vector<32x512xf32>, i32 -> vector<32x512xf32>
    %83 = vector.extract_strided_slice %0 {offsets = [1, 0], sizes = [1, 512], strides = [1, 1]} : vector<9x512xf32> to vector<1x512xf32>
    %84 = vector.broadcast %83 : vector<1x512xf32> to vector<32x512xf32>
    %85 = arith.mulf %82, %84 : vector<32x512xf32>
    %c15_i32_32 = arith.constant 15 : i32
    %86 = tpu.dynamic_rotate %71 by %c15_i32_32 dim 1 : vector<32x512xf32>, i32 -> vector<32x512xf32>
    %87 = vector.extract_strided_slice %0 {offsets = [2, 0], sizes = [1, 512], strides = [1, 1]} : vector<9x512xf32> to vector<1x512xf32>
    %88 = vector.broadcast %87 : vector<1x512xf32> to vector<32x512xf32>
    %89 = arith.mulf %86, %88 : vector<32x512xf32>
    %c1_i32_33 = arith.constant 1 : i32
    %90 = tpu.dynamic_rotate %71 by %c1_i32_33 dim 1 : vector<32x512xf32>, i32 -> vector<32x512xf32>
    %91 = vector.extract_strided_slice %0 {offsets = [3, 0], sizes = [1, 512], strides = [1, 1]} : vector<9x512xf32> to vector<1x512xf32>
    %92 = vector.broadcast %91 : vector<1x512xf32> to vector<32x512xf32>
    %93 = arith.mulf %90, %92 : vector<32x512xf32>
    %c511_i32_34 = arith.constant 511 : i32
    %94 = tpu.dynamic_rotate %71 by %c511_i32_34 dim 1 : vector<32x512xf32>, i32 -> vector<32x512xf32>
    %95 = vector.extract_strided_slice %0 {offsets = [5, 0], sizes = [1, 512], strides = [1, 1]} : vector<9x512xf32> to vector<1x512xf32>
    %96 = vector.broadcast %95 : vector<1x512xf32> to vector<32x512xf32>
    %97 = arith.mulf %94, %96 : vector<32x512xf32>
    %c497_i32_35 = arith.constant 497 : i32
    %98 = tpu.dynamic_rotate %71 by %c497_i32_35 dim 1 : vector<32x512xf32>, i32 -> vector<32x512xf32>
    %99 = vector.extract_strided_slice %0 {offsets = [6, 0], sizes = [1, 512], strides = [1, 1]} : vector<9x512xf32> to vector<1x512xf32>
    %100 = vector.broadcast %99 : vector<1x512xf32> to vector<32x512xf32>
    %101 = arith.mulf %98, %100 : vector<32x512xf32>
    %c496_i32_36 = arith.constant 496 : i32
    %102 = tpu.dynamic_rotate %71 by %c496_i32_36 dim 1 : vector<32x512xf32>, i32 -> vector<32x512xf32>
    %103 = vector.extract_strided_slice %0 {offsets = [7, 0], sizes = [1, 512], strides = [1, 1]} : vector<9x512xf32> to vector<1x512xf32>
    %104 = vector.broadcast %103 : vector<1x512xf32> to vector<32x512xf32>
    %105 = arith.mulf %102, %104 : vector<32x512xf32>
    %c495_i32_37 = arith.constant 495 : i32
    %106 = tpu.dynamic_rotate %71 by %c495_i32_37 dim 1 : vector<32x512xf32>, i32 -> vector<32x512xf32>
    %107 = vector.extract_strided_slice %0 {offsets = [8, 0], sizes = [1, 512], strides = [1, 1]} : vector<9x512xf32> to vector<1x512xf32>
    %108 = vector.broadcast %107 : vector<1x512xf32> to vector<32x512xf32>
    %109 = arith.mulf %106, %108 : vector<32x512xf32>
    %110 = tpu.concatenate %81, %85, %89, %93, %71, %97, %101, %105, %109 in 0 : vector<32x512xf32>, vector<32x512xf32>, vector<32x512xf32>, vector<32x512xf32>, vector<32x512xf32>, vector<32x512xf32>, vector<32x512xf32>, vector<32x512xf32>, vector<32x512xf32> -> vector<288x512xf32>
    %cst_38 = arith.constant dense<0.000000e+00> : vector<32x512xf32>
    %111 = tpu.matmul %73, %110, %cst_38 {dimension_numbers = #tpu.dot_dimension_numbers<[1], [0], [0], [1], [0, 0, 1, 1], [], []>} : vector<32x288xf32>, vector<288x512xf32>, vector<32x512xf32> -> vector<32x512xf32>
    %cst_39 = arith.constant dense<0.000000e+00> : vector<32xf32>
    %112 = vector.multi_reduction <add>, %111, %cst_39 [1] : vector<32x512xf32> to vector<32xf32>
    %113 = vector.shape_cast %112 : vector<32xf32> to vector<32x1xf32>
    %cst_40 = arith.constant 0.001953125 : f32
    %114 = vector.broadcast %cst_40 : f32 to vector<32x1xf32>
    %115 = arith.mulf %113, %114 : vector<32x1xf32>
    %116 = vector.broadcast %115 : vector<32x1xf32> to vector<32x512xf32>
    %117 = arith.subf %111, %116 : vector<32x512xf32>
    %118 = arith.mulf %117, %117 : vector<32x512xf32>
    %cst_41 = arith.constant dense<0.000000e+00> : vector<32xf32>
    %119 = vector.multi_reduction <add>, %118, %cst_41 [1] : vector<32x512xf32> to vector<32xf32>
    %120 = vector.shape_cast %119 : vector<32xf32> to vector<32x1xf32>
    %cst_42 = arith.constant 0.001953125 : f32
    %121 = vector.broadcast %cst_42 : f32 to vector<32x1xf32>
    %122 = arith.mulf %120, %121 : vector<32x1xf32>
    %cst_43 = arith.constant 9.99999974E-6 : f32
    %123 = vector.broadcast %cst_43 : f32 to vector<32x1xf32>
    %124 = arith.addf %122, %123 : vector<32x1xf32>
    %125 = math.rsqrt %124 : vector<32x1xf32>
    %126 = arith.mulf %75, %125 : vector<32x1xf32>
    %127 = vector.broadcast %126 : vector<32x1xf32> to vector<32x512xf32>
    %128 = arith.mulf %117, %127 : vector<32x512xf32>
    %129 = vector.broadcast %77 : vector<32x1xf32> to vector<32x512xf32>
    %130 = arith.addf %128, %129 : vector<32x512xf32>
    %c0_44 = arith.constant 0 : index
    %c0_45 = arith.constant 0 : index
    %131 = vector.load %arg2[%c0_44, %c0_45] : memref<512x2xf32, #tpu.memory_space<vmem>>, vector<512x2xf32>
    %cst_46 = arith.constant dense<0.000000e+00> : vector<32x2xf32>
    %132 = tpu.matmul %130, %131, %cst_46 {dimension_numbers = #tpu.dot_dimension_numbers<[1], [0], [0], [1], [0, 0, 1, 1], [], []>} : vector<32x512xf32>, vector<512x2xf32>, vector<32x2xf32> -> vector<32x2xf32>
    %c0_47 = arith.constant 0 : index
    %c0_48 = arith.constant 0 : index
    %c0_49 = arith.constant 0 : index
    %133 = vector.load %arg14[%c0_47, %c0_48, %c0_49] : memref<1x4x32xf32, #tpu.memory_space<vmem>>, vector<1x4x32xf32>
    %134 = vector.shape_cast %133 : vector<1x4x32xf32> to vector<4x32xf32>
    %cst_50 = arith.constant dense<0.000000e+00> : vector<4x2xf32>
    %135 = tpu.matmul %134, %132, %cst_50 {dimension_numbers = #tpu.dot_dimension_numbers<[1], [0], [0], [1], [0, 0, 1, 1], [], []>} : vector<4x32xf32>, vector<32x2xf32>, vector<4x2xf32> -> vector<4x2xf32>
    %cst_51 = arith.constant 5.000000e-01 : f32
    %136 = vector.broadcast %cst_51 : f32 to vector<4x2xf32>
    %137 = arith.mulf %136, %135 : vector<4x2xf32>
    %cst_52 = arith.constant 0.707106769 : f32
    %138 = vector.broadcast %cst_52 : f32 to vector<4x2xf32>
    %139 = arith.mulf %135, %138 : vector<4x2xf32>
    %140 = math.erf %139 : vector<4x2xf32>
    %cst_53 = arith.constant 1.000000e+00 : f32
    %141 = vector.broadcast %cst_53 : f32 to vector<4x2xf32>
    %142 = arith.addf %141, %140 : vector<4x2xf32>
    %143 = arith.mulf %137, %142 : vector<4x2xf32>
    %c0_54 = arith.constant 0 : index
    %c0_55 = arith.constant 0 : index
    %c0_56 = arith.constant 0 : index
    %144 = vector.load %arg15[%c0_54, %c0_55, %c0_56] : memref<1x32x4xf32, #tpu.memory_space<vmem>>, vector<1x32x4xf32>
    %145 = vector.shape_cast %144 : vector<1x32x4xf32> to vector<32x4xf32>
    %cst_57 = arith.constant dense<0.000000e+00> : vector<32x2xf32>
    %146 = tpu.matmul %145, %143, %cst_57 {dimension_numbers = #tpu.dot_dimension_numbers<[1], [0], [0], [1], [0, 0, 1, 1], [], []>} : vector<32x4xf32>, vector<4x2xf32>, vector<32x2xf32> -> vector<32x2xf32>
    %cst_58 = arith.constant 0.000000e+00 : f32
    %147 = vector.broadcast %cst_58 : f32 to vector<32x2xf32>
    %148 = arith.subf %147, %146 : vector<32x2xf32>
    %149 = math.exp %148 : vector<32x2xf32>
    %cst_59 = arith.constant 1.000000e+00 : f32
    %150 = vector.broadcast %cst_59 : f32 to vector<32x2xf32>
    %151 = arith.addf %150, %149 : vector<32x2xf32>
    %cst_60 = arith.constant 1.000000e+00 : f32
    %152 = vector.broadcast %cst_60 : f32 to vector<32x2xf32>
    %153 = arith.divf %152, %151 : vector<32x2xf32>
    %c0_61 = arith.constant 0 : index
    %c0_62 = arith.constant 0 : index
    %154 = vector.load %arg3[%c0_61, %c0_62] : memref<2x512xf32, #tpu.memory_space<vmem>>, vector<2x512xf32>
    %cst_63 = arith.constant dense<0.000000e+00> : vector<32x512xf32>
    %155 = tpu.matmul %153, %154, %cst_63 {dimension_numbers = #tpu.dot_dimension_numbers<[1], [0], [0], [1], [0, 0, 1, 1], [], []>} : vector<32x2xf32>, vector<2x512xf32>, vector<32x512xf32> -> vector<32x512xf32>
    %156 = arith.mulf %130, %155 : vector<32x512xf32>
    %157 = arith.addf %4, %156 : vector<32x512xf32>
    %cst_64 = arith.constant 5.000000e-01 : f32
    %158 = vector.broadcast %cst_64 : f32 to vector<32x512xf32>
    %159 = arith.mulf %158, %157 : vector<32x512xf32>
    %cst_65 = arith.constant 0.707106769 : f32
    %160 = vector.broadcast %cst_65 : f32 to vector<32x512xf32>
    %161 = arith.mulf %157, %160 : vector<32x512xf32>
    %162 = math.erf %161 : vector<32x512xf32>
    %cst_66 = arith.constant 1.000000e+00 : f32
    %163 = vector.broadcast %cst_66 : f32 to vector<32x512xf32>
    %164 = arith.addf %163, %162 : vector<32x512xf32>
    %165 = arith.mulf %159, %164 : vector<32x512xf32>
    %c0_67 = arith.constant 0 : index
    %c0_68 = arith.constant 0 : index
    %166 = vector.load %arg16[%c0_67, %c0_68] : memref<32x512xf32, #tpu.memory_space<vmem>>, vector<32x512xf32>
    tpu.vector_store %arg16[%c0_67, %c0_68], %165 {strides = array<i32>} : memref<32x512xf32, #tpu.memory_space<vmem>>, vector<32x512xf32>,
    return
  }
  func.func @transform_0(%arg0: i32) -> (i32, i32) {
    %c0_i32 = arith.constant 0 : i32
    %c0_i32_0 = arith.constant 0 : i32
    %c0_i32_1 = arith.constant 0 : i32
    return %c0_i32, %c0_i32_0 : i32, i32
  }
  func.func @transform_1(%arg0: i32) -> (i32, i32) {
    %c0_i32 = arith.constant 0 : i32
    %c0_i32_0 = arith.constant 0 : i32
    %c0_i32_1 = arith.constant 0 : i32
    return %c0_i32, %c0_i32_0 : i32, i32
  }
  func.func @transform_2(%arg0: i32) -> (i32, i32) {
    %c0_i32 = arith.constant 0 : i32
    %c0_i32_0 = arith.constant 0 : i32
    %c0_i32_1 = arith.constant 0 : i32
    return %c0_i32, %c0_i32_0 : i32, i32
  }
  func.func @transform_3(%arg0: i32) -> (i32, i32) {
    %c0_i32 = arith.constant 0 : i32
    %c0_i32_0 = arith.constant 0 : i32
    %c0_i32_1 = arith.constant 0 : i32
    return %c0_i32, %c0_i32_0 : i32, i32
  }
  func.func @transform_4(%arg0: i32) -> (i32, i32) {
    %c0_i32 = arith.constant 0 : i32
    %c0_i32_0 = arith.constant 0 : i32
    %c0_i32_1 = arith.constant 0 : i32
    return %c0_i32, %c0_i32_0 : i32, i32
  }
  func.func @transform_5(%arg0: i32) -> (i32, i32) {
    %c0_i32 = arith.constant 0 : i32
    %c0_i32_0 = arith.constant 0 : i32
    %c0_i32_1 = arith.constant 0 : i32
    return %c0_i32, %c0_i32_0 : i32, i32
  }
  func.func @transform_6(%arg0: i32) -> (i32, i32) {
    %c0_i32 = arith.constant 0 : i32
    %c0_i32_0 = arith.constant 0 : i32
    %c0_i32_1 = arith.constant 0 : i32
    return %c0_i32, %c0_i32_0 : i32, i32
  }
  func.func @transform_7(%arg0: i32) -> (i32, i32, i32) {
    %c0_i32 = arith.constant 0 : i32
    %c0_i32_0 = arith.constant 0 : i32
    %c0_i32_1 = arith.constant 0 : i32
    return %arg0, %c0_i32, %c0_i32_0 : i32, i32, i32
  }
  func.func @transform_8(%arg0: i32) -> (i32, i32, i32) {
    %c0_i32 = arith.constant 0 : i32
    %c0_i32_0 = arith.constant 0 : i32
    %c0_i32_1 = arith.constant 0 : i32
    return %arg0, %c0_i32, %c0_i32_0 : i32, i32, i32
  }
  func.func @transform_9(%arg0: i32) -> (i32, i32, i32) {
    %c0_i32 = arith.constant 0 : i32
    %c0_i32_0 = arith.constant 0 : i32
    %c0_i32_1 = arith.constant 0 : i32
    return %arg0, %c0_i32, %c0_i32_0 : i32, i32, i32
  }
  func.func @transform_10(%arg0: i32) -> (i32, i32, i32) {
    %c0_i32 = arith.constant 0 : i32
    %c0_i32_0 = arith.constant 0 : i32
    %c0_i32_1 = arith.constant 0 : i32
    return %arg0, %c0_i32, %c0_i32_0 : i32, i32, i32
  }
  func.func @transform_11(%arg0: i32) -> (i32, i32, i32) {
    %c0_i32 = arith.constant 0 : i32
    %c0_i32_0 = arith.constant 0 : i32
    %c0_i32_1 = arith.constant 0 : i32
    return %arg0, %c0_i32, %c0_i32_0 : i32, i32, i32
  }
  func.func @transform_12(%arg0: i32) -> (i32, i32, i32) {
    %c0_i32 = arith.constant 0 : i32
    %c0_i32_0 = arith.constant 0 : i32
    %c0_i32_1 = arith.constant 0 : i32
    return %arg0, %c0_i32, %c0_i32_0 : i32, i32, i32
  }
  func.func @transform_13(%arg0: i32) -> (i32, i32, i32) {
    %c0_i32 = arith.constant 0 : i32
    %c0_i32_0 = arith.constant 0 : i32
    %c0_i32_1 = arith.constant 0 : i32
    return %arg0, %c0_i32, %c0_i32_0 : i32, i32, i32
  }
  func.func @transform_14(%arg0: i32) -> (i32, i32, i32) {
    %c0_i32 = arith.constant 0 : i32
    %c0_i32_0 = arith.constant 0 : i32
    %c0_i32_1 = arith.constant 0 : i32
    return %arg0, %c0_i32, %c0_i32_0 : i32, i32, i32
  }
  func.func @transform_15(%arg0: i32) -> (i32, i32) {
    %c0_i32 = arith.constant 0 : i32
    %c0_i32_0 = arith.constant 0 : i32
    %c0_i32_1 = arith.constant 0 : i32
    return %c0_i32, %c0_i32_0 : i32, i32
  }
}

</mosaic_0001>

<bundles_post_ra>
// kernel: tpu_custom_call.1
= control target key start
LH: loop header
LB: loop body
LE: loop exit
PB: predicated region body
PF: predicated region fallthrough
CT: control target
= control target key end

     0   :  { %s8555_s0 = inlined_call_operand.vmem [shape: f32[9,512], index: 0, kind: input, shape index: {}]   ;;  %s8556_s1 = inlined_call_operand.vmem [shape: f32[512,2], index: 1, kind: input, shape index: {}]   ;;  %s8557_s2 = inlined_call_operand.vmem [shape: f32[2,512], index: 2, kind: input, shape index: {}]   ;;  %s8558_s3 = inlined_call_operand.vmem [shape: f32[4,512], index: 3, kind: input, shape index: {}]   ;;  %s8559_s4 = inlined_call_operand.vmem [shape: f32[32,36], index: 4, kind: input, shape index: {}]   ;;  %s8560_s5 = inlined_call_operand.vmem [shape: f32[32,1], index: 5, kind: input, shape index: {}]   ;;  %s8561_s6 = inlined_call_operand.vmem [shape: f32[32,1], index: 6, kind: input, shape index: {}]   ;;  %s8562_s7 = inlined_call_operand.vmem [shape: f32[2,32,288], index: 7, kind: input, shape index: {}]   ;;  %s8563_s8 = inlined_call_operand.vmem [shape: f32[2,32,1], index: 8, kind: input, shape index: {}]   ;;  %s8564_s9 = inlined_call_operand.vmem [shape: f32[2,32,1], index: 9, kind: input, shape index: {}]   ;;  %s8565_s10 = inlined_call_operand.vmem [shape: f32[2,32,288], index: 10, kind: input, shape index: {}]   ;;  %s8566_s11 = inlined_call_operand.vmem [shape: f32[2,32,1], index: 11, kind: input, shape index: {}]   ;;  %s8567_s12 = inlined_call_operand.vmem [shape: f32[2,32,1], index: 12, kind: input, shape index: {}]   ;;  %s8568_s13 = inlined_call_operand.vmem [shape: f32[2,4,32], index: 13, kind: input, shape index: {}]   ;;  %s8569_s14 = inlined_call_operand.vmem [shape: f32[2,32,4], index: 14, kind: input, shape index: {}]   ;;  %s8570_s15 = inlined_call_operand.hbm [shape: f32[32,512], index: 15, kind: output, shape index: {}]  }
   0x1   :  { %8657 = sst [smem:[#allocation68_spill]] %s8555_s0 }
   0x2   :  { %8658 = sst [smem:[#allocation69_spill]] %s8557_s2 }
   0x3   :  { %8659 = sst [smem:[#allocation70_spill]] %s8562_s7 }
   0x4   :  { %8660 = sst [smem:[#allocation71_spill]] %s8563_s8 }
   0x5   :  { %8661 = sst [smem:[#allocation72_spill]] %s8564_s9 }
   0x6   :  { %8662 = sst [smem:[#allocation73_spill]] %s8570_s15 }
   0x7   :  { %20 = vsyncpa [#allocation3], 0  ;;  %s5671_s18 = smov 0  }
   0x8 LB: > { %8663 = sst [smem:[#allocation5_spill]] %s5563_s18  ;;  %s5677_s19 = sadd.s32 4294967295, %s5563_s18   ;;  %s5563_s18 = sphi %s5671_s18, %s26_s18  }
   0x9   : > { %p4732_p0 = scmp.ge.s32.totalorder %s5563_s18, 1  ;;  %p502_p1 = scmp.lt.s32.totalorder %s5563_s18, 3 }
   0xb   : > { %p503_p2 = pnand %p4732_p0, %p502_p1 }
   0xd   : > { %506 = sbr.rel (%p503_p2) target bundleno = 3997 (0xf9d), region = 80 }
  0x14   : > { %p579_p3 = scmp.lt.s32.totalorder %s5677_s19, 1  ;;  %s8664_s0 = sld [smem:[#allocation68_spill]] }
  0x15   : > { %s8665_s8 = sld [smem:[#allocation71_spill]]  ;;  %s8666_s9 = sld [smem:[#allocation72_spill]] }
  0x16   : > { %s580_s17 = scalar_select %p579_p3, %s5677_s19, 1 }
  0x17   : > { %s8667_s7 = sld [smem:[#allocation70_spill]]  ;;  %p4746_p4 = scmp.ne.s32.totalorder %s5677_s19, 0 }
  0x18   : > { %s5325_s24 = smul.u32 96, %s580_s17  ;;  %s4797_s25 = sshll.u32 %s580_s17, 5  ;;  %v5767_v8 = vld [vmem:[%s8558_s3] sm:$0xff] (!%p4746_p4)  ;;  %v5778_v10 = vld [vmem:[%s8558_s3 + $0x8] sm:$0xff] (!%p4746_p4)  ;;  %v5572_v12 = vmov (!%p4746_p4), 0.0   ;;  %v658_v13 = vlaneseq (!%p4746_p4)  ;;  %vm964_vm4 = vcmask (!%p4746_p4), 1043456  }
  0x19   : > { %s5746_s26 = scalar_lea.vmem %s8566_s11, %s4797_s25  ;;  %s5751_s29 = scalar_lea.vmem %s8567_s12, %s4797_s25  ;;  %v5773_v9 = vcombine.high (!%p4746_p4), %v5767_v8, %v5767_v8  ;;  %v5784_v11 = vcombine.high (!%p4746_p4), %v5778_v10, %v5778_v10  ;;  %1070 = vmatprep.mubr.f32.mxu0 (!%p4746_p4), %v5572_v12  ;;  %1159 = vmatprep.mubr.f32.mxu1 (!%p4746_p4), %v5572_v12  ;;  %vm981_vm9 = vcmask (!%p4746_p4), 293888  }
  0x1a   : > { %v5685_v0 = vld [vmem:[%s8664_s0] sm:$0xff]  ;;  %v5690_v1 = vld [vmem:[%s8664_s0 + $0x8] sm:$0xff]  ;;  %v5695_v2 = vld [vmem:[%s8664_s0 + $0x10] sm:$0xff]  ;;  %s4743_s30 = sshll.u32 %s580_s17, 2  ;;  %s5756_s21 = scalar_lea.vmem %s8569_s14, %s4797_s25  ;;  %v5816_v16 = vshrl.u32 (!%p4746_p4), %v658_v13, 7  ;;  %v5818_v17 = vand.u32 (!%p4746_p4), 127, %v658_v13 }
  0x1b   : > { %v5700_v3 = vld [vmem:[%s8664_s0 + $0x18] sm:$0xff]  ;;  %v5705_v4 = vld [vmem:[%s8664_s0 + $0x20] sm:$0x1]  ;;  %v5710_v5 = vld [vmem:[%s8664_s0 + $0x28] sm:$0x1]  ;;  %s5726_s28 = scalar_lea.vmem %s8665_s8, %s4797_s25  ;;  %s5731_s16 = scalar_lea.vmem %s8666_s9, %s4797_s25 }
  0x1c   : > { %v5716_v6 = vld [vmem:[%s8664_s0 + $0x30] sm:$0x1]  ;;  %v5721_v7 = vld [vmem:[%s8664_s0 + $0x38] sm:$0x1]  ;;  %s5741_s0 = scalar_lea.vmem %s8565_s10, %s5325_s24  ;;  %629 = sbr.rel (%p4746_p4) target bundleno = 918 (0x396), region = 84  ;;  %v5823_v20 = vsub.s32 (!%p4746_p4), 3, %v5816_v16 }
  0x1d   : > { %s5736_s18 = scalar_lea.vmem %s8667_s7, %s5325_s24  ;;  %s5761_s24 = scalar_lea.vmem %s8568_s13, %s4743_s30  ;;  %v5826_v21 = vsub.s32 (!%p4746_p4), 1, %v5816_v16  ;;  %vm759_vm0 = vcmp.lt.s32.totalorder (!%p4746_p4), %v5818_v17, 1  ;;  %vm693_vm1 = vcmp.lt.s32.totalorder (!%p4746_p4), %v5818_v17, 16  ;;  %v5831_v24 = vsub.s32 (!%p4746_p4), 0, %v5816_v16 }
  0x1e   : > { %s5565_s8 = smov (!%p4746_p4), 1   ;;  %s5566_s17 = smov (!%p4746_p4), 16   ;;  %v771_v25 = vrot.slane (!%p4746_p4), %v5690_v1, %v5823_v20  ;;  %vm660_vm2 = vcmp.lt.s32.totalorder (!%p4746_p4), %v5818_v17, 17  ;;  %v5839_v27 = vsub.s32 (!%p4746_p4), 2, %v5816_v16  ;;  %vm726_vm3 = vcmp.lt.s32.totalorder (!%p4746_p4), %v5818_v17, 15 }
  0x1f   : > { %751 = vrot.lane.b32.xlu1 (!%p4746_p4), %v5767_v8, %s5565_s8  ;;  %685 = vrot.lane.b32.xlu0 (!%p4746_p4), %v5767_v8, %s5566_s17  ;;  %s5567_s25 = smov (!%p4746_p4), 17   ;;  %s5568_s23 = smov (!%p4746_p4), 15   ;;  %v705_v26 = vrot.slane (!%p4746_p4), %v5690_v1, %v5826_v21  ;;  %v672_v31 = vrot.slane (!%p4746_p4), %v5690_v1, %v5831_v24  ;;  %v767_v40 = vrot.slane (!%p4746_p4), %v5685_v0, %v5823_v20  ;;  %vm792_vm5 = vcmp.lt.s32.totalorder (!%p4746_p4), %v5818_v17, 127 }
  0x20   : > { %s5569_s27 = smov (!%p4746_p4), 127   ;;  %s5570_s30 = smov (!%p4746_p4), 112   ;;  %v738_v36 = vrot.slane (!%p4746_p4), %v5690_v1, %v5839_v27  ;;  %v701_v44 = vrot.slane (!%p4746_p4), %v5685_v0, %v5826_v21  ;;  %v668_v49 = vrot.slane (!%p4746_p4), %v5685_v0, %v5831_v24  ;;  %v734_v57 = vrot.slane (!%p4746_p4), %v5685_v0, %v5839_v27 }
  0x21   : > { %s5571_s20 = smov (!%p4746_p4), 113   ;;  %s5573_s22 = smov (!%p4746_p4), 111   ;;  %vm858_vm6 = vcmp.lt.s32.totalorder (!%p4746_p4), %v5818_v17, 112  ;;  %vm825_vm7 = vcmp.lt.s32.totalorder (!%p4746_p4), %v5818_v17, 113  ;;  %vm891_vm8 = vcmp.lt.s32.totalorder (!%p4746_p4), %v5818_v17, 111  ;;  %v633_v17 = vld [vmem:[%s8559_s4 + $0x8] sm:$0xff] (!%p4746_p4) }
  0x23   : > { %753 = vrot.lane.b32.xlu1 %v5773_v9, %s5565_s8  ;;  %687 = vrot.lane.b32.xlu0 %v5773_v9, %s5566_s17 }
  0x27   : > { %757 = vrot.lane.b32.xlu1 %v5784_v11, %s5565_s8  ;;  %691 = vrot.lane.b32.xlu0 %v5784_v11, %s5566_s17 }
  0x2b   : > { %652 = vrot.lane.b32.xlu1 %v5773_v9, %s5567_s25  ;;  %650 = vrot.lane.b32.xlu0 %v5767_v8, %s5567_s25 }
  0x2f   : > { %720 = vrot.lane.b32.xlu1 %v5773_v9, %s5568_s23  ;;  %718 = vrot.lane.b32.xlu0 %v5767_v8, %s5568_s23 }
  0x33   : > { %689 = vrot.lane.b32.xlu1 %v5778_v10, %s5566_s17  ;;  %656 = vrot.lane.b32.xlu0 %v5784_v11, %s5567_s25 }
  0x37   : > { %755 = vrot.lane.b32.xlu1 %v5778_v10, %s5565_s8  ;;  %724 = vrot.lane.b32.xlu0 %v5784_v11, %s5568_s23 }
  0x3b   : > { %788 = vrot.lane.b32.xlu1 %v5778_v10, %s5569_s27  ;;  %786 = vrot.lane.b32.xlu0 %v5773_v9, %s5569_s27 }
  0x3f   : > { %854 = vrot.lane.b32.xlu1 %v5778_v10, %s5570_s30  ;;  %852 = vrot.lane.b32.xlu0 %v5773_v9, %s5570_s30 }
  0x43   : > { %722 = vrot.lane.b32.xlu1 %v5778_v10, %s5568_s23  ;;  %654 = vrot.lane.b32.xlu0 %v5778_v10, %s5567_s25 }
  0x47   : > { %850 = vrot.lane.b32.xlu1 %v5767_v8, %s5570_s30  ;;  %784 = vrot.lane.b32.xlu0 %v5767_v8, %s5569_s27 }
  0x4b   : > { %821 = vrot.lane.b32.xlu1 %v5778_v10, %s5571_s20  ;;  %819 = vrot.lane.b32.xlu0 %v5773_v9, %s5571_s20 }
  0x4f   : > { %817 = vrot.lane.b32.xlu1 %v5767_v8, %s5571_s20  ;;  %790 = vrot.lane.b32.xlu0 %v5784_v11, %s5569_s27 }
  0x53   : > { %823 = vrot.lane.b32.xlu1 %v5784_v11, %s5571_s20  ;;  %856 = vrot.lane.b32.xlu0 %v5784_v11, %s5570_s30 }
  0x57   : > { %887 = vrot.lane.b32.xlu1 %v5778_v10, %s5573_s22  ;;  %885 = vrot.lane.b32.xlu0 %v5773_v9, %s5573_s22 }
  0x5b   : > { %889 = vrot.lane.b32.xlu1 %v5784_v11, %s5573_s22  ;;  %883 = vrot.lane.b32.xlu0 %v5767_v8, %s5573_s22 }
  0x91   : > { %v752_v14 = vpop.permute.xlu1 %751  ;;  %v686_v15 = vpop.permute.xlu0 %685 }
  0x95   : > { %v5820_v18 = vpop.permute.xlu1 %753  ;;  %v688_v19 = vpop.permute.xlu0 %687 }
  0x96   : > { %v762_v28 = vsel %vm759_vm0, %v752_v14, %v5820_v18  ;;  %v696_v29 = vsel %vm693_vm1, %v686_v15, %v688_v19 }
  0x97   : > { %v781_v34 = vmul.f32 %v771_v25, %v762_v28  ;;  %v715_v35 = vmul.f32 %v705_v26, %v696_v29  ;;  %v775_v25 = vrot.slane %v5695_v2, %v5823_v20  ;;  %v779_v26 = vrot.slane %v5700_v3, %v5823_v20 }
  0x99   : > { %v758_v22 = vpop.permute.xlu1 %757  ;;  %v692_v23 = vpop.permute.xlu0 %691  ;;  %v933_v42 = vrot.slane %v781_v34, 4  ;;  %v921_v43 = vrot.slane %v715_v35, 4 }
  0x9a   : > { %v763_v46 = vsel %vm759_vm0, %v758_v22, %v752_v14  ;;  %v697_v47 = vsel %vm693_vm1, %v692_v23, %v686_v15  ;;  %v709_v14 = vrot.slane %v5695_v2, %v5826_v21  ;;  %v713_v15 = vrot.slane %v5700_v3, %v5826_v21 }
  0x9b   : > { %v780_v55 = vmul.f32 %v767_v40, %v763_v46  ;;  %v714_v56 = vmul.f32 %v701_v44, %v697_v47  ;;  %v676_v44 = vrot.slane %v5695_v2, %v5831_v24 }
  0x9d   : > { %v5846_v30 = vpop.permute.xlu1 %652  ;;  %v651_v32 = vpop.permute.xlu0 %650  ;;  %v932_v62 = vrot.slane %v780_v55, 4  ;;  %v920_v63 = vrot.slane %v714_v56, 4 }
  0x9e   : > { %v663_v33 = vsel %vm660_vm2, %v651_v32, %v5846_v30 }
  0x9f   : > { %v682_v37 = vmul.f32 %v672_v31, %v663_v33  ;;  %v5892_v31 = vsub.s32 5, %v5816_v16 }
  0xa1   : > { %v5856_v38 = vpop.permute.xlu1 %720  ;;  %v719_v39 = vpop.permute.xlu0 %718  ;;  %v966_v51 = vsel %vm964_vm4, %v682_v37, %v921_v43  ;;  %v5904_v37 = vsub.s32 7, %v5816_v16 }
  0xa2   : > { %v729_v41 = vsel %vm726_vm3, %v719_v39, %v5856_v38 }
  0xa3   : > { %v748_v45 = vmul.f32 %v738_v36, %v729_v41  ;;  %v870_v47 = vrot.slane %v5690_v1, %v5904_v37 }
  0xa5   : > { %v690_v48 = vpop.permute.xlu1 %689  ;;  %v657_v50 = vpop.permute.xlu0 %656  ;;  %v970_v52 = vsel %vm964_vm4, %v748_v45, %v933_v42  ;;  %v680_v45 = vrot.slane %v5700_v3, %v5831_v24 }
  0xa6   : > { %v664_v53 = vsel %vm660_vm2, %v657_v50, %v651_v32  ;;  %v4919_v54 = vpack.c.bf16 %v970_v52, %v966_v51  ;;  %v695_v28 = vsel %vm693_vm1, %v688_v19, %v690_v48  ;;  %v694_v21 = vsel %vm693_vm1, %v690_v48, %v692_v23 }
  0xa7   : > { %v681_v58 = vmul.f32 %v668_v49, %v664_v53  ;;  %v716_v36 = vmul.f32 %v709_v14, %v695_v28  ;;  %v746_v23 = vrot.slane %v5700_v3, %v5839_v27  ;;  %v5923_v48 = vsub.s32 6, %v5816_v16 }
  0xa8   : > { %4920 = vmatprep.subr.bf16.mxu0 %v4919_v54 }
  0xa9   : > { %v756_v59 = vpop.permute.xlu1 %755  ;;  %v725_v60 = vpop.permute.xlu0 %724  ;;  %v965_v33 = vsel %vm964_vm4, %v681_v58, %v920_v63  ;;  %v922_v46 = vrot.slane %v716_v36, 4 }
  0xaa   : > { %v730_v61 = vsel %vm726_vm3, %v725_v60, %v719_v39  ;;  %v760_v35 = vsel %vm759_vm0, %v756_v59, %v758_v22  ;;  %v761_v19 = vsel %vm759_vm0, %v5820_v18, %v756_v59  ;;  %v717_v39 = vmul.f32 %v713_v15, %v694_v21 }
  0xab   : > { %v747_v13 = vmul.f32 %v734_v57, %v730_v61  ;;  %v782_v40 = vmul.f32 %v775_v25, %v761_v19  ;;  %v783_v41 = vmul.f32 %v779_v26, %v760_v35  ;;  %v804_v22 = vrot.slane %v5690_v1, %v5892_v31 }
  0xac   : > { %v742_v18 = vrot.slane %v5695_v2, %v5839_v27  ;;  %v923_v49 = vrot.slane %v717_v39, 4  ;;  %v800_v21 = vrot.slane %v5685_v0, %v5892_v31  ;;  %v837_v35 = vrot.slane %v5690_v1, %v5923_v48 }
  0xad   : > { %v5889_v29 = vpop.permute.xlu1 %788  ;;  %v787_v32 = vpop.permute.xlu0 %786  ;;  %v969_v34 = vsel %vm964_vm4, %v747_v13, %v932_v62  ;;  %v934_v51 = vrot.slane %v782_v40, 4  ;;  %v935_v52 = vrot.slane %v783_v41, 4  ;;  %v866_v13 = vrot.slane %v5685_v0, %v5904_v37 }
  0xae   : > { %v4921_v20 = vpack.c.bf16 %v969_v34, %v965_v33  ;;  %v794_v27 = vsel %vm792_vm5, %v787_v32, %v5889_v29 }
  0xaf   : > { %v814_v63 = vmul.f32 %v804_v22, %v794_v27  ;;  %v808_v22 = vrot.slane %v5695_v2, %v5892_v31  ;;  %v878_v27 = vrot.slane %v5700_v3, %v5904_v37 }
  0xb0   : > { %4922 = vmatpush1.bf16.msra.mxu0 %v4921_v20 }
  0xb1   : > { %v5906_v42 = vpop.permute.xlu1 %854  ;;  %v853_v43 = vpop.permute.xlu0 %852  ;;  %v945_v20 = vrot.slane %v814_v63, 4  ;;  %v903_v63 = vrot.slane %v5710_v5, %v5831_v24 }
  0xb5   : > { %v723_v53 = vpop.permute.xlu1 %722  ;;  %v655_v54 = vpop.permute.xlu0 %654 }
  0xb6   : > { %v727_v55 = vsel %vm726_vm3, %v723_v53, %v725_v60  ;;  %v728_v56 = vsel %vm726_vm3, %v5856_v38, %v723_v53  ;;  %v661_v16 = vsel %vm660_vm2, %v655_v54, %v657_v50  ;;  %v662_v57 = vsel %vm660_vm2, %v5846_v30, %v655_v54 }
  0xb7   : > { %v749_v58 = vmul.f32 %v742_v18, %v728_v56  ;;  %v750_v59 = vmul.f32 %v746_v23, %v727_v55  ;;  %v683_v61 = vmul.f32 %v676_v44, %v662_v57  ;;  %v684_v62 = vmul.f32 %v680_v45, %v661_v16 }
  0xb8   : > { %v860_v60 = vsel %vm858_vm6, %v853_v43, %v5906_v42  ;;  %v874_v45 = vrot.slane %v5695_v2, %v5904_v37  ;;  %v845_v37 = vrot.slane %v5700_v3, %v5923_v48 }
  0xb9   : > { %v851_v38 = vpop.permute.xlu1 %850  ;;  %v785_v14 = vpop.permute.xlu0 %784  ;;  %v968_v50 = vsel %vm964_vm4, %v684_v62, %v923_v49  ;;  %v972_v15 = vsel %vm964_vm4, %v750_v59, %v935_v52  ;;  %v967_v30 = vsel %vm964_vm4, %v683_v61, %v922_v46  ;;  %v971_v25 = vsel %vm964_vm4, %v749_v58, %v934_v51 }
  0xba   : > { %v861_v26 = vsel %vm858_vm6, %v851_v38, %v853_v43  ;;  %v4927_v28 = vpack.c.bf16 %v972_v15, %v968_v50  ;;  %v4929_v33 = vpack.c.bf16 %v971_v25, %v967_v30  ;;  %v880_v34 = vmul.f32 %v870_v47, %v860_v60 }
  0xbb   : > { %v795_v19 = vsel %vm792_vm5, %v785_v14, %v787_v32  ;;  %v879_v36 = vmul.f32 %v866_v13, %v861_v26  ;;  %v833_v43 = vrot.slane %v5685_v0, %v5923_v48  ;;  %v812_v32 = vrot.slane %v5700_v3, %v5892_v31 }
  0xbc   : > { %4928 = vmatprep.subr.bf16.mxu1 %v4927_v28  ;;  %v957_v18 = vrot.slane %v880_v34, 4  ;;  %v813_v23 = vmul.f32 %v800_v21, %v795_v19  ;;  %v974_v51 = vsel %vm964_vm4, %v5773_v9, %v945_v20  ;;  %v841_v58 = vrot.slane %v5695_v2, %v5923_v48 }
  0xbd   : > { %v822_v39 = vpop.permute.xlu1 %821  ;;  %4930 = vmatpush1.bf16.msra.mxu1 %v4929_v33  ;;  %v820_v40 = vpop.permute.xlu0 %819  ;;  %v956_v46 = vrot.slane %v879_v36, 4  ;;  %v911_v20 = vrot.slane %v5721_v7, %v5831_v24 }
  0xbe   : > { %v827_v41 = vsel %vm825_vm7, %v820_v40, %v822_v39  ;;  %v944_v56 = vrot.slane %v813_v23, 4 }
  0xbf   : > { %v847_v44 = vmul.f32 %v837_v35, %v827_v41 }
  0xc0   : > { %v973_v25 = vsel %vm964_vm4, %v5767_v8, %v944_v56 }
  0xc1   : > { %v818_v47 = vpop.permute.xlu1 %817  ;;  %v791_v49 = vpop.permute.xlu0 %790  ;;  %v978_v52 = vsel %vm964_vm4, %v847_v44, %v957_v18  ;;  %v907_v18 = vrot.slane %v5716_v6, %v5831_v24 }
  0xc2   : > { %v828_v53 = vsel %vm825_vm7, %v818_v47, %v820_v40  ;;  %v793_v31 = vsel %vm792_vm5, %v5889_v29, %v791_v49  ;;  %v796_v54 = vsel %vm792_vm5, %v791_v49, %v785_v14  ;;  %v4923_v55 = vpack.c.bf16 %v978_v52, %v974_v51  ;;  %v634_v49 = vld [vmem:[%s8559_s4 + $0x10] sm:$0xff]  ;;  %v635_v51 = vld [vmem:[%s8559_s4 + $0x18] sm:$0xff] }
  0xc3   : > { %v846_v16 = vmul.f32 %v833_v43, %v828_v53  ;;  %v815_v57 = vmul.f32 %v808_v22, %v793_v31  ;;  %v816_v9 = vmul.f32 %v812_v32, %v796_v54 }
  0xc4   : > { %4924 = vmatprep.subr.bf16.mxu0 %v4923_v55 }
  0xc5   : > { %v947_v59 = vrot.slane %v816_v9, 4  ;;  %v824_v61 = vpop.permute.xlu1 %823  ;;  %v857_v62 = vpop.permute.xlu0 %856  ;;  %v977_v29 = vsel %vm964_vm4, %v846_v16, %v956_v46  ;;  %v946_v50 = vrot.slane %v815_v57, 4 }
  0xc6   : > { %v826_v60 = vsel %vm825_vm7, %v822_v39, %v824_v61  ;;  %v829_v13 = vsel %vm825_vm7, %v824_v61, %v818_v47  ;;  %v859_v48 = vsel %vm858_vm6, %v5906_v42, %v857_v62  ;;  %v862_v14 = vsel %vm858_vm6, %v857_v62, %v851_v38 }
  0xc7   : > { %v881_v15 = vmul.f32 %v874_v45, %v859_v48  ;;  %v882_v30 = vmul.f32 %v878_v27, %v862_v14  ;;  %v4925_v26 = vpack.c.bf16 %v977_v29, %v973_v25  ;;  %v848_v28 = vmul.f32 %v841_v58, %v826_v60 }
  0xc8   : > { %v849_v33 = vmul.f32 %v845_v37, %v829_v13  ;;  %v899_v38 = vrot.slane %v5705_v4, %v5831_v24  ;;  %v976_v8 = vsel %vm964_vm4, %v5784_v11, %v947_v59  ;;  %v975_v40 = vsel %vm964_vm4, %v5778_v10, %v946_v50  ;;  %v632_v24 = vld [vmem:[%s8559_s4] sm:$0xff] }
  0xc9   : > { %v958_v34 = vrot.slane %v881_v15, 4  ;;  %v959_v21 = vrot.slane %v882_v30, 4  ;;  %v888_v35 = vpop.permute.xlu1 %887  ;;  %v886_v19 = vpop.permute.xlu0 %885  ;;  %4926 = vmatpush1.bf16.msra.mxu0 %v4925_v26 }
  0xca   : > { %v893_v42 = vsel %vm891_vm8, %v886_v19, %v888_v35 }
  0xcb   : > { %v913_v36 = vmul.f32 %v903_v63, %v893_v42  ;;  %v980_v39 = vsel %vm964_vm4, %v849_v33, %v959_v21  ;;  %v979_v41 = vsel %vm964_vm4, %v848_v28, %v958_v34 }
  0xcc   : > { %v4931_v43 = vpack.c.bf16 %v980_v39, %v976_v8  ;;  %v4933_v22 = vpack.c.bf16 %v979_v41, %v975_v40 }
  0xcd   : > { %v890_v23 = vpop.permute.xlu1 %889  ;;  %4747 = vmatprep.subr.msk.mxu0 %vm964_vm4, %v913_v36  ;;  %v884_v44 = vpop.permute.xlu0 %883 }
  0xce   : > { %v892_v11 = vsel %vm891_vm8, %v888_v35, %v890_v23  ;;  %v894_v32 = vsel %vm891_vm8, %v884_v44, %v886_v19  ;;  %v895_v10 = vsel %vm891_vm8, %v890_v23, %v884_v44  ;;  %4932 = vmatprep.subr.bf16.mxu1 %v4931_v43 }
  0xcf   : > { %v912_v45 = vmul.f32 %v899_v38, %v894_v32  ;;  %v915_v46 = vmul.f32 %v911_v20, %v895_v10  ;;  %4934 = vmatpush1.bf16.msra.mxu1 %v4933_v22  ;;  %v914_v47 = vmul.f32 %v907_v18, %v892_v11 }
  0xd1   : > { %4748 = vmatpush1.msk.msra.mxu0 %vm964_vm4, %v912_v45  ;;  %4753 = vmatprep.subr.msk.mxu1 %vm964_vm4, %v915_v46 }
  0xd2   : > { %4749 = vmatmul.mubr.msk.f32.vlgmr.msra.gmra.mrb[0].mxu0 %vm981_vm9, %v632_v24 }
  0xd3   : > { %4754 = vmatpush1.msk.msra.mxu1 %vm964_vm4, %v914_v47  ;;  %1076 = vmatprep.mubr.f32.mxu0 %v5572_v12 }
  0xd4   : > { %4755 = vmatmul.mubr.msk.f32.vlgmr.msra.gmra.mrb[0].mxu1 %vm981_vm9, %v632_v24 }
  0xd5   : > { %1165 = vmatprep.mubr.f32.mxu1 %v5572_v12 }
  0xd6   : > { %4750 = vmatmul.mubr.msk.f32.gmra.mrb[2].mxu0 %vm981_vm9, %v633_v17 }
  0xd7   : > { %1082 = vmatprep.mubr.f32.mxu0 %v5572_v12 }
  0xd8   : > { %4756 = vmatmul.mubr.msk.f32.gmra.mrb[2].mxu1 %vm981_vm9, %v633_v17 }
  0xd9   : > { %1171 = vmatprep.mubr.f32.mxu1 %v5572_v12 }
  0xda   : > { %4751 = vmatmul.mubr.msk.f32.gmra.mrb[4].mxu0 %vm981_vm9, %v634_v49 }
  0xdb   : > { %1088 = vmatprep.mubr.f32.mxu0 %v5572_v12 }
  0xdc   : > { %4757 = vmatmul.mubr.msk.f32.gmra.mrb[4].mxu1 %vm981_vm9, %v634_v49 }
  0xdd   : > { %1177 = vmatprep.mubr.f32.mxu1 %v5572_v12 }
  0xde   : > { %4752 = vmatmul.mubr.msk.f32.gmra.mrb[6].mxu0 %vm981_vm9, %v635_v51 }
  0xe0   : > { %4758 = vmatmul.mubr.msk.f32.gmra.mrb[6].mxu1 %vm981_vm9, %v635_v51 }
 0x1a5   : > { %v1072_v52 = vpop.f32.mrb[0].mxu0 }
 0x1a6   : > { %v1074_v27 = vpop.f32.mrb[1].mxu0 }
 0x1a7   : > { %v1184_v53 = vadd.f32 %v1074_v27, %v1072_v52  ;;  %v1161_v31 = vpop.f32.mrb[0].mxu1 }
 0x1a8   : > { %v1163_v54 = vpop.f32.mrb[1].mxu1 }
 0x1a9   : > { %v1185_v55 = vadd.f32 %v1184_v53, %v1161_v31  ;;  %v1078_v56 = vpop.f32.mrb[2].mxu0 }
 0x1aa   : > { %v1080_v16 = vpop.f32.mrb[3].mxu0 }
 0x1ab   : > { %v1189_v57 = vadd.f32 %v1080_v16, %v1078_v56  ;;  %v1167_v9 = vpop.f32.mrb[2].mxu1  ;;  %v1186_v58 = vadd.f32 %v1185_v55, %v1163_v54 }
 0x1ac   : > { %v1169_v37 = vpop.f32.mrb[3].mxu1 }
 0x1ad   : > { %v1190_v59 = vadd.f32 %v1189_v57, %v1167_v9  ;;  %1187 = vadd.xlane.f32.xlu0 %v1186_v58  ;;  %v1084_v61 = vpop.f32.mrb[4].mxu0 }
 0x1ae   : > { %v1086_v12 = vpop.f32.mrb[5].mxu0 }
 0x1af   : > { %v1194_v62 = vadd.f32 %v1086_v12, %v1084_v61  ;;  %v1173_v29 = vpop.f32.mrb[4].mxu1  ;;  %v1191_v63 = vadd.f32 %v1190_v59, %v1169_v37 }
 0x1b0   : > { %v1175_v60 = vpop.f32.mrb[5].mxu1 }
 0x1b1   : > { %v1195_v13 = vadd.f32 %v1194_v62, %v1173_v29  ;;  %1192 = vadd.xlane.f32.xlu1 %v1191_v63  ;;  %v1090_v48 = vpop.f32.mrb[6].mxu0 }
 0x1b2   : > { %v1092_v14 = vpop.f32.mrb[7].mxu0 }
 0x1b3   : > { %v1199_v50 = vadd.f32 %v1092_v14, %v1090_v48  ;;  %v1179_v15 = vpop.f32.mrb[6].mxu1  ;;  %v1196_v30 = vadd.f32 %v1195_v13, %v1175_v60 }
 0x1b4   : > { %v1181_v25 = vpop.f32.mrb[7].mxu1 }
 0x1b5   : > { %v1200_v26 = vadd.f32 %v1199_v50, %v1179_v15  ;;  %1197 = vadd.xlane.f32.xlu0 %v1196_v30  ;;  %v5574_v30 = vmov 0  }
 0x1b6   : > { %5366 = vset.pattern.permute.xlu1 %v5574_v30  ;;  %5367 = vset.pattern.permute.xlu0 %v5574_v30 }
 0x1b7   : > { %v1201_v28 = vadd.f32 %v1200_v26, %v1181_v25 }
 0x1b9   : > { %1202 = vadd.xlane.f32.xlu0 %v1201_v28 }
 0x23a   : > { %v1188_v33 = vpop.xlane.xlu0 %1187 }
 0x23b   : > { %v1204_v34 = vmul.f32 0.001953125, %v1188_v33 }
 0x23d   : > { %v6047_v21 = vsub.f32 %v1072_v52, %v1204_v34  ;;  %v6049_v35 = vsub.f32 %v1074_v27, %v1204_v34  ;;  %v6051_v19 = vsub.f32 %v1161_v31, %v1204_v34  ;;  %v6053_v38 = vsub.f32 %v1163_v54, %v1204_v34 }
 0x23e   : > { %v1193_v42 = vpop.xlane.xlu1 %1192 }
 0x23f   : > { %v1205_v20 = vmul.f32 0.001953125, %v1193_v42  ;;  %v1224_v8 = vmul.f32 %v6047_v21, %v6047_v21  ;;  %v1225_v36 = vmul.f32 %v6049_v35, %v6049_v35  ;;  %v1226_v39 = vmul.f32 %v6051_v19, %v6051_v19 }
 0x240   : > { %v1227_v23 = vmul.f32 %v6053_v38, %v6053_v38 }
 0x241   : > { %v6061_v40 = vsub.f32 %v1078_v56, %v1205_v20  ;;  %v6063_v41 = vsub.f32 %v1080_v16, %v1205_v20  ;;  %v1240_v43 = vadd.f32 %v1225_v36, %v1224_v8  ;;  %v6065_v22 = vsub.f32 %v1167_v9, %v1205_v20 }
 0x242   : > { %v1198_v18 = vpop.xlane.xlu0 %1197  ;;  %v6069_v44 = vsub.f32 %v1169_v37, %v1205_v20 }
 0x243   : > { %v1206_v11 = vmul.f32 0.001953125, %v1198_v18  ;;  %v1241_v32 = vadd.f32 %v1240_v43, %v1226_v39  ;;  %v1228_v10 = vmul.f32 %v6061_v40, %v6061_v40  ;;  %v1229_v45 = vmul.f32 %v6063_v41, %v6063_v41  ;;  %v636_v39 = vld [vmem:[%s8560_s5] sm:$0xff] }
 0x244   : > { %v1230_v46 = vmul.f32 %v6065_v22, %v6065_v22  ;;  %v1231_v52 = vmul.f32 %v6069_v44, %v6069_v44 }
 0x245   : > { %v6077_v24 = vsub.f32 %v1084_v61, %v1206_v11  ;;  %v6079_v47 = vsub.f32 %v1086_v12, %v1206_v11  ;;  %v1242_v17 = vadd.f32 %v1241_v32, %v1227_v23  ;;  %v1245_v49 = vadd.f32 %v1229_v45, %v1228_v10  ;;  %v637_v32 = vld [vmem:[%s8560_s5 + $0x8] sm:$0xff] }
 0x246   : > { %v1203_v51 = vpop.xlane.xlu0 %1202  ;;  %v6083_v27 = vsub.f32 %v1173_v29, %v1206_v11  ;;  %v6085_v53 = vsub.f32 %v1175_v60, %v1206_v11 }
 0x247   : > { %v1207_v31 = vmul.f32 0.001953125, %v1203_v51  ;;  %1243 = vadd.xlane.f32.xlu1 %v1242_v17  ;;  %v1246_v54 = vadd.f32 %v1245_v49, %v1230_v46  ;;  %v1232_v55 = vmul.f32 %v6077_v24, %v6077_v24  ;;  %v1233_v56 = vmul.f32 %v6079_v47, %v6079_v47  ;;  %v640_v46 = vld [vmem:[%s8561_s6] sm:$0xff]  ;;  %v641_v49 = vld [vmem:[%s8561_s6 + $0x8] sm:$0xff]  ;;  %v642_v51 = vld [vmem:[%s8561_s6 + $0x10] sm:$0xff] }
 0x248   : > { %v1234_v16 = vmul.f32 %v6083_v27, %v6083_v27  ;;  %v1235_v59 = vmul.f32 %v6085_v53, %v6085_v53 }
 0x249   : > { %v6093_v57 = vsub.f32 %v1090_v48, %v1207_v31  ;;  %v6095_v9 = vsub.f32 %v1092_v14, %v1207_v31  ;;  %v1247_v58 = vadd.f32 %v1246_v54, %v1231_v52  ;;  %v1250_v37 = vadd.f32 %v1233_v56, %v1232_v55  ;;  %v639_v56 = vld [vmem:[%s8560_s5 + $0x18] sm:$0xff] }
 0x24a   : > { %v6099_v61 = vsub.f32 %v1179_v15, %v1207_v31  ;;  %v6101_v62 = vsub.f32 %v1181_v25, %v1207_v31  ;;  %v638_v31 = vld [vmem:[%s8560_s5 + $0x10] sm:$0xff] }
 0x24b   : > { %1248 = vadd.xlane.f32.xlu0 %v1247_v58  ;;  %v1251_v12 = vadd.f32 %v1250_v37, %v1234_v16  ;;  %v1236_v29 = vmul.f32 %v6093_v57, %v6093_v57  ;;  %v1237_v63 = vmul.f32 %v6095_v9, %v6095_v9  ;;  %v643_v58 = vld [vmem:[%s8561_s6 + $0x18] sm:$0xff] }
 0x24c   : > { %v1238_v13 = vmul.f32 %v6099_v61, %v6099_v61  ;;  %v1239_v14 = vmul.f32 %v6101_v62, %v6101_v62 }
 0x24d   : > { %v1252_v60 = vadd.f32 %v1251_v12, %v1235_v59  ;;  %v1255_v48 = vadd.f32 %v1237_v63, %v1236_v29 }
 0x24f   : > { %1253 = vadd.xlane.f32.xlu1 %v1252_v60  ;;  %v1256_v50 = vadd.f32 %v1255_v48, %v1238_v13 }
 0x251   : > { %v1257_v15 = vadd.f32 %v1256_v50, %v1239_v14 }
 0x253   : > { %1258 = vadd.xlane.f32.xlu0 %v1257_v15 }
 0x2d4   : > { %v1244_v25 = vpop.xlane.xlu1 %1243 }
 0x2d5   : > { %v1260_v26 = vmul.f32 0.001953125, %v1244_v25 }
 0x2d7   : > { %v1264_v28 = vadd.f32 1e-05, %v1260_v26 }
 0x2d8   : > { %v1249_v33 = vpop.xlane.xlu0 %1248 }
 0x2d9   : > { %5370 = vrsqrt.f32 %v1264_v28  ;;  %v1261_v34 = vmul.f32 0.001953125, %v1249_v33 }
 0x2db   : > { %v1265_v42 = vadd.f32 1e-05, %v1261_v34 }
 0x2dc   : > { %v1254_v20 = vpop.xlane.xlu1 %1253 }
 0x2dd   : > { %5372 = vrsqrt.f32 %v1265_v42  ;;  %v1262_v8 = vmul.f32 0.001953125, %v1254_v20 }
 0x2df   : > { %v1266_v18 = vadd.f32 1e-05, %v1262_v8 }
 0x2e0   : > { %v1259_v36 = vpop.xlane.xlu0 %1258 }
 0x2e1   : > { %v1263_v23 = vmul.f32 0.001953125, %v1259_v36  ;;  %5374 = vrsqrt.f32 %v1266_v18 }
 0x2e3   : > { %v5371_v43 = vpop.eup %5370  ;;  %v1267_v45 = vadd.f32 1e-05, %v1263_v23 }
 0x2e4   : > { %v1272_v11 = vmul.f32 %v5371_v43, %v636_v39 }
 0x2e5   : > { %5376 = vrsqrt.f32 %v1267_v45 }
 0x2e6   : > { %1278 = vperm.xlu1 %5366, %v1272_v11  }
 0x2e7   : > { %v5373_v10 = vpop.eup %5372 }
 0x2e8   : > { %v1273_v17 = vmul.f32 %v5373_v10, %v637_v32 }
 0x2ea   : > { %1314 = vperm.xlu1 %5366, %v640_v46   ;;  %1283 = vperm.xlu0 %5367, %v1273_v17  }
 0x2eb   : > { %v5375_v52 = vpop.eup %5374 }
 0x2ec   : > { %v1274_v54 = vmul.f32 %v5375_v52, %v638_v31 }
 0x2ee   : > { %1319 = vperm.xlu1 %5366, %v641_v49  }
 0x2ef   : > { %v5377_v55 = vpop.eup %5376 }
 0x2f0   : > { %v1275_v16 = vmul.f32 %v5377_v55, %v639_v56 }
 0x2f2   : > { %1324 = vperm.xlu1 %5366, %v642_v51  }
 0x2f6   : > { %1288 = vperm.xlu1 %5366, %v1274_v54  }
 0x2fa   : > { %1293 = vperm.xlu1 %5366, %v1275_v16  }
 0x2fe   : > { %1329 = vperm.xlu1 %5366, %v643_v58  }
 0x365   : > { %v1279_v37 = vpop.permute.xlu1 %1278 }
 0x366   : > { %v1296_v59 = vmul.f32 %v1279_v37, %v6047_v21  ;;  %v1297_v12 = vmul.f32 %v1279_v37, %v6049_v35  ;;  %v1298_v29 = vmul.f32 %v1279_v37, %v6051_v19  ;;  %v1299_v63 = vmul.f32 %v1279_v37, %v6053_v38 }
 0x369   : > { %v1315_v60 = vpop.permute.xlu1 %1314  ;;  %v1284_v13 = vpop.permute.xlu0 %1283 }
 0x36a   : > { %v1332_v48 = vadd.f32 %v1315_v60, %v1296_v59  ;;  %v1333_v14 = vadd.f32 %v1315_v60, %v1297_v12  ;;  %v1334_v50 = vadd.f32 %v1315_v60, %v1298_v29  ;;  %v1335_v15 = vadd.f32 %v1315_v60, %v1299_v63 }
 0x36b   : > { %v1300_v30 = vmul.f32 %v1284_v13, %v6061_v40  ;;  %v1301_v25 = vmul.f32 %v1284_v13, %v6063_v41  ;;  %v1302_v26 = vmul.f32 %v1284_v13, %v6065_v22  ;;  %v1303_v35 = vmul.f32 %v1284_v13, %v6069_v44 }
 0x36c   : > { %v1364_v28 = vmul.f32 0.70710677, %v1332_v48  ;;  %v1365_v21 = vmul.f32 0.70710677, %v1333_v14  ;;  %v1366_v33 = vmul.f32 0.70710677, %v1334_v50 }
 0x36d   : > { %v1320_v19 = vpop.permute.xlu1 %1319  ;;  %v1367_v34 = vmul.f32 0.70710677, %v1335_v15  ;;  %v1348_v32 = vmul.f32 0.5, %v1332_v48  ;;  %v1349_v49 = vmul.f32 0.5, %v1333_v14  ;;  %v1350_v51 = vmul.f32 0.5, %v1334_v50 }
 0x36e   : > { %v1336_v38 = vadd.f32 %v1320_v19, %v1300_v30  ;;  %v1337_v42 = vadd.f32 %v1320_v19, %v1301_v25  ;;  %v1338_v20 = vadd.f32 %v1320_v19, %v1302_v26  ;;  %5378 = verf.f32 %v1364_v28 }
 0x36f   : > { %v1339_v8 = vadd.f32 %v1320_v19, %v1303_v35  ;;  %5380 = verf.f32 %v1365_v21  ;;  %v1351_v52 = vmul.f32 0.5, %v1335_v15 }
 0x370   : > { %5382 = verf.f32 %v1366_v33  ;;  %v1368_v36 = vmul.f32 0.70710677, %v1336_v38  ;;  %v1369_v40 = vmul.f32 0.70710677, %v1337_v42  ;;  %v1370_v41 = vmul.f32 0.70710677, %v1338_v20 }
 0x371   : > { %v1325_v39 = vpop.permute.xlu1 %1324  ;;  %5384 = verf.f32 %v1367_v34  ;;  %v1371_v22 = vmul.f32 0.70710677, %v1339_v8  ;;  %v1352_v55 = vmul.f32 0.5, %v1336_v38  ;;  %v1354_v56 = vmul.f32 0.5, %v1338_v20 }
 0x372   : > { %5386 = verf.f32 %v1368_v36  ;;  %v1355_v58 = vmul.f32 0.5, %v1339_v8 }
 0x373   : > { %5388 = verf.f32 %v1369_v40 }
 0x374   : > { %5390 = verf.f32 %v1370_v41 }
 0x375   : > { %v1289_v43 = vpop.permute.xlu1 %1288  ;;  %5392 = verf.f32 %v1371_v22 }
 0x376   : > { %v1304_v44 = vmul.f32 %v1289_v43, %v6077_v24  ;;  %v1305_v18 = vmul.f32 %v1289_v43, %v6079_v47  ;;  %v1306_v23 = vmul.f32 %v1289_v43, %v6083_v27  ;;  %v1307_v11 = vmul.f32 %v1289_v43, %v6085_v53 }
 0x377   : > { %v1353_v27 = vmul.f32 0.5, %v1337_v42 }
 0x378   : > { %v6147_v10 = vadd.f32 %v1325_v39, %v1304_v44  ;;  %v6149_v45 = vadd.f32 %v1325_v39, %v1305_v18  ;;  %v6151_v46 = vadd.f32 %v1325_v39, %v1306_v23  ;;  %v5379_v17 = vpop.eup %5378  ;;  %v6153_v31 = vadd.f32 %v1325_v39, %v1307_v11 }
 0x379   : > { %v1294_v24 = vpop.permute.xlu1 %1293  ;;  %v5381_v54 = vpop.eup %5380  ;;  %v1396_v47 = vadd.f32 1.0, %v5379_v17 }
 0x37a   : > { %v5383_v53 = vpop.eup %5382  ;;  %v1397_v16 = vadd.f32 1.0, %v5381_v54  ;;  %v1372_v37 = vmul.f32 0.70710677, %v6147_v10  ;;  %v1373_v59 = vmul.f32 0.70710677, %v6149_v45  ;;  %v1308_v15 = vmul.f32 %v1294_v24, %v6093_v57 }
 0x37b   : > { %v5385_v12 = vpop.eup %5384  ;;  %v1398_v29 = vadd.f32 1.0, %v5383_v53  ;;  %v1412_v63 = vmul.f32 %v1396_v47, %v1348_v32  ;;  %v1374_v60 = vmul.f32 0.70710677, %v6151_v46  ;;  %v1375_v13 = vmul.f32 0.70710677, %v6153_v31 }
 0x37c   : > { %v5387_v48 = vpop.eup %5386  ;;  %v1399_v14 = vadd.f32 1.0, %v5385_v12  ;;  %v1413_v50 = vmul.f32 %v1397_v16, %v1349_v49  ;;  %5394 = verf.f32 %v1372_v37  ;;  %v1309_v28 = vmul.f32 %v1294_v24, %v6095_v9 }
 0x37d   : > { %v5389_v30 = vpop.eup %5388  ;;  %v1414_v25 = vmul.f32 %v1398_v29, %v1350_v51  ;;  %1428 = vst [vmem:[#allocation2] sm:$0xff] %v1412_v63  ;;  %v1400_v26 = vadd.f32 1.0, %v5387_v48  ;;  %5396 = verf.f32 %v1373_v59  ;;  %v1330_v21 = vpop.permute.xlu1 %1329  ;;  %v1310_v34 = vmul.f32 %v1294_v24, %v6099_v61 }
 0x37e   : > { %v5391_v33 = vpop.eup %5390  ;;  %v1415_v35 = vmul.f32 %v1399_v14, %v1351_v52  ;;  %1429 = vst [vmem:[#allocation2 + $0x8] sm:$0xff] %v1413_v50  ;;  %v1401_v19 = vadd.f32 1.0, %v5389_v30  ;;  %5398 = verf.f32 %v1374_v60  ;;  %v1311_v57 = vmul.f32 %v1294_v24, %v6101_v62 }
 0x37f   : > { %v5393_v38 = vpop.eup %5392  ;;  %1430 = vst [vmem:[#allocation2 + $0x10] sm:$0xff] %v1414_v25  ;;  %v1402_v42 = vadd.f32 1.0, %v5391_v33  ;;  %v1416_v20 = vmul.f32 %v1400_v26, %v1352_v55  ;;  %5400 = verf.f32 %v1375_v13  ;;  %v1344_v40 = vadd.f32 %v1330_v21, %v1308_v15 }
 0x380   : > { %1431 = vst [vmem:[#allocation2 + $0x18] sm:$0xff] %v1415_v35  ;;  %v1403_v8 = vadd.f32 1.0, %v5393_v38  ;;  %v1417_v36 = vmul.f32 %v1401_v19, %v1353_v27  ;;  %v1345_v9 = vadd.f32 %v1330_v21, %v1309_v28  ;;  %v1346_v41 = vadd.f32 %v1330_v21, %v1310_v34 }
 0x381   : > { %v1418_v39 = vmul.f32 %v1402_v42, %v1354_v56  ;;  %1432 = vst [vmem:[#allocation2 + $0x20] sm:$0xff] %v1416_v20  ;;  %v1347_v22 = vadd.f32 %v1330_v21, %v1311_v57  ;;  %v1376_v44 = vmul.f32 0.70710677, %v1344_v40  ;;  %v1356_v32 = vmul.f32 0.5, %v6147_v10 }
 0x382   : > { %v1419_v43 = vmul.f32 %v1403_v8, %v1355_v58  ;;  %1433 = vst [vmem:[#allocation2 + $0x28] sm:$0xff] %v1417_v36  ;;  %v1377_v61 = vmul.f32 0.70710677, %v1345_v9  ;;  %v1378_v18 = vmul.f32 0.70710677, %v1346_v41  ;;  %v1357_v51 = vmul.f32 0.5, %v6149_v45 }
 0x383   : > { %1434 = vst [vmem:[#allocation2 + $0x30] sm:$0xff] %v1418_v39  ;;  %v1379_v23 = vmul.f32 0.70710677, %v1347_v22  ;;  %5402 = verf.f32 %v1376_v44  ;;  %v1358_v54 = vmul.f32 0.5, %v6151_v46  ;;  %v1359_v27 = vmul.f32 0.5, %v6153_v31 }
 0x384   : > { %1435 = vst [vmem:[#allocation2 + $0x38] sm:$0xff] %v1419_v43  ;;  %5404 = verf.f32 %v1377_v61  ;;  %v1360_v59 = vmul.f32 0.5, %v1344_v40  ;;  %v1361_v29 = vmul.f32 0.5, %v1345_v9  ;;  %v1362_v60 = vmul.f32 0.5, %v1346_v41 }
 0x385   : > { %5406 = verf.f32 %v1378_v18  ;;  %v1363_v31 = vmul.f32 0.5, %v1347_v22 }
 0x386   : > { %v5395_v62 = vpop.eup %5394  ;;  %5408 = verf.f32 %v1379_v23 }
 0x387   : > { %v5397_v11 = vpop.eup %5396  ;;  %v1404_v17 = vadd.f32 1.0, %v5395_v62 }
 0x388   : > { %v5399_v49 = vpop.eup %5398  ;;  %v1405_v52 = vadd.f32 1.0, %v5397_v11 }
 0x389   : > { %v5401_v24 = vpop.eup %5400  ;;  %v1406_v47 = vadd.f32 1.0, %v5399_v49  ;;  %v1420_v55 = vmul.f32 %v1404_v17, %v1356_v32 }
 0x38a   : > { %v1407_v56 = vadd.f32 1.0, %v5401_v24  ;;  %v1421_v53 = vmul.f32 %v1405_v52, %v1357_v51 }
 0x38b   : > { %v1422_v16 = vmul.f32 %v1406_v47, %v1358_v54  ;;  %1436 = vst [vmem:[#allocation2 + $0x40] sm:$0xff] %v1420_v55 }
 0x38c   : > { %v1423_v58 = vmul.f32 %v1407_v56, %v1359_v27  ;;  %1437 = vst [vmem:[#allocation2 + $0x48] sm:$0xff] %v1421_v53 }
 0x38d   : > { %1438 = vst [vmem:[#allocation2 + $0x50] sm:$0xff] %v1422_v16  ;;  %v5403_v10 = vpop.eup %5402 }
 0x38e   : > { %1439 = vst [vmem:[#allocation2 + $0x58] sm:$0xff] %v1423_v58  ;;  %v5405_v37 = vpop.eup %5404  ;;  %v1408_v45 = vadd.f32 1.0, %v5403_v10 }
 0x38f   : > { %v5407_v12 = vpop.eup %5406  ;;  %v1409_v63 = vadd.f32 1.0, %v5405_v37 }
 0x390   : > { %v5409_v46 = vpop.eup %5408  ;;  %v1410_v13 = vadd.f32 1.0, %v5407_v12  ;;  %v1424_v48 = vmul.f32 %v1408_v45, %v1360_v59 }
 0x391   : > { %v1411_v14 = vadd.f32 1.0, %v5409_v46  ;;  %v1425_v50 = vmul.f32 %v1409_v63, %v1361_v29 }
 0x392   : > { %v1426_v15 = vmul.f32 %v1410_v13, %v1362_v60  ;;  %1440 = vst [vmem:[#allocation2 + $0x60] sm:$0xff] %v1424_v48 }
 0x393   : > { %v1427_v30 = vmul.f32 %v1411_v14, %v1363_v31  ;;  %1441 = vst [vmem:[#allocation2 + $0x68] sm:$0xff] %v1425_v50 }
 0x394   : > { %1442 = vst [vmem:[#allocation2 + $0x70] sm:$0xff] %v1426_v15 }
 0x395   : > { %1443 = vst [vmem:[#allocation2 + $0x78] sm:$0xff] %v1427_v30 }
 0x396 PF: > { %v6167_v25 = vld [vmem:[#allocation2 + $0x8] sm:$0xff]  ;;  %v6169_v26 = vld [vmem:[#allocation2] sm:$0xff]  ;;  %s5575_s2 = smov 17   ;;  %v6183_v33 = vld [vmem:[#allocation2 + $0x38] sm:$0xff]  ;;  %s5576_s15 = smov 16   ;;  %v1512_v39 = vlaneseq  ;;  %vm2130_vm2 = vcmask 261120  }
 0x397   : > { %1488 = vrot.lane.b32.xlu1 %v6167_v25, %s5575_s2  ;;  %1480 = vrot.lane.b32.xlu0 %v6169_v26, %s5575_s2  ;;  %v6175_v28 = vld [vmem:[#allocation2 + $0x28] sm:$0xff]  ;;  %v6177_v21 = vld [vmem:[#allocation2 + $0x20] sm:$0xff]  ;;  %v6185_v35 = vld [vmem:[#allocation2 + $0x18] sm:$0xff]  ;;  %s5577_s8 = smov 15   ;;  %s5578_s17 = smov 1   ;;  %vm5586_vm3 = vmmov 0  }
 0x398   : > { %v6191_v19 = vld [vmem:[#allocation2 + $0x30] sm:$0xff]  ;;  %v6201_v42 = vld [vmem:[#allocation2 + $0x40] sm:$0xff]  ;;  %v6209_v57 = vld [vmem:[#allocation2 + $0x48] sm:$0xff]  ;;  %v6311_v41 = vshrl.u32 %v1512_v39, 7  ;;  %v6313_v22 = vand.u32 127, %v1512_v39  ;;  %s5579_s7 = smov 127  }
 0x399   : > { %v6193_v34 = vld [vmem:[#allocation2 + $0x10] sm:$0xff]  ;;  %v6199_v38 = vld [vmem:[#allocation2 + $0x60] sm:$0xff]  ;;  %v6217_v36 = vld [vmem:[#allocation2 + $0x58] sm:$0xff]  ;;  %s5580_s9 = smov 113   ;;  %s5581_s25 = smov 112   ;;  %vm4124_vm4 = vcmask 31744  }
 0x39a   : > { %v6207_v20 = vld [vmem:[#allocation2 + $0x68] sm:$0xff]  ;;  %v6225_v9 = vld [vmem:[#allocation2 + $0x50] sm:$0xff]  ;;  %8668 = vst [vmem:[#allocation6_spill] sm:$0xff] %v6311_v41  ;;  %v6320_v43 = vsub.s32 0, %v6311_v41  ;;  %vm1514_vm10 = vcmp.lt.s32.totalorder %v6313_v22, 17  ;;  %vm1595_vm11 = vcmp.lt.s32.totalorder %v6313_v22, 16 }
 0x39b   : > { %1490 = vrot.lane.b32.xlu1 %v6175_v28, %s5575_s2  ;;  %1482 = vrot.lane.b32.xlu0 %v6177_v21, %s5575_s2  ;;  %v6223_v40 = vld [vmem:[#allocation2 + $0x70] sm:$0xff]  ;;  %vm1676_vm12 = vcmp.lt.s32.totalorder %v6313_v22, 15  ;;  %vm1757_vm13 = vcmp.lt.s32.totalorder %v6313_v22, 1  ;;  %s5582_s23 = smov 111   ;;  %vm1838_vm14 = vcmp.lt.s32.totalorder %v6313_v22, 127  ;;  %vm1919_vm15 = vcmp.lt.s32.totalorder %v6313_v22, 113 }
 0x39c   : > { %v6215_v8 = vld [vmem:[#allocation2 + $0x78] sm:$0xff]  ;;  %v6329_v18 = vrot.slane %v5690_v1, %v6320_v43  ;;  %v6343_v51 = vrot.slane %v5685_v0, %v6320_v43  ;;  %v6351_v27 = vrot.slane %v5700_v3, %v6320_v43  ;;  %v6361_v16 = vrot.slane %v5695_v2, %v6320_v43  ;;  %p5330_p5 = scmp.eq.s32.totalorder %s5677_s19, 1 }
 0x39d   : > { %vm2000_vm0 = vcmp.lt.s32.totalorder %v6313_v22, 112  ;;  %vm2081_vm1 = vcmp.lt.s32.totalorder %v6313_v22, 111  ;;  %v2748_v22 = vld [vmem:[%s5741_s0 + $0x28] sm:$0xff]  ;;  %vm4137_vm5 = vcmask 1043456   ;;  %vm4282_vm6 = vcmask 1041408  }
 0x39e   : > { %vm4269_vm7 = vcmask 15360  }
 0x39f   : > { %1506 = vrot.lane.b32.xlu1 %v6183_v33, %s5575_s2  ;;  %1504 = vrot.lane.b32.xlu0 %v6185_v35, %s5575_s2 }
 0x3a3   : > { %1498 = vrot.lane.b32.xlu1 %v6191_v19, %s5575_s2  ;;  %1496 = vrot.lane.b32.xlu0 %v6193_v34, %s5575_s2 }
 0x3a7   : > { %1486 = vrot.lane.b32.xlu1 %v6199_v38, %s5575_s2  ;;  %1484 = vrot.lane.b32.xlu0 %v6201_v42, %s5575_s2 }
 0x3ab   : > { %1494 = vrot.lane.b32.xlu1 %v6207_v20, %s5575_s2  ;;  %1492 = vrot.lane.b32.xlu0 %v6209_v57, %s5575_s2 }
 0x3af   : > { %1510 = vrot.lane.b32.xlu1 %v6215_v8, %s5575_s2  ;;  %1508 = vrot.lane.b32.xlu0 %v6217_v36, %s5575_s2 }
 0x3b3   : > { %1502 = vrot.lane.b32.xlu1 %v6223_v40, %s5575_s2  ;;  %1500 = vrot.lane.b32.xlu0 %v6225_v9, %s5575_s2 }
 0x3b7   : > { %1565 = vrot.lane.b32.xlu1 %v6177_v21, %s5576_s15  ;;  %1563 = vrot.lane.b32.xlu0 %v6169_v26, %s5576_s15 }
 0x3bb   : > { %1573 = vrot.lane.b32.xlu1 %v6175_v28, %s5576_s15  ;;  %1571 = vrot.lane.b32.xlu0 %v6167_v25, %s5576_s15 }
 0x3bf   : > { %1589 = vrot.lane.b32.xlu1 %v6183_v33, %s5576_s15  ;;  %1587 = vrot.lane.b32.xlu0 %v6185_v35, %s5576_s15 }
 0x3c3   : > { %1581 = vrot.lane.b32.xlu1 %v6191_v19, %s5576_s15  ;;  %1579 = vrot.lane.b32.xlu0 %v6193_v34, %s5576_s15 }
 0x3c7   : > { %1569 = vrot.lane.b32.xlu1 %v6199_v38, %s5576_s15  ;;  %1567 = vrot.lane.b32.xlu0 %v6201_v42, %s5576_s15 }
 0x3cb   : > { %1577 = vrot.lane.b32.xlu1 %v6207_v20, %s5576_s15  ;;  %1575 = vrot.lane.b32.xlu0 %v6209_v57, %s5576_s15 }
 0x3cf   : > { %1593 = vrot.lane.b32.xlu1 %v6215_v8, %s5576_s15  ;;  %1591 = vrot.lane.b32.xlu0 %v6217_v36, %s5576_s15 }
 0x3d3   : > { %1585 = vrot.lane.b32.xlu1 %v6223_v40, %s5576_s15  ;;  %1583 = vrot.lane.b32.xlu0 %v6225_v9, %s5576_s15 }
 0x3d7   : > { %1646 = vrot.lane.b32.xlu1 %v6177_v21, %s5577_s8  ;;  %1644 = vrot.lane.b32.xlu0 %v6169_v26, %s5577_s8 }
 0x3db   : > { %1654 = vrot.lane.b32.xlu1 %v6175_v28, %s5577_s8  ;;  %1652 = vrot.lane.b32.xlu0 %v6167_v25, %s5577_s8 }
 0x3df   : > { %1670 = vrot.lane.b32.xlu1 %v6183_v33, %s5577_s8  ;;  %1668 = vrot.lane.b32.xlu0 %v6185_v35, %s5577_s8 }
 0x3e3   : > { %1662 = vrot.lane.b32.xlu1 %v6191_v19, %s5577_s8  ;;  %1660 = vrot.lane.b32.xlu0 %v6193_v34, %s5577_s8 }
 0x3e7   : > { %1650 = vrot.lane.b32.xlu1 %v6199_v38, %s5577_s8  ;;  %1648 = vrot.lane.b32.xlu0 %v6201_v42, %s5577_s8 }
 0x3eb   : > { %1658 = vrot.lane.b32.xlu1 %v6207_v20, %s5577_s8  ;;  %1656 = vrot.lane.b32.xlu0 %v6209_v57, %s5577_s8 }
 0x3ef   : > { %1674 = vrot.lane.b32.xlu1 %v6215_v8, %s5577_s8  ;;  %1672 = vrot.lane.b32.xlu0 %v6217_v36, %s5577_s8 }
 0x3f3   : > { %1666 = vrot.lane.b32.xlu1 %v6223_v40, %s5577_s8  ;;  %1664 = vrot.lane.b32.xlu0 %v6225_v9, %s5577_s8 }
 0x3f7   : > { %1727 = vrot.lane.b32.xlu1 %v6177_v21, %s5578_s17  ;;  %1725 = vrot.lane.b32.xlu0 %v6169_v26, %s5578_s17 }
 0x3fb   : > { %1735 = vrot.lane.b32.xlu1 %v6175_v28, %s5578_s17  ;;  %1733 = vrot.lane.b32.xlu0 %v6167_v25, %s5578_s17 }
 0x3ff   : > { %1751 = vrot.lane.b32.xlu1 %v6183_v33, %s5578_s17  ;;  %1749 = vrot.lane.b32.xlu0 %v6185_v35, %s5578_s17 }
 0x403   : > { %1743 = vrot.lane.b32.xlu1 %v6191_v19, %s5578_s17  ;;  %1741 = vrot.lane.b32.xlu0 %v6193_v34, %s5578_s17 }
 0x407   : > { %1731 = vrot.lane.b32.xlu1 %v6199_v38, %s5578_s17  ;;  %1729 = vrot.lane.b32.xlu0 %v6201_v42, %s5578_s17 }
 0x409   : > { %v1489_v44 = vpop.permute.xlu1 %1488  ;;  %v1481_v61 = vpop.permute.xlu0 %1480 }
 0x40a   : > { %v1523_v23 = vsel %vm1514_vm10, %v1481_v61, %v1489_v44 }
 0x40b   : > { %1739 = vrot.lane.b32.xlu1 %v6207_v20, %s5578_s17  ;;  %1737 = vrot.lane.b32.xlu0 %v6209_v57, %s5578_s17  ;;  %v1548_v17 = vmul.f32 %v6329_v18, %v1523_v23 }
 0x40d   : > { %v1491_v62 = vpop.permute.xlu1 %1490  ;;  %v1483_v11 = vpop.permute.xlu0 %1482 }
 0x40e   : > { %v1524_v32 = vsel %vm1514_vm10, %v1483_v11, %v1491_v62 }
 0x40f   : > { %1755 = vrot.lane.b32.xlu1 %v6215_v8, %s5578_s17  ;;  %1753 = vrot.lane.b32.xlu0 %v6217_v36, %s5578_s17  ;;  %v1552_v49 = vmul.f32 %v6329_v18, %v1524_v32 }
 0x411   : > { %v1507_v52 = vpop.permute.xlu1 %1506  ;;  %v1505_v24 = vpop.permute.xlu0 %1504  ;;  %v4935_v54 = vpack.c.bf16 %v1552_v49, %v1548_v17 }
 0x412   : > { %v1528_v47 = vsel %vm1514_vm10, %v1507_v52, %v1483_v11  ;;  %v1527_v55 = vsel %vm1514_vm10, %v1505_v24, %v1481_v61 }
 0x413   : > { %1747 = vrot.lane.b32.xlu1 %v6223_v40, %s5578_s17  ;;  %1745 = vrot.lane.b32.xlu0 %v6225_v9, %s5578_s17  ;;  %v1547_v56 = vmul.f32 %v6343_v51, %v1527_v55  ;;  %v1551_v53 = vmul.f32 %v6343_v51, %v1528_v47 }
 0x414   : > { %4936 = vmatprep.subr.bf16.mxu0 %v4935_v54 }
 0x415   : > { %v1499_v58 = vpop.permute.xlu1 %1498  ;;  %v1497_v10 = vpop.permute.xlu0 %1496  ;;  %v4937_v37 = vpack.c.bf16 %v1551_v53, %v1547_v56  ;;  %v1614_v56 = vsub.s32 1, %v6311_v41 }
 0x416   : > { %v1520_v59 = vsel %vm1514_vm10, %v1491_v62, %v1499_v58  ;;  %v1519_v45 = vsel %vm1514_vm10, %v1489_v44, %v1497_v10  ;;  %v1515_v12 = vsel %vm1514_vm10, %v1497_v10, %v1505_v24  ;;  %v1516_v29 = vsel %vm1514_vm10, %v1499_v58, %v1507_v52 }
 0x417   : > { %1816 = vrot.lane.b32.xlu1 %v6175_v28, %s5579_s7  ;;  %1814 = vrot.lane.b32.xlu0 %v6167_v25, %s5579_s7  ;;  %v1550_v63 = vmul.f32 %v6351_v27, %v1515_v12  ;;  %v1554_v46 = vmul.f32 %v6351_v27, %v1516_v29  ;;  %v1549_v60 = vmul.f32 %v6361_v16, %v1519_v45 }
 0x418   : > { %4938 = vmatpush1.bf16.msra.mxu0 %v4937_v37  ;;  %v1553_v13 = vmul.f32 %v6361_v16, %v1520_v59 }
 0x419   : > { %v1487_v48 = vpop.permute.xlu1 %1486  ;;  %v1485_v31 = vpop.permute.xlu0 %1484  ;;  %v5007_v14 = vpack.c.bf16 %v1554_v46, %v1550_v63 }
 0x41a   : > { %v5009_v50 = vpack.c.bf16 %v1553_v13, %v1549_v60 }
 0x41b   : > { %1824 = vrot.lane.b32.xlu1 %v6191_v19, %s5579_s7  ;;  %1822 = vrot.lane.b32.xlu0 %v6193_v34, %s5579_s7 }
 0x41c   : > { %5008 = vmatprep.subr.bf16.mxu1 %v5007_v14 }
 0x41d   : > { %5010 = vmatpush1.bf16.msra.mxu1 %v5009_v50  ;;  %v1495_v15 = vpop.permute.xlu1 %1494  ;;  %v1493_v30 = vpop.permute.xlu0 %1492 }
 0x41e   : > { %v1526_v39 = vsel %vm1514_vm10, %v1487_v48, %v1495_v15  ;;  %v1525_v44 = vsel %vm1514_vm10, %v1485_v31, %v1493_v30 }
 0x41f   : > { %v1560_v61 = vmul.f32 %v6329_v18, %v1526_v39  ;;  %v1556_v23 = vmul.f32 %v6329_v18, %v1525_v44  ;;  %1808 = vrot.lane.b32.xlu1 %v6177_v21, %s5579_s7  ;;  %1806 = vrot.lane.b32.xlu0 %v6169_v26, %s5579_s7  ;;  %v6437_v44 = vrot.slane %v5685_v0, %v1614_v56 }
 0x421   : > { %v1511_v62 = vpop.permute.xlu1 %1510  ;;  %v1509_v11 = vpop.permute.xlu0 %1508  ;;  %v4939_v32 = vpack.c.bf16 %v1560_v61, %v1556_v23 }
 0x422   : > { %v1530_v17 = vsel %vm1514_vm10, %v1511_v62, %v1487_v48  ;;  %v1529_v49 = vsel %vm1514_vm10, %v1509_v11, %v1485_v31  ;;  %v6424_v48 = vrot.slane %v5690_v1, %v1614_v56 }
 0x423   : > { %v1559_v52 = vmul.f32 %v6343_v51, %v1530_v17  ;;  %v1555_v24 = vmul.f32 %v6343_v51, %v1529_v49  ;;  %1832 = vrot.lane.b32.xlu1 %v6183_v33, %s5579_s7  ;;  %1830 = vrot.lane.b32.xlu0 %v6185_v35, %s5579_s7  ;;  %v6446_v17 = vrot.slane %v5695_v2, %v1614_v56 }
 0x424   : > { %4940 = vmatprep.subr.bf16.mxu0 %v4939_v32 }
 0x425   : > { %v1503_v54 = vpop.permute.xlu1 %1502  ;;  %v1501_v47 = vpop.permute.xlu0 %1500  ;;  %v4941_v55 = vpack.c.bf16 %v1559_v52, %v1555_v24  ;;  %v6453_v24 = vrot.slane %v5700_v3, %v1614_v56 }
 0x426   : > { %v1518_v53 = vsel %vm1514_vm10, %v1503_v54, %v1511_v62  ;;  %v1522_v58 = vsel %vm1514_vm10, %v1495_v15, %v1503_v54  ;;  %v1517_v10 = vsel %vm1514_vm10, %v1501_v47, %v1509_v11  ;;  %v1521_v37 = vsel %vm1514_vm10, %v1493_v30, %v1501_v47 }
 0x427   : > { %v1561_v59 = vmul.f32 %v6361_v16, %v1522_v58  ;;  %v1562_v45 = vmul.f32 %v6351_v27, %v1518_v53  ;;  %v1557_v12 = vmul.f32 %v6361_v16, %v1521_v37  ;;  %v1558_v29 = vmul.f32 %v6351_v27, %v1517_v10  ;;  %1820 = vrot.lane.b32.xlu1 %v6207_v20, %s5579_s7 }
 0x428   : > { %1818 = vrot.lane.b32.xlu0 %v6209_v57, %s5579_s7  ;;  %4942 = vmatpush1.bf16.msra.mxu0 %v4941_v55 }
 0x429   : > { %v1566_v63 = vpop.permute.xlu1 %1565  ;;  %v1564_v46 = vpop.permute.xlu0 %1563  ;;  %v5011_v60 = vpack.c.bf16 %v1562_v45, %v1558_v29  ;;  %v5013_v13 = vpack.c.bf16 %v1561_v59, %v1557_v12 }
 0x42b   : > { %1828 = vrot.lane.b32.xlu1 %v6223_v40, %s5579_s7  ;;  %5012 = vmatprep.subr.bf16.mxu1 %v5011_v60 }
 0x42c   : > { %1826 = vrot.lane.b32.xlu0 %v6225_v9, %s5579_s7  ;;  %5014 = vmatpush1.bf16.msra.mxu1 %v5013_v13 }
 0x42d   : > { %v1574_v31 = vpop.permute.xlu1 %1573  ;;  %v1572_v14 = vpop.permute.xlu0 %1571 }
 0x42e   : > { %v1605_v50 = vsel %vm1595_vm11, %v1566_v63, %v1574_v31  ;;  %v1604_v15 = vsel %vm1595_vm11, %v1564_v46, %v1572_v14 }
 0x42f   : > { %v1633_v30 = vmul.f32 %v6424_v48, %v1605_v50  ;;  %v1629_v39 = vmul.f32 %v6424_v48, %v1604_v15  ;;  %1812 = vrot.lane.b32.xlu1 %v6199_v38, %s5579_s7 }
 0x430   : > { %1810 = vrot.lane.b32.xlu0 %v6201_v42, %s5579_s7 }
 0x431   : > { %v1590_v61 = vpop.permute.xlu1 %1589  ;;  %v1588_v23 = vpop.permute.xlu0 %1587  ;;  %v4943_v62 = vpack.c.bf16 %v1633_v30, %v1629_v39 }
 0x432   : > { %v1609_v11 = vsel %vm1595_vm11, %v1590_v61, %v1566_v63  ;;  %v1608_v32 = vsel %vm1595_vm11, %v1588_v23, %v1564_v46 }
 0x433   : > { %v1632_v49 = vmul.f32 %v6437_v44, %v1609_v11  ;;  %v1628_v52 = vmul.f32 %v6437_v44, %v1608_v32  ;;  %1836 = vrot.lane.b32.xlu1 %v6215_v8, %s5579_s7  ;;  %4944 = vmatprep.subr.bf16.mxu0 %v4943_v62 }
 0x434   : > { %1834 = vrot.lane.b32.xlu0 %v6217_v36, %s5579_s7 }
 0x435   : > { %v1582_v54 = vpop.permute.xlu1 %1581  ;;  %v1580_v47 = vpop.permute.xlu0 %1579  ;;  %v4945_v55 = vpack.c.bf16 %v1632_v49, %v1628_v52 }
 0x436   : > { %v1597_v53 = vsel %vm1595_vm11, %v1582_v54, %v1590_v61  ;;  %v1601_v58 = vsel %vm1595_vm11, %v1574_v31, %v1582_v54  ;;  %v1596_v10 = vsel %vm1595_vm11, %v1580_v47, %v1588_v23  ;;  %v1600_v37 = vsel %vm1595_vm11, %v1572_v14, %v1580_v47 }
 0x437   : > { %v1634_v56 = vmul.f32 %v6446_v17, %v1601_v58  ;;  %v1635_v59 = vmul.f32 %v6453_v24, %v1597_v53  ;;  %v1630_v45 = vmul.f32 %v6446_v17, %v1600_v37  ;;  %v1631_v12 = vmul.f32 %v6453_v24, %v1596_v10  ;;  %1897 = vrot.lane.b32.xlu1 %v6175_v28, %s5580_s9 }
 0x438   : > { %1895 = vrot.lane.b32.xlu0 %v6167_v25, %s5580_s9  ;;  %4946 = vmatpush1.bf16.msra.mxu0 %v4945_v55  ;;  %v1695_v55 = vsub.s32 2, %v6311_v41 }
 0x439   : > { %v1570_v29 = vpop.permute.xlu1 %1569  ;;  %v1568_v63 = vpop.permute.xlu0 %1567  ;;  %v5015_v46 = vpack.c.bf16 %v1635_v59, %v1631_v12  ;;  %v5017_v60 = vpack.c.bf16 %v1634_v56, %v1630_v45 }
 0x43b   : > { %1905 = vrot.lane.b32.xlu1 %v6191_v19, %s5580_s9  ;;  %5016 = vmatprep.subr.bf16.mxu1 %v5015_v46 }
 0x43c   : > { %1903 = vrot.lane.b32.xlu0 %v6193_v34, %s5580_s9  ;;  %5018 = vmatpush1.bf16.msra.mxu1 %v5017_v60 }
 0x43d   : > { %v1578_v13 = vpop.permute.xlu1 %1577  ;;  %v1576_v31 = vpop.permute.xlu0 %1575 }
 0x43e   : > { %v1607_v14 = vsel %vm1595_vm11, %v1570_v29, %v1578_v13  ;;  %v1606_v50 = vsel %vm1595_vm11, %v1568_v63, %v1576_v31 }
 0x43f   : > { %v1641_v15 = vmul.f32 %v6424_v48, %v1607_v14  ;;  %v1637_v30 = vmul.f32 %v6424_v48, %v1606_v50  ;;  %1889 = vrot.lane.b32.xlu1 %v6177_v21, %s5580_s9 }
 0x440   : > { %1887 = vrot.lane.b32.xlu0 %v6169_v26, %s5580_s9 }
 0x441   : > { %v1594_v39 = vpop.permute.xlu1 %1593  ;;  %v1592_v61 = vpop.permute.xlu0 %1591  ;;  %v4947_v23 = vpack.c.bf16 %v1641_v15, %v1637_v30 }
 0x442   : > { %v1611_v62 = vsel %vm1595_vm11, %v1594_v39, %v1570_v29  ;;  %v1610_v11 = vsel %vm1595_vm11, %v1592_v61, %v1568_v63 }
 0x443   : > { %v1640_v32 = vmul.f32 %v6437_v44, %v1611_v62  ;;  %v1636_v49 = vmul.f32 %v6437_v44, %v1610_v11  ;;  %1913 = vrot.lane.b32.xlu1 %v6183_v33, %s5580_s9  ;;  %4948 = vmatprep.subr.bf16.mxu0 %v4947_v23 }
 0x444   : > { %1911 = vrot.lane.b32.xlu0 %v6185_v35, %s5580_s9 }
 0x445   : > { %v1586_v52 = vpop.permute.xlu1 %1585  ;;  %v1584_v54 = vpop.permute.xlu0 %1583  ;;  %v4949_v47 = vpack.c.bf16 %v1640_v32, %v1636_v49 }
 0x446   : > { %v1599_v53 = vsel %vm1595_vm11, %v1586_v52, %v1594_v39  ;;  %v1603_v58 = vsel %vm1595_vm11, %v1578_v13, %v1586_v52  ;;  %v1598_v10 = vsel %vm1595_vm11, %v1584_v54, %v1592_v61  ;;  %v1602_v37 = vsel %vm1595_vm11, %v1576_v31, %v1584_v54 }
 0x447   : > { %v1642_v56 = vmul.f32 %v6446_v17, %v1603_v58  ;;  %v1643_v59 = vmul.f32 %v6453_v24, %v1599_v53  ;;  %v1638_v45 = vmul.f32 %v6446_v17, %v1602_v37  ;;  %v1639_v12 = vmul.f32 %v6453_v24, %v1598_v10  ;;  %1901 = vrot.lane.b32.xlu1 %v6207_v20, %s5580_s9 }
 0x448   : > { %1899 = vrot.lane.b32.xlu0 %v6209_v57, %s5580_s9  ;;  %4950 = vmatpush1.bf16.msra.mxu0 %v4949_v47  ;;  %v6518_v13 = vrot.slane %v5690_v1, %v1695_v55  ;;  %v6531_v61 = vrot.slane %v5685_v0, %v1695_v55  ;;  %v6540_v52 = vrot.slane %v5695_v2, %v1695_v55 }
 0x449   : > { %v1647_v29 = vpop.permute.xlu1 %1646  ;;  %v1645_v63 = vpop.permute.xlu0 %1644  ;;  %v5019_v46 = vpack.c.bf16 %v1643_v59, %v1639_v12  ;;  %v5021_v60 = vpack.c.bf16 %v1642_v56, %v1638_v45  ;;  %v6547_v53 = vrot.slane %v5700_v3, %v1695_v55 }
 0x44b   : > { %1909 = vrot.lane.b32.xlu1 %v6223_v40, %s5580_s9  ;;  %5020 = vmatprep.subr.bf16.mxu1 %v5019_v46 }
 0x44c   : > { %1907 = vrot.lane.b32.xlu0 %v6225_v9, %s5580_s9  ;;  %5022 = vmatpush1.bf16.msra.mxu1 %v5021_v60 }
 0x44d   : > { %v1655_v31 = vpop.permute.xlu1 %1654  ;;  %v1653_v14 = vpop.permute.xlu0 %1652 }
 0x44e   : > { %v1686_v50 = vsel %vm1676_vm12, %v1647_v29, %v1655_v31  ;;  %v1685_v15 = vsel %vm1676_vm12, %v1645_v63, %v1653_v14 }
 0x44f   : > { %v1714_v30 = vmul.f32 %v6518_v13, %v1686_v50  ;;  %v1710_v39 = vmul.f32 %v6518_v13, %v1685_v15  ;;  %1893 = vrot.lane.b32.xlu1 %v6199_v38, %s5580_s9 }
 0x450   : > { %1891 = vrot.lane.b32.xlu0 %v6201_v42, %s5580_s9 }
 0x451   : > { %v1671_v23 = vpop.permute.xlu1 %1670  ;;  %v1669_v62 = vpop.permute.xlu0 %1668  ;;  %v4951_v11 = vpack.c.bf16 %v1714_v30, %v1710_v39 }
 0x452   : > { %v1690_v32 = vsel %vm1676_vm12, %v1671_v23, %v1647_v29  ;;  %v1689_v49 = vsel %vm1676_vm12, %v1669_v62, %v1645_v63 }
 0x453   : > { %v1713_v54 = vmul.f32 %v6531_v61, %v1690_v32  ;;  %v1709_v47 = vmul.f32 %v6531_v61, %v1689_v49  ;;  %1917 = vrot.lane.b32.xlu1 %v6215_v8, %s5580_s9  ;;  %4952 = vmatprep.subr.bf16.mxu0 %v4951_v11 }
 0x454   : > { %1915 = vrot.lane.b32.xlu0 %v6217_v36, %s5580_s9 }
 0x455   : > { %v1663_v58 = vpop.permute.xlu1 %1662  ;;  %v1661_v10 = vpop.permute.xlu0 %1660  ;;  %v4953_v37 = vpack.c.bf16 %v1713_v54, %v1709_v47 }
 0x456   : > { %v1678_v56 = vsel %vm1676_vm12, %v1663_v58, %v1671_v23  ;;  %v1682_v59 = vsel %vm1676_vm12, %v1655_v31, %v1663_v58  ;;  %v1677_v45 = vsel %vm1676_vm12, %v1661_v10, %v1669_v62  ;;  %v1681_v12 = vsel %vm1676_vm12, %v1653_v14, %v1661_v10 }
 0x457   : > { %v1715_v55 = vmul.f32 %v6540_v52, %v1682_v59  ;;  %v1716_v29 = vmul.f32 %v6547_v53, %v1678_v56  ;;  %v1711_v63 = vmul.f32 %v6540_v52, %v1681_v12  ;;  %v1712_v46 = vmul.f32 %v6547_v53, %v1677_v45  ;;  %1978 = vrot.lane.b32.xlu1 %v6175_v28, %s5581_s25 }
 0x458   : > { %1976 = vrot.lane.b32.xlu0 %v6167_v25, %s5581_s25  ;;  %4954 = vmatpush1.bf16.msra.mxu0 %v4953_v37  ;;  %v1776_v12 = vsub.s32 3, %v6311_v41 }
 0x459   : > { %v1651_v60 = vpop.permute.xlu1 %1650  ;;  %v1649_v31 = vpop.permute.xlu0 %1648  ;;  %v5023_v50 = vpack.c.bf16 %v1716_v29, %v1712_v46  ;;  %v5025_v14 = vpack.c.bf16 %v1715_v55, %v1711_v63 }
 0x45b   : > { %1986 = vrot.lane.b32.xlu1 %v6191_v19, %s5581_s25  ;;  %5024 = vmatprep.subr.bf16.mxu1 %v5023_v50 }
 0x45c   : > { %1984 = vrot.lane.b32.xlu0 %v6193_v34, %s5581_s25  ;;  %5026 = vmatpush1.bf16.msra.mxu1 %v5025_v14 }
 0x45d   : > { %v1659_v15 = vpop.permute.xlu1 %1658  ;;  %v1657_v30 = vpop.permute.xlu0 %1656 }
 0x45e   : > { %v1688_v39 = vsel %vm1676_vm12, %v1651_v60, %v1659_v15  ;;  %v1687_v23 = vsel %vm1676_vm12, %v1649_v31, %v1657_v30 }
 0x45f   : > { %v1722_v62 = vmul.f32 %v6518_v13, %v1688_v39  ;;  %v1718_v11 = vmul.f32 %v6518_v13, %v1687_v23  ;;  %1970 = vrot.lane.b32.xlu1 %v6177_v21, %s5581_s25 }
 0x460   : > { %1968 = vrot.lane.b32.xlu0 %v6169_v26, %s5581_s25 }
 0x461   : > { %v1675_v32 = vpop.permute.xlu1 %1674  ;;  %v1673_v49 = vpop.permute.xlu0 %1672  ;;  %v4955_v54 = vpack.c.bf16 %v1722_v62, %v1718_v11 }
 0x462   : > { %v1692_v47 = vsel %vm1676_vm12, %v1675_v32, %v1651_v60  ;;  %v1691_v58 = vsel %vm1676_vm12, %v1673_v49, %v1649_v31 }
 0x463   : > { %v1721_v10 = vmul.f32 %v6531_v61, %v1692_v47  ;;  %v1717_v37 = vmul.f32 %v6531_v61, %v1691_v58  ;;  %1994 = vrot.lane.b32.xlu1 %v6183_v33, %s5581_s25  ;;  %4956 = vmatprep.subr.bf16.mxu0 %v4955_v54 }
 0x464   : > { %1992 = vrot.lane.b32.xlu0 %v6185_v35, %s5581_s25 }
 0x465   : > { %v1667_v56 = vpop.permute.xlu1 %1666  ;;  %v1665_v59 = vpop.permute.xlu0 %1664  ;;  %v4957_v45 = vpack.c.bf16 %v1721_v10, %v1717_v37  ;;  %v6625_v10 = vrot.slane %v5685_v0, %v1776_v12 }
 0x466   : > { %v1680_v55 = vsel %vm1676_vm12, %v1667_v56, %v1675_v32  ;;  %v1684_v29 = vsel %vm1676_vm12, %v1659_v15, %v1667_v56  ;;  %v1679_v63 = vsel %vm1676_vm12, %v1665_v59, %v1673_v49  ;;  %v1683_v46 = vsel %vm1676_vm12, %v1657_v30, %v1665_v59 }
 0x467   : > { %v1723_v60 = vmul.f32 %v6540_v52, %v1684_v29  ;;  %v1724_v31 = vmul.f32 %v6547_v53, %v1680_v55  ;;  %v1719_v50 = vmul.f32 %v6540_v52, %v1683_v46  ;;  %v1720_v14 = vmul.f32 %v6547_v53, %v1679_v63  ;;  %1982 = vrot.lane.b32.xlu1 %v6207_v20, %s5581_s25 }
 0x468   : > { %1980 = vrot.lane.b32.xlu0 %v6209_v57, %s5581_s25  ;;  %4958 = vmatpush1.bf16.msra.mxu0 %v4957_v45  ;;  %v6612_v30 = vrot.slane %v5690_v1, %v1776_v12  ;;  %8670 = vst [vmem:[#allocation8_spill] sm:$0xff] %v6625_v10  ;;  %v6634_v29 = vrot.slane %v5695_v2, %v1776_v12 }
 0x469   : > { %v1728_v15 = vpop.permute.xlu1 %1727  ;;  %v1726_v39 = vpop.permute.xlu0 %1725  ;;  %v5027_v23 = vpack.c.bf16 %v1724_v31, %v1720_v14  ;;  %v5029_v62 = vpack.c.bf16 %v1723_v60, %v1719_v50  ;;  %v6641_v60 = vrot.slane %v5700_v3, %v1776_v12  ;;  %v1461_v12 = vld [vmem:[%s5736_s18 + $0x8] sm:$0xff] }
 0x46a   : > { %8669 = vst [vmem:[#allocation7_spill] sm:$0xff] %v6612_v30  ;;  %8671 = vst [vmem:[#allocation9_spill] sm:$0xff] %v6634_v29  ;;  %2207 = vmatprep.mubr.f32.mxu0 %v1461_v12  ;;  %2385 = vmatprep.mubr.f32.mxu1 %v1461_v12 }
 0x46b   : > { %1990 = vrot.lane.b32.xlu1 %v6223_v40, %s5581_s25  ;;  %5028 = vmatprep.subr.bf16.mxu1 %v5027_v23  ;;  %8672 = vst [vmem:[#allocation10_spill] sm:$0xff] %v6641_v60 }
 0x46c   : > { %1988 = vrot.lane.b32.xlu0 %v6225_v9, %s5581_s25  ;;  %5030 = vmatpush1.bf16.msra.mxu1 %v5029_v62 }
 0x46d   : > { %v1736_v11 = vpop.permute.xlu1 %1735  ;;  %v1734_v32 = vpop.permute.xlu0 %1733 }
 0x46e   : > { %v1767_v49 = vsel %vm1757_vm13, %v1728_v15, %v1736_v11  ;;  %v1766_v54 = vsel %vm1757_vm13, %v1726_v39, %v1734_v32 }
 0x46f   : > { %v1795_v47 = vmul.f32 %v6612_v30, %v1767_v49  ;;  %v1791_v58 = vmul.f32 %v6612_v30, %v1766_v54  ;;  %1974 = vrot.lane.b32.xlu1 %v6199_v38, %s5581_s25 }
 0x470   : > { %1972 = vrot.lane.b32.xlu0 %v6201_v42, %s5581_s25 }
 0x471   : > { %v1752_v37 = vpop.permute.xlu1 %1751  ;;  %v1750_v56 = vpop.permute.xlu0 %1749  ;;  %v4959_v59 = vpack.c.bf16 %v1795_v47, %v1791_v58 }
 0x472   : > { %v1771_v45 = vsel %vm1757_vm13, %v1752_v37, %v1728_v15  ;;  %v1770_v55 = vsel %vm1757_vm13, %v1750_v56, %v1726_v39 }
 0x473   : > { %v1794_v63 = vmul.f32 %v6625_v10, %v1771_v45  ;;  %v1790_v46 = vmul.f32 %v6625_v10, %v1770_v55  ;;  %1998 = vrot.lane.b32.xlu1 %v6215_v8, %s5581_s25  ;;  %4960 = vmatprep.subr.bf16.mxu0 %v4959_v59 }
 0x474   : > { %1996 = vrot.lane.b32.xlu0 %v6217_v36, %s5581_s25 }
 0x475   : > { %v1744_v31 = vpop.permute.xlu1 %1743  ;;  %v1742_v50 = vpop.permute.xlu0 %1741  ;;  %v4961_v14 = vpack.c.bf16 %v1794_v63, %v1790_v46 }
 0x476   : > { %v1759_v15 = vsel %vm1757_vm13, %v1744_v31, %v1752_v37  ;;  %v1763_v39 = vsel %vm1757_vm13, %v1736_v11, %v1744_v31  ;;  %v1758_v23 = vsel %vm1757_vm13, %v1742_v50, %v1750_v56  ;;  %v1762_v62 = vsel %vm1757_vm13, %v1734_v32, %v1742_v50 }
 0x477   : > { %v1796_v49 = vmul.f32 %v6634_v29, %v1763_v39  ;;  %v1797_v54 = vmul.f32 %v6641_v60, %v1759_v15  ;;  %v1792_v47 = vmul.f32 %v6634_v29, %v1762_v62  ;;  %v1793_v58 = vmul.f32 %v6641_v60, %v1758_v23  ;;  %2059 = vrot.lane.b32.xlu1 %v6175_v28, %s5582_s23 }
 0x478   : > { %2057 = vrot.lane.b32.xlu0 %v6167_v25, %s5582_s23  ;;  %4962 = vmatpush1.bf16.msra.mxu0 %v4961_v14 }
 0x479   : > { %v1732_v11 = vpop.permute.xlu1 %1731  ;;  %v1730_v37 = vpop.permute.xlu0 %1729  ;;  %v5031_v32 = vpack.c.bf16 %v1797_v54, %v1793_v58  ;;  %v5033_v56 = vpack.c.bf16 %v1796_v49, %v1792_v47  ;;  %v1857_v58 = vsub.s32 5, %v6311_v41 }
 0x47b   : > { %2067 = vrot.lane.b32.xlu1 %v6191_v19, %s5582_s23  ;;  %5032 = vmatprep.subr.bf16.mxu1 %v5031_v32 }
 0x47c   : > { %2065 = vrot.lane.b32.xlu0 %v6193_v34, %s5582_s23  ;;  %5034 = vmatpush1.bf16.msra.mxu1 %v5033_v56 }
 0x47d   : > { %v1740_v59 = vpop.permute.xlu1 %1739  ;;  %v1738_v45 = vpop.permute.xlu0 %1737 }
 0x47e   : > { %v1769_v55 = vsel %vm1757_vm13, %v1732_v11, %v1740_v59  ;;  %v1768_v63 = vsel %vm1757_vm13, %v1730_v37, %v1738_v45 }
 0x47f   : > { %v1803_v46 = vmul.f32 %v6612_v30, %v1769_v55  ;;  %v1799_v31 = vmul.f32 %v6612_v30, %v1768_v63  ;;  %2051 = vrot.lane.b32.xlu1 %v6177_v21, %s5582_s23 }
 0x480   : > { %2049 = vrot.lane.b32.xlu0 %v6169_v26, %s5582_s23 }
 0x481   : > { %v1756_v50 = vpop.permute.xlu1 %1755  ;;  %v1754_v14 = vpop.permute.xlu0 %1753  ;;  %v4963_v15 = vpack.c.bf16 %v1803_v46, %v1799_v31 }
 0x482   : > { %v1773_v39 = vsel %vm1757_vm13, %v1756_v50, %v1732_v11  ;;  %v1772_v23 = vsel %vm1757_vm13, %v1754_v14, %v1730_v37  ;;  %v4967_v11 = vpack.c.bf16 %v6175_v28, %v6167_v25 }
 0x483   : > { %v1802_v62 = vmul.f32 %v6625_v10, %v1773_v39  ;;  %v1798_v12 = vmul.f32 %v6625_v10, %v1772_v23  ;;  %2075 = vrot.lane.b32.xlu1 %v6183_v33, %s5582_s23  ;;  %4964 = vmatprep.subr.bf16.mxu0 %v4963_v15  ;;  %v5039_v15 = vpack.c.bf16 %v6183_v33, %v6185_v35 }
 0x484   : > { %2073 = vrot.lane.b32.xlu0 %v6185_v35, %s5582_s23  ;;  %v4971_v39 = vpack.c.bf16 %v6207_v20, %v6209_v57  ;;  %v6715_v23 = vrot.slane %v5690_v1, %v1857_v58  ;;  %v4973_v35 = vpack.c.bf16 %v6199_v38, %v6201_v42 }
 0x485   : > { %v1748_v49 = vpop.permute.xlu1 %1747  ;;  %v1746_v54 = vpop.permute.xlu0 %1745  ;;  %v4965_v47 = vpack.c.bf16 %v1802_v62, %v1798_v12 }
 0x486   : > { %v1761_v37 = vsel %vm1757_vm13, %v1748_v49, %v1756_v50  ;;  %v1765_v32 = vsel %vm1757_vm13, %v1740_v59, %v1748_v49  ;;  %v1760_v56 = vsel %vm1757_vm13, %v1746_v54, %v1754_v14  ;;  %v1764_v55 = vsel %vm1757_vm13, %v1738_v45, %v1746_v54  ;;  %8673 = vst [vmem:[#allocation11_spill] sm:$0xff] %v6715_v23 }
 0x487   : > { %v1804_v63 = vmul.f32 %v6634_v29, %v1765_v32  ;;  %v1805_v46 = vmul.f32 %v6641_v60, %v1761_v37  ;;  %v1800_v31 = vmul.f32 %v6634_v29, %v1764_v55  ;;  %v1801_v25 = vmul.f32 %v6641_v60, %v1760_v56  ;;  %2063 = vrot.lane.b32.xlu1 %v6207_v20, %s5582_s23 }
 0x488   : > { %2061 = vrot.lane.b32.xlu0 %v6209_v57, %s5582_s23  ;;  %4966 = vmatpush1.bf16.msra.mxu0 %v4965_v47  ;;  %v4969_v45 = vpack.c.bf16 %v6177_v21, %v6169_v26  ;;  %v5041_v26 = vpack.c.bf16 %v6191_v19, %v6193_v34  ;;  %v5043_v20 = vpack.c.bf16 %v6215_v8, %v6217_v36 }
 0x489   : > { %v1817_v28 = vpop.permute.xlu1 %1816  ;;  %v1815_v59 = vpop.permute.xlu0 %1814  ;;  %v5035_v50 = vpack.c.bf16 %v1805_v46, %v1801_v25  ;;  %v5037_v14 = vpack.c.bf16 %v1804_v63, %v1800_v31  ;;  %4968 = vmatprep.subr.bf16.mxu0 %v4967_v11  ;;  %v6734_v34 = vrot.slane %v5685_v0, %v1857_v58  ;;  %v5045_v49 = vpack.c.bf16 %v6223_v40, %v6225_v9 }
 0x48a   : > { %v6745_v32 = vrot.slane %v5695_v2, %v1857_v58 }
 0x48b   : > { %2071 = vrot.lane.b32.xlu1 %v6223_v40, %s5582_s23  ;;  %5036 = vmatprep.subr.bf16.mxu1 %v5035_v50  ;;  %8674 = vst [vmem:[#allocation12_spill] sm:$0xff] %v6734_v34  ;;  %v6752_v40 = vrot.slane %v5700_v3, %v1857_v58 }
 0x48c   : > { %2069 = vrot.lane.b32.xlu0 %v6225_v9, %s5582_s23  ;;  %5038 = vmatpush1.bf16.msra.mxu1 %v5037_v14  ;;  %8675 = vst [vmem:[#allocation13_spill] sm:$0xff] %v6745_v32 }
 0x48d   : > { %v1825_v21 = vpop.permute.xlu1 %1824  ;;  %v1823_v33 = vpop.permute.xlu0 %1822  ;;  %4970 = vmatpush1.bf16.msra.mxu0 %v4969_v45  ;;  %5040 = vmatprep.subr.bf16.mxu1 %v5039_v15  ;;  %8676 = vst [vmem:[#allocation14_spill] sm:$0xff] %v6752_v40 }
 0x48e   : > { %v1844_v57 = vsel %vm1838_vm14, %v1817_v28, %v1825_v21  ;;  %v1843_v62 = vsel %vm1838_vm14, %v1815_v59, %v1823_v33  ;;  %4972 = vmatprep.subr.bf16.mxu0 %v4971_v39 }
 0x48f   : > { %v1876_v12 = vmul.f32 %v6715_v23, %v1844_v57  ;;  %v1872_v19 = vmul.f32 %v6715_v23, %v1843_v62  ;;  %2055 = vrot.lane.b32.xlu1 %v6199_v38, %s5582_s23 }
 0x490   : > { %2053 = vrot.lane.b32.xlu0 %v6201_v42, %s5582_s23  ;;  %5042 = vmatpush1.bf16.msra.mxu1 %v5041_v26 }
 0x491   : > { %v1809_v54 = vpop.permute.xlu1 %1808  ;;  %v1807_v47 = vpop.permute.xlu0 %1806  ;;  %4974 = vmatpush1.bf16.msra.mxu0 %v4973_v35  ;;  %v4975_v11 = vpack.c.bf16 %v1876_v12, %v1872_v19  ;;  %5044 = vmatprep.subr.bf16.mxu1 %v5043_v20 }
 0x492   : > { %v1848_v37 = vsel %vm1838_vm14, %v1809_v54, %v1817_v28  ;;  %v1847_v38 = vsel %vm1838_vm14, %v1807_v47, %v1815_v59 }
 0x493   : > { %v1875_v42 = vmul.f32 %v6734_v34, %v1848_v37  ;;  %v1871_v56 = vmul.f32 %v6734_v34, %v1847_v38  ;;  %2079 = vrot.lane.b32.xlu1 %v6215_v8, %s5582_s23  ;;  %4976 = vmatprep.subr.bf16.mxu0 %v4975_v11 }
 0x494   : > { %2077 = vrot.lane.b32.xlu0 %v6217_v36, %s5582_s23  ;;  %5046 = vmatpush1.bf16.msra.mxu1 %v5045_v49 }
 0x495   : > { %v1833_v9 = vpop.permute.xlu1 %1832  ;;  %v1831_v55 = vpop.permute.xlu0 %1830  ;;  %v4977_v63 = vpack.c.bf16 %v1875_v42, %v1871_v56 }
 0x496   : > { %v1840_v46 = vsel %vm1838_vm14, %v1825_v21, %v1833_v9  ;;  %v1852_v31 = vsel %vm1838_vm14, %v1833_v9, %v1809_v54  ;;  %v1839_v8 = vsel %vm1838_vm14, %v1823_v33, %v1831_v55  ;;  %v1851_v58 = vsel %vm1838_vm14, %v1831_v55, %v1807_v47 }
 0x497   : > { %v1877_v25 = vmul.f32 %v6745_v32, %v1840_v46  ;;  %v1878_v36 = vmul.f32 %v6752_v40, %v1852_v31  ;;  %v1873_v28 = vmul.f32 %v6745_v32, %v1839_v8  ;;  %v1874_v59 = vmul.f32 %v6752_v40, %v1851_v58  ;;  %4978 = vmatpush1.bf16.msra.mxu0 %v4977_v63 }
 0x498   : > { %v1938_v9 = vsub.s32 6, %v6311_v41 }
 0x499   : > { %v1821_v50 = vpop.permute.xlu1 %1820  ;;  %v5047_v14 = vpack.c.bf16 %v1878_v36, %v1874_v59  ;;  %v5049_v45 = vpack.c.bf16 %v1877_v25, %v1873_v28 }
 0x49a   : > { %v1819_v15 = vpop.permute.xlu0 %1818 }
 0x49b   : > { %5048 = vmatprep.subr.bf16.mxu1 %v5047_v14 }
 0x49c   : > { %5050 = vmatpush1.bf16.msra.mxu1 %v5049_v45 }
 0x49d   : > { %v1829_v39 = vpop.permute.xlu1 %1828 }
 0x49e   : > { %v1846_v26 = vsel %vm1838_vm14, %v1821_v50, %v1829_v39  ;;  %v1827_v21 = vpop.permute.xlu0 %1826 }
 0x49f   : > { %v1884_v33 = vmul.f32 %v6715_v23, %v1846_v26  ;;  %v1845_v35 = vsel %vm1838_vm14, %v1819_v15, %v1827_v21 }
 0x4a0   : > { %v1880_v20 = vmul.f32 %v6715_v23, %v1845_v35 }
 0x4a1   : > { %v1813_v57 = vpop.permute.xlu1 %1812 }
 0x4a2   : > { %v1850_v62 = vsel %vm1838_vm14, %v1813_v57, %v1821_v50  ;;  %v1811_v12 = vpop.permute.xlu0 %1810  ;;  %v4979_v19 = vpack.c.bf16 %v1884_v33, %v1880_v20  ;;  %v6795_v50 = vrot.slane %v5690_v1, %v1938_v9 }
 0x4a3   : > { %v1883_v49 = vmul.f32 %v6734_v34, %v1850_v62  ;;  %v1849_v54 = vsel %vm1838_vm14, %v1811_v12, %v1819_v15 }
 0x4a4   : > { %v1879_v47 = vmul.f32 %v6734_v34, %v1849_v54  ;;  %4980 = vmatprep.subr.bf16.mxu0 %v4979_v19  ;;  %8677 = vst [vmem:[#allocation15_spill] sm:$0xff] %v6795_v50  ;;  %v6815_v54 = vrot.slane %v5700_v3, %v1938_v9 }
 0x4a5   : > { %v1837_v11 = vpop.permute.xlu1 %1836 }
 0x4a6   : > { %v1842_v37 = vsel %vm1838_vm14, %v1829_v39, %v1837_v11  ;;  %v1854_v38 = vsel %vm1838_vm14, %v1837_v11, %v1813_v57  ;;  %v1835_v42 = vpop.permute.xlu0 %1834  ;;  %v4981_v56 = vpack.c.bf16 %v1883_v49, %v1879_v47  ;;  %v6812_v49 = vrot.slane %v5695_v2, %v1938_v9  ;;  %8680 = vst [vmem:[#allocation18_spill] sm:$0xff] %v6815_v54 }
 0x4a7   : > { %v1885_v55 = vmul.f32 %v6745_v32, %v1842_v37  ;;  %v1886_v63 = vmul.f32 %v6752_v40, %v1854_v38  ;;  %v1841_v46 = vsel %vm1838_vm14, %v1827_v21, %v1835_v42  ;;  %v1853_v31 = vsel %vm1838_vm14, %v1835_v42, %v1811_v12 }
 0x4a8   : > { %v1881_v8 = vmul.f32 %v6745_v32, %v1841_v46  ;;  %v1882_v58 = vmul.f32 %v6752_v40, %v1853_v31  ;;  %4982 = vmatpush1.bf16.msra.mxu0 %v4981_v56  ;;  %v6803_v21 = vrot.slane %v5685_v0, %v1938_v9  ;;  %8679 = vst [vmem:[#allocation17_spill] sm:$0xff] %v6812_v49 }
 0x4a9   : > { %v1898_v25 = vpop.permute.xlu1 %1897 }
 0x4aa   : > { %v1896_v36 = vpop.permute.xlu0 %1895  ;;  %v5051_v28 = vpack.c.bf16 %v1886_v63, %v1882_v58  ;;  %v5053_v59 = vpack.c.bf16 %v1885_v55, %v1881_v8  ;;  %8678 = vst [vmem:[#allocation16_spill] sm:$0xff] %v6803_v21 }
 0x4ac   : > { %5052 = vmatprep.subr.bf16.mxu1 %v5051_v28 }
 0x4ad   : > { %5054 = vmatpush1.bf16.msra.mxu1 %v5053_v59  ;;  %v1906_v14 = vpop.permute.xlu1 %1905 }
 0x4ae   : > { %v1925_v45 = vsel %vm1919_vm15, %v1898_v25, %v1906_v14  ;;  %v1904_v15 = vpop.permute.xlu0 %1903 }
 0x4af   : > { %v1957_v39 = vmul.f32 %v6795_v50, %v1925_v45  ;;  %v1924_v26 = vsel %vm1919_vm15, %v1896_v36, %v1904_v15 }
 0x4b0   : > { %v1953_v33 = vmul.f32 %v6795_v50, %v1924_v26 }
 0x4b1   : > { %v1890_v35 = vpop.permute.xlu1 %1889 }
 0x4b2   : > { %v1929_v20 = vsel %vm1919_vm15, %v1890_v35, %v1898_v25  ;;  %v1888_v57 = vpop.permute.xlu0 %1887  ;;  %v4983_v62 = vpack.c.bf16 %v1957_v39, %v1953_v33 }
 0x4b3   : > { %v1956_v12 = vmul.f32 %v6803_v21, %v1929_v20  ;;  %v1928_v19 = vsel %vm1919_vm15, %v1888_v57, %v1896_v36 }
 0x4b4   : > { %v1952_v47 = vmul.f32 %v6803_v21, %v1928_v19  ;;  %4984 = vmatprep.subr.bf16.mxu0 %v4983_v62 }
 0x4b5   : > { %v1914_v11 = vpop.permute.xlu1 %1913 }
 0x4b6   : > { %v1921_v37 = vsel %vm1919_vm15, %v1906_v14, %v1914_v11  ;;  %v1933_v38 = vsel %vm1919_vm15, %v1914_v11, %v1890_v35  ;;  %v1912_v42 = vpop.permute.xlu0 %1911  ;;  %v4985_v56 = vpack.c.bf16 %v1956_v12, %v1952_v47 }
 0x4b7   : > { %v1958_v55 = vmul.f32 %v6812_v49, %v1921_v37  ;;  %v1959_v63 = vmul.f32 %v6815_v54, %v1933_v38  ;;  %v1920_v9 = vsel %vm1919_vm15, %v1904_v15, %v1912_v42  ;;  %v1932_v46 = vsel %vm1919_vm15, %v1912_v42, %v1888_v57 }
 0x4b8   : > { %v1954_v31 = vmul.f32 %v6812_v49, %v1920_v9  ;;  %v1955_v8 = vmul.f32 %v6815_v54, %v1932_v46  ;;  %4986 = vmatpush1.bf16.msra.mxu0 %v4985_v56  ;;  %v2019_v56 = vsub.s32 7, %v6311_v41 }
 0x4b9   : > { %v1902_v58 = vpop.permute.xlu1 %1901 }
 0x4ba   : > { %v1900_v25 = vpop.permute.xlu0 %1899  ;;  %v5055_v36 = vpack.c.bf16 %v1959_v63, %v1955_v8  ;;  %v5057_v28 = vpack.c.bf16 %v1958_v55, %v1954_v31 }
 0x4bc   : > { %5056 = vmatprep.subr.bf16.mxu1 %v5055_v36 }
 0x4bd   : > { %5058 = vmatpush1.bf16.msra.mxu1 %v5057_v28  ;;  %v1910_v59 = vpop.permute.xlu1 %1909 }
 0x4be   : > { %v1927_v14 = vsel %vm1919_vm15, %v1902_v58, %v1910_v59  ;;  %v1908_v45 = vpop.permute.xlu0 %1907 }
 0x4bf   : > { %v1965_v15 = vmul.f32 %v6795_v50, %v1927_v14  ;;  %v1926_v39 = vsel %vm1919_vm15, %v1900_v25, %v1908_v45 }
 0x4c0   : > { %v1961_v26 = vmul.f32 %v6795_v50, %v1926_v39 }
 0x4c1   : > { %v1894_v33 = vpop.permute.xlu1 %1893 }
 0x4c2   : > { %v1931_v35 = vsel %vm1919_vm15, %v1894_v33, %v1902_v58  ;;  %v1892_v20 = vpop.permute.xlu0 %1891  ;;  %v4987_v57 = vpack.c.bf16 %v1965_v15, %v1961_v26 }
 0x4c3   : > { %v1964_v62 = vmul.f32 %v6803_v21, %v1931_v35  ;;  %v1930_v12 = vsel %vm1919_vm15, %v1892_v20, %v1900_v25 }
 0x4c4   : > { %v1960_v19 = vmul.f32 %v6803_v21, %v1930_v12  ;;  %4988 = vmatprep.subr.bf16.mxu0 %v4987_v57 }
 0x4c5   : > { %v1918_v47 = vpop.permute.xlu1 %1917 }
 0x4c6   : > { %v1923_v11 = vsel %vm1919_vm15, %v1910_v59, %v1918_v47  ;;  %v1935_v37 = vsel %vm1919_vm15, %v1918_v47, %v1894_v33  ;;  %v1916_v38 = vpop.permute.xlu0 %1915  ;;  %v4989_v42 = vpack.c.bf16 %v1964_v62, %v1960_v19  ;;  %v6857_v59 = vrot.slane %v5690_v1, %v2019_v56 }
 0x4c7   : > { %v1966_v55 = vmul.f32 %v6812_v49, %v1923_v11  ;;  %v1967_v63 = vmul.f32 %v6815_v54, %v1935_v37  ;;  %v1922_v9 = vsel %vm1919_vm15, %v1908_v45, %v1916_v38  ;;  %v1934_v46 = vsel %vm1919_vm15, %v1916_v38, %v1892_v20 }
 0x4c8   : > { %v1962_v31 = vmul.f32 %v6812_v49, %v1922_v9  ;;  %v1963_v8 = vmul.f32 %v6815_v54, %v1934_v46  ;;  %4990 = vmatpush1.bf16.msra.mxu0 %v4989_v42  ;;  %8681 = vst [vmem:[#allocation19_spill] sm:$0xff] %v6857_v59  ;;  %v6865_v33 = vrot.slane %v5685_v0, %v2019_v56 }
 0x4c9   : > { %v1979_v58 = vpop.permute.xlu1 %1978  ;;  %v6874_v47 = vrot.slane %v5695_v2, %v2019_v56  ;;  %v6877_v11 = vrot.slane %v5700_v3, %v2019_v56 }
 0x4ca   : > { %v1977_v25 = vpop.permute.xlu0 %1976  ;;  %v5059_v36 = vpack.c.bf16 %v1967_v63, %v1963_v8  ;;  %v5061_v28 = vpack.c.bf16 %v1966_v55, %v1962_v31  ;;  %8682 = vst [vmem:[#allocation20_spill] sm:$0xff] %v6865_v33 }
 0x4cb   : > { %8683 = vst [vmem:[#allocation21_spill] sm:$0xff] %v6874_v47  ;;  %8684 = vst [vmem:[#allocation22_spill] sm:$0xff] %v6877_v11 }
 0x4cc   : > { %5060 = vmatprep.subr.bf16.mxu1 %v5059_v36 }
 0x4cd   : > { %5062 = vmatpush1.bf16.msra.mxu1 %v5061_v28  ;;  %v1987_v14 = vpop.permute.xlu1 %1986 }
 0x4ce   : > { %v2006_v45 = vsel %vm2000_vm0, %v1979_v58, %v1987_v14  ;;  %v1985_v15 = vpop.permute.xlu0 %1984 }
 0x4cf   : > { %v2038_v39 = vmul.f32 %v6857_v59, %v2006_v45  ;;  %v2005_v26 = vsel %vm2000_vm0, %v1977_v25, %v1985_v15 }
 0x4d0   : > { %v2034_v35 = vmul.f32 %v6857_v59, %v2005_v26 }
 0x4d1   : > { %v1971_v20 = vpop.permute.xlu1 %1970 }
 0x4d2   : > { %v2010_v1 = vsel %vm2000_vm0, %v1971_v20, %v1979_v58  ;;  %v1969_v57 = vpop.permute.xlu0 %1968  ;;  %v4991_v62 = vpack.c.bf16 %v2038_v39, %v2034_v35 }
 0x4d3   : > { %v2037_v12 = vmul.f32 %v6865_v33, %v2010_v1  ;;  %v2009_v19 = vsel %vm2000_vm0, %v1969_v57, %v1977_v25 }
 0x4d4   : > { %v2033_v0 = vmul.f32 %v6865_v33, %v2009_v19  ;;  %4992 = vmatprep.subr.bf16.mxu0 %v4991_v62 }
 0x4d5   : > { %v1995_v37 = vpop.permute.xlu1 %1994 }
 0x4d6   : > { %v2002_v38 = vsel %vm2000_vm0, %v1987_v14, %v1995_v37  ;;  %v2014_v42 = vsel %vm2000_vm0, %v1995_v37, %v1971_v20  ;;  %v1993_v55 = vpop.permute.xlu0 %1992  ;;  %v4993_v63 = vpack.c.bf16 %v2037_v12, %v2033_v0 }
 0x4d7   : > { %v2039_v9 = vmul.f32 %v6874_v47, %v2002_v38  ;;  %v2040_v2 = vmul.f32 %v6877_v11, %v2014_v42  ;;  %v2001_v3 = vsel %vm2000_vm0, %v1985_v15, %v1993_v55  ;;  %v2013_v56 = vsel %vm2000_vm0, %v1993_v55, %v1969_v57 }
 0x4d8   : > { %v2035_v46 = vmul.f32 %v6874_v47, %v2001_v3  ;;  %v2036_v31 = vmul.f32 %v6877_v11, %v2013_v56  ;;  %4994 = vmatpush1.bf16.msra.mxu0 %v4993_v63 }
 0x4d9   : > { %v1983_v8 = vpop.permute.xlu1 %1982 }
 0x4da   : > { %v1981_v58 = vpop.permute.xlu0 %1980  ;;  %v5063_v25 = vpack.c.bf16 %v2040_v2, %v2036_v31  ;;  %v5065_v36 = vpack.c.bf16 %v2039_v9, %v2035_v46  ;;  %v1460_v31 = vld [vmem:[%s5736_s18] sm:$0xff] }
 0x4dc   : > { %5064 = vmatprep.subr.bf16.mxu1 %v5063_v25 }
 0x4dd   : > { %5066 = vmatpush1.bf16.msra.mxu1 %v5065_v36  ;;  %v1991_v28 = vpop.permute.xlu1 %1990 }
 0x4de   : > { %v2008_v14 = vsel %vm2000_vm0, %v1983_v8, %v1991_v28  ;;  %v1989_v45 = vpop.permute.xlu0 %1988 }
 0x4df   : > { %v2046_v15 = vmul.f32 %v6857_v59, %v2008_v14  ;;  %v2007_v39 = vsel %vm2000_vm0, %v1981_v58, %v1989_v45  ;;  %v6921_v14 = vrot.slane %v5710_v5, %v6320_v43  ;;  %v6932_v5 = vrot.slane %v5705_v4, %v6320_v43 }
 0x4e0   : > { %v2042_v26 = vmul.f32 %v6857_v59, %v2007_v39  ;;  %v1467_v39 = vld [vmem:[%s5736_s18 + $0x38] sm:$0xff] }
 0x4e1   : > { %v1975_v35 = vpop.permute.xlu1 %1974  ;;  %8685 = vst [vmem:[#allocation23_spill] sm:$0xff] %v6921_v14  ;;  %8686 = vst [vmem:[#allocation24_spill] sm:$0xff] %v6932_v5 }
 0x4e2   : > { %v2012_v20 = vsel %vm2000_vm0, %v1975_v35, %v1983_v8  ;;  %v1973_v1 = vpop.permute.xlu0 %1972  ;;  %v4995_v57 = vpack.c.bf16 %v2046_v15, %v2042_v26 }
 0x4e3   : > { %v2045_v62 = vmul.f32 %v6865_v33, %v2012_v20  ;;  %v2011_v12 = vsel %vm2000_vm0, %v1973_v1, %v1981_v58  ;;  %v1464_v58 = vld [vmem:[%s5736_s18 + $0x20] sm:$0xff] }
 0x4e4   : > { %v2041_v19 = vmul.f32 %v6865_v33, %v2011_v12  ;;  %4996 = vmatprep.subr.bf16.mxu0 %v4995_v57 }
 0x4e5   : > { %v1999_v0 = vpop.permute.xlu1 %1998 }
 0x4e6   : > { %v2004_v37 = vsel %vm2000_vm0, %v1991_v28, %v1999_v0  ;;  %v2016_v38 = vsel %vm2000_vm0, %v1999_v0, %v1975_v35  ;;  %v1997_v42 = vpop.permute.xlu0 %1996  ;;  %v4997_v55 = vpack.c.bf16 %v2045_v62, %v2041_v19  ;;  %v1466_v62 = vld [vmem:[%s5736_s18 + $0x30] sm:$0xff] }
 0x4e7   : > { %v2047_v63 = vmul.f32 %v6874_v47, %v2004_v37  ;;  %v2048_v9 = vmul.f32 %v6877_v11, %v2016_v38  ;;  %v2003_v2 = vsel %vm2000_vm0, %v1989_v45, %v1997_v42  ;;  %v2015_v3 = vsel %vm2000_vm0, %v1997_v42, %v1973_v1  ;;  %v1463_v45 = vld [vmem:[%s5736_s18 + $0x18] sm:$0xff]  ;;  %v1470_v38 = vld [vmem:[%s5736_s18 + $0x50] sm:$0xff] }
 0x4e8   : > { %v2043_v56 = vmul.f32 %v6874_v47, %v2003_v2  ;;  %v2044_v46 = vmul.f32 %v6877_v11, %v2015_v3  ;;  %4998 = vmatpush1.bf16.msra.mxu0 %v4997_v55  ;;  %v6944_v55 = vrot.slane %v5716_v6, %v6320_v43  ;;  %v1469_v2 = vld [vmem:[%s5736_s18 + $0x48] sm:$0xff] }
 0x4e9   : > { %v2060_v8 = vpop.permute.xlu1 %2059 }
 0x4ea   : > { %v2058_v25 = vpop.permute.xlu0 %2057  ;;  %v5067_v36 = vpack.c.bf16 %v2048_v9, %v2044_v46  ;;  %v5069_v28 = vpack.c.bf16 %v2047_v63, %v2043_v56  ;;  %8687 = vst [vmem:[#allocation25_spill] sm:$0xff] %v6944_v55  ;;  %v6948_v63 = vrot.slane %v5721_v7, %v6320_v43 }
 0x4eb   : > { %2208 = vmatmul.mubr.f32.vlgmr.msra.gmra.mrb[0].mxu0 %v1460_v31 }
 0x4ec   : > { %5068 = vmatprep.subr.bf16.mxu1 %v5067_v36  ;;  %2213 = vmatprep.mubr.f32.mxu0 %v1464_v58  ;;  %8688 = vst [vmem:[#allocation26_spill] sm:$0xff] %v6948_v63 }
 0x4ed   : > { %5070 = vmatpush1.bf16.msra.mxu1 %v5069_v28  ;;  %v2068_v15 = vpop.permute.xlu1 %2067 }
 0x4ee   : > { %v2087_v26 = vsel %vm2081_vm1, %v2060_v8, %v2068_v15  ;;  %v2066_v35 = vpop.permute.xlu0 %2065 }
 0x4ef   : > { %v2119_v20 = vmul.f32 %v6921_v14, %v2087_v26  ;;  %v2086_v1 = vsel %vm2081_vm1, %v2058_v25, %v2066_v35  ;;  %2214 = vmatmul.mubr.f32.gmra.mrb[2].mxu0 %v1463_v45 }
 0x4f0   : > { %v2115_v57 = vmul.f32 %v6921_v14, %v2086_v1  ;;  %2386 = vmatmul.mubr.f32.vlgmr.msra.gmra.mrb[0].mxu1 %v1460_v31  ;;  %2219 = vmatprep.mubr.f32.mxu0 %v1467_v39 }
 0x4f1   : > { %v2052_v12 = vpop.permute.xlu1 %2051  ;;  %2391 = vmatprep.mubr.f32.mxu1 %v1464_v58 }
 0x4f2   : > { %v2091_v19 = vsel %vm2081_vm1, %v2052_v12, %v2060_v8  ;;  %v2050_v0 = vpop.permute.xlu0 %2049  ;;  %v4999_v37 = vpack.c.bf16 %v2119_v20, %v2115_v57 }
 0x4f3   : > { %v2118_v42 = vmul.f32 %v6932_v5, %v2091_v19  ;;  %v2090_v4 = vsel %vm2081_vm1, %v2050_v0, %v2058_v25  ;;  %2220 = vmatmul.mubr.f32.gmra.mrb[4].mxu0 %v1466_v62 }
 0x4f4   : > { %v2114_v9 = vmul.f32 %v6932_v5, %v2090_v4  ;;  %5000 = vmatprep.subr.bf16.mxu0 %v4999_v37  ;;  %2392 = vmatmul.mubr.f32.gmra.mrb[2].mxu1 %v1463_v45  ;;  %v8573_v45 = vmov 0.0  }
 0x4f5   : > { %v2076_v3 = vpop.permute.xlu1 %2075  ;;  %2225 = vmatprep.mubr.f32.mxu0 %v1470_v38  ;;  %2397 = vmatprep.mubr.f32.mxu1 %v1467_v39 }
 0x4f6   : > { %v5001_v56 = vpack.c.bf16 %v2118_v42, %v2114_v9  ;;  %v2083_v46 = vsel %vm2081_vm1, %v2068_v15, %v2076_v3  ;;  %v2095_v6 = vsel %vm2081_vm1, %v2076_v3, %v2052_v12  ;;  %v2074_v31 = vpop.permute.xlu0 %2073 }
 0x4f7   : > { %v2120_v7 = vmul.f32 %v6944_v55, %v2083_v46  ;;  %v2121_v43 = vmul.f32 %v6948_v63, %v2095_v6  ;;  %v2082_v8 = vsel %vm2081_vm1, %v2066_v35, %v2074_v31  ;;  %v2094_v58 = vsel %vm2081_vm1, %v2074_v31, %v2050_v0  ;;  %2226 = vmatmul.mubr.f32.gmra.mrb[6].mxu0 %v1469_v2 }
 0x4f8   : > { %v2116_v25 = vmul.f32 %v6944_v55, %v2082_v8  ;;  %v2117_v36 = vmul.f32 %v6948_v63, %v2094_v58  ;;  %5002 = vmatpush1.bf16.msra.mxu0 %v5001_v56  ;;  %2398 = vmatmul.mubr.f32.gmra.mrb[4].mxu1 %v1466_v62 }
 0x4f9   : > { %v2064_v28 = vpop.permute.xlu1 %2063  ;;  %2296 = vmatprep.mubr.f32.mxu0 %v8573_v45  ;;  %2403 = vmatprep.mubr.f32.mxu1 %v1470_v38 }
 0x4fa   : > { %v5073_v15 = vpack.c.bf16 %v2120_v7, %v2116_v25  ;;  %v2062_v39 = vpop.permute.xlu0 %2061  ;;  %v5071_v26 = vpack.c.bf16 %v2121_v43, %v2117_v36  ;;  %v1462_v36 = vld [vmem:[%s5736_s18 + $0x10] sm:$0xff] }
 0x4fc   : > { %5072 = vmatprep.subr.bf16.mxu1 %v5071_v26  ;;  %2404 = vmatmul.mubr.f32.gmra.mrb[6].mxu1 %v1469_v2  ;;  %v1468_v26 = vld [vmem:[%s5736_s18 + $0x40] sm:$0xff] }
 0x4fd   : > { %5074 = vmatpush1.bf16.msra.mxu1 %v5073_v15  ;;  %v2072_v35 = vpop.permute.xlu1 %2071  ;;  %2474 = vmatprep.mubr.f32.mxu1 %v8573_v45 }
 0x4fe   : > { %v2089_v20 = vsel %vm2081_vm1, %v2064_v28, %v2072_v35  ;;  %v2070_v1 = vpop.permute.xlu0 %2069 }
 0x4ff   : > { %v2127_v57 = vmul.f32 %v6921_v14, %v2089_v20  ;;  %v2088_v62 = vsel %vm2081_vm1, %v2062_v39, %v2070_v1  ;;  %v5584_v20 = vmov 0  }
 0x500   : > { %v2123_v12 = vmul.f32 %v6921_v14, %v2088_v62  ;;  %5410 = vset.pattern.permute.xlu1 %v5584_v20  ;;  %5411 = vset.pattern.permute.xlu0 %v5584_v20  ;;  %v1476_v20 = vld [vmem:[%s5731_s16] sm:$0xff] }
 0x501   : > { %v2056_v19 = vpop.permute.xlu1 %2055 }
 0x502   : > { %v2093_v0 = vsel %vm2081_vm1, %v2056_v19, %v2064_v28  ;;  %v2054_v37 = vpop.permute.xlu0 %2053  ;;  %v5003_v38 = vpack.c.bf16 %v2127_v57, %v2123_v12 }
 0x503   : > { %v2126_v42 = vmul.f32 %v6932_v5, %v2093_v0  ;;  %v2092_v4 = vsel %vm2081_vm1, %v2054_v37, %v2062_v39  ;;  %v1465_v39 = vld [vmem:[%s5736_s18 + $0x28] sm:$0xff] }
 0x504   : > { %v2122_v9 = vmul.f32 %v6932_v5, %v2092_v4  ;;  %5004 = vmatprep.subr.bf16.mxu0 %v5003_v38 }
 0x505   : > { %v2080_v2 = vpop.permute.xlu1 %2079 }
 0x506   : > { %v5005_v3 = vpack.c.bf16 %v2126_v42, %v2122_v9  ;;  %v2085_v56 = vsel %vm2081_vm1, %v2072_v35, %v2080_v2  ;;  %v2097_v46 = vsel %vm2081_vm1, %v2080_v2, %v2056_v19  ;;  %v2078_v6 = vpop.permute.xlu0 %2077  ;;  %v1471_v35 = vld [vmem:[%s5736_s18 + $0x58] sm:$0xff] }
 0x507   : > { %v2128_v31 = vmul.f32 %v6944_v55, %v2085_v56  ;;  %v2129_v7 = vmul.f32 %v6948_v63, %v2097_v46  ;;  %v2084_v43 = vsel %vm2081_vm1, %v2070_v1, %v2078_v6  ;;  %v2096_v8 = vsel %vm2081_vm1, %v2078_v6, %v2054_v37 }
 0x508   : > { %v2124_v58 = vmul.f32 %v6944_v55, %v2084_v43  ;;  %v2125_v25 = vmul.f32 %v6948_v63, %v2096_v8  ;;  %5006 = vmatpush1.bf16.msra.mxu0 %v5005_v3 }
 0x50a   : > { %v5077_v28 = vpack.c.bf16 %v2128_v31, %v2124_v58  ;;  %v5075_v15 = vpack.c.bf16 %v2129_v7, %v2125_v25 }
 0x50b   : > { %4759 = vmatmul.mubr.msk.f32.vlgmr.msra.gmra.mrb[0].mxu0 %vm2130_vm2, %v1462_v36 }
 0x50c   : > { %5076 = vmatprep.subr.bf16.mxu1 %v5075_v15  ;;  %2302 = vmatprep.mubr.f32.mxu0 %v8573_v45 }
 0x50d   : > { %5078 = vmatpush1.bf16.msra.mxu1 %v5077_v28 }
 0x50f   : > { %4760 = vmatmul.mubr.msk.f32.gmra.mrb[2].mxu0 %vm2130_vm2, %v1465_v39 }
 0x510   : > { %4763 = vmatmul.mubr.msk.f32.vlgmr.msra.gmra.mrb[0].mxu1 %vm2130_vm2, %v1462_v36  ;;  %2308 = vmatprep.mubr.f32.mxu0 %v8573_v45 }
 0x511   : > { %2480 = vmatprep.mubr.f32.mxu1 %v8573_v45 }
 0x513   : > { %4761 = vmatmul.mubr.msk.f32.gmra.mrb[4].mxu0 %vm2130_vm2, %v1468_v26 }
 0x514   : > { %4764 = vmatmul.mubr.msk.f32.gmra.mrb[2].mxu1 %vm2130_vm2, %v1465_v39  ;;  %2314 = vmatprep.mubr.f32.mxu0 %v8573_v45 }
 0x515   : > { %2486 = vmatprep.mubr.f32.mxu1 %v8573_v45 }
 0x517   : > { %4762 = vmatmul.mubr.msk.f32.gmra.mrb[6].mxu0 %vm2130_vm2, %v1471_v35 }
 0x518   : > { %4765 = vmatmul.mubr.msk.f32.gmra.mrb[4].mxu1 %vm2130_vm2, %v1468_v26 }
 0x519   : > { %2492 = vmatprep.mubr.f32.mxu1 %v8573_v45 }
 0x51c   : > { %4766 = vmatmul.mubr.msk.f32.gmra.mrb[6].mxu1 %vm2130_vm2, %v1471_v35 }
 0x5de   : > { %v2298_v1 = vpop.f32.mrb[0].mxu0 }
 0x5df   : > { %v2300_v57 = vpop.f32.mrb[1].mxu0 }
 0x5e0   : > { %v2499_v62 = vadd.f32 %v2300_v57, %v2298_v1 }
 0x5e2   : > { %v2304_v12 = vpop.f32.mrb[2].mxu0 }
 0x5e3   : > { %v2306_v19 = vpop.f32.mrb[3].mxu0  ;;  %v2476_v0 = vpop.f32.mrb[0].mxu1 }
 0x5e4   : > { %v2504_v37 = vadd.f32 %v2306_v19, %v2304_v12  ;;  %v2500_v38 = vadd.f32 %v2499_v62, %v2476_v0  ;;  %v2478_v42 = vpop.f32.mrb[1].mxu1  ;;  %v1477_v62 = vld [vmem:[%s5731_s16 + $0x8] sm:$0xff] }
 0x5e6   : > { %v2501_v4 = vadd.f32 %v2500_v38, %v2478_v42  ;;  %v2310_v9 = vpop.f32.mrb[4].mxu0  ;;  %v1479_v38 = vld [vmem:[%s5731_s16 + $0x18] sm:$0xff] }
 0x5e7   : > { %v2312_v2 = vpop.f32.mrb[5].mxu0  ;;  %v2482_v3 = vpop.f32.mrb[2].mxu1 }
 0x5e8   : > { %v2509_v56 = vadd.f32 %v2312_v2, %v2310_v9  ;;  %v2505_v46 = vadd.f32 %v2504_v37, %v2482_v3  ;;  %v2484_v6 = vpop.f32.mrb[3].mxu1  ;;  %2502 = vadd.xlane.f32.xlu0 %v2501_v4  ;;  %v1478_v37 = vld [vmem:[%s5731_s16 + $0x10] sm:$0xff] }
 0x5ea   : > { %v2506_v31 = vadd.f32 %v2505_v46, %v2484_v6  ;;  %v2316_v7 = vpop.f32.mrb[6].mxu0 }
 0x5eb   : > { %v2318_v43 = vpop.f32.mrb[7].mxu0  ;;  %v2488_v8 = vpop.f32.mrb[4].mxu1 }
 0x5ec   : > { %v2514_v58 = vadd.f32 %v2318_v43, %v2316_v7  ;;  %v2510_v25 = vadd.f32 %v2509_v56, %v2488_v8  ;;  %v2490_v36 = vpop.f32.mrb[5].mxu1  ;;  %2507 = vadd.xlane.f32.xlu1 %v2506_v31 }
 0x5ee   : > { %v2511_v28 = vadd.f32 %v2510_v25, %v2490_v36 }
 0x5ef   : > { %v2494_v15 = vpop.f32.mrb[6].mxu1 }
 0x5f0   : > { %v2515_v39 = vadd.f32 %v2514_v58, %v2494_v15  ;;  %v2496_v26 = vpop.f32.mrb[7].mxu1  ;;  %2512 = vadd.xlane.f32.xlu0 %v2511_v28 }
 0x5f2   : > { %v2516_v35 = vadd.f32 %v2515_v39, %v2496_v26 }
 0x5f4   : > { %2517 = vadd.xlane.f32.xlu0 %v2516_v35 }
 0x5fd   : > { %2629 = vperm.xlu1 %5410, %v1476_v20  }
 0x601   : > { %2634 = vperm.xlu1 %5410, %v1477_v62  }
 0x605   : > { %2639 = vperm.xlu1 %5410, %v1478_v37  }
 0x609   : > { %2644 = vperm.xlu1 %5410, %v1479_v38  }
 0x675   : > { %v2503_v4 = vpop.xlane.xlu0 %2502 }
 0x676   : > { %v2519_v56 = vmul.f32 0.001953125, %v2503_v4 }
 0x678   : > { %v7012_v46 = vsub.f32 %v2298_v1, %v2519_v56  ;;  %v7014_v31 = vsub.f32 %v2300_v57, %v2519_v56  ;;  %v7016_v25 = vsub.f32 %v2476_v0, %v2519_v56  ;;  %v7018_v28 = vsub.f32 %v2478_v42, %v2519_v56 }
 0x679   : > { %v2508_v58 = vpop.xlane.xlu1 %2507 }
 0x67a   : > { %v2520_v39 = vmul.f32 0.001953125, %v2508_v58  ;;  %v2539_v35 = vmul.f32 %v7012_v46, %v7012_v46  ;;  %v2540_v20 = vmul.f32 %v7014_v31, %v7014_v31  ;;  %v2541_v1 = vmul.f32 %v7016_v25, %v7016_v25 }
 0x67b   : > { %v2542_v42 = vmul.f32 %v7018_v28, %v7018_v28 }
 0x67c   : > { %v7024_v62 = vsub.f32 %v2304_v12, %v2520_v39  ;;  %v7026_v37 = vsub.f32 %v2306_v19, %v2520_v39  ;;  %v2555_v57 = vadd.f32 %v2540_v20, %v2539_v35  ;;  %v7030_v0 = vsub.f32 %v2482_v3, %v2520_v39 }
 0x67d   : > { %v2513_v38 = vpop.xlane.xlu0 %2512  ;;  %v7038_v19 = vsub.f32 %v2484_v6, %v2520_v39 }
 0x67e   : > { %v2521_v4 = vmul.f32 0.001953125, %v2513_v38  ;;  %v2556_v56 = vadd.f32 %v2555_v57, %v2541_v1  ;;  %v2543_v58 = vmul.f32 %v7024_v62, %v7024_v62  ;;  %v2544_v12 = vmul.f32 %v7026_v37, %v7026_v37 }
 0x67f   : > { %v2545_v38 = vmul.f32 %v7030_v0, %v7030_v0 }
 0x680   : > { %v7040_v45 = vsub.f32 %v2310_v9, %v2521_v4  ;;  %v7042_v41 = vsub.f32 %v2312_v2, %v2521_v4  ;;  %v7044_v3 = vsub.f32 %v2488_v8, %v2521_v4  ;;  %v2557_v35 = vadd.f32 %v2556_v56, %v2542_v42 }
 0x681   : > { %v2518_v20 = vpop.xlane.xlu0 %2517  ;;  %v2560_v1 = vadd.f32 %v2544_v12, %v2543_v58  ;;  %v7048_v57 = vsub.f32 %v2490_v36, %v2521_v4  ;;  %v2546_v2 = vmul.f32 %v7038_v19, %v7038_v19 }
 0x682   : > { %v2522_v21 = vmul.f32 0.001953125, %v2518_v20  ;;  %2558 = vadd.xlane.f32.xlu1 %v2557_v35  ;;  %v2547_v6 = vmul.f32 %v7040_v45, %v7040_v45  ;;  %v2548_v9 = vmul.f32 %v7042_v41, %v7042_v41  ;;  %v2549_v39 = vmul.f32 %v7044_v3, %v7044_v3 }
 0x683   : > { %v2561_v8 = vadd.f32 %v2560_v1, %v2545_v38  ;;  %v2550_v12 = vmul.f32 %v7048_v57, %v7048_v57 }
 0x684   : > { %v7058_v42 = vsub.f32 %v2316_v7, %v2522_v21  ;;  %v7060_v56 = vsub.f32 %v2318_v43, %v2522_v21  ;;  %v7062_v36 = vsub.f32 %v2494_v15, %v2522_v21  ;;  %v2565_v4 = vadd.f32 %v2548_v9, %v2547_v6 }
 0x685   : > { %v2562_v58 = vadd.f32 %v2561_v8, %v2546_v2  ;;  %v7066_v20 = vsub.f32 %v2496_v26, %v2522_v21  ;;  %v2630_v21 = vpop.permute.xlu1 %2629 }
 0x686   : > { %v2566_v35 = vadd.f32 %v2565_v4, %v2549_v39  ;;  %v2551_v38 = vmul.f32 %v7058_v42, %v7058_v42  ;;  %v2552_v1 = vmul.f32 %v7060_v56, %v7060_v56  ;;  %v2553_v43 = vmul.f32 %v7062_v36, %v7062_v36 }
 0x687   : > { %2563 = vadd.xlane.f32.xlu0 %v2562_v58  ;;  %v2554_v6 = vmul.f32 %v7066_v20, %v7066_v20 }
 0x688   : > { %v2567_v7 = vadd.f32 %v2566_v35, %v2550_v12  ;;  %v2570_v15 = vadd.f32 %v2552_v1, %v2551_v38 }
 0x689   : > { %v2635_v26 = vpop.permute.xlu1 %2634 }
 0x68a   : > { %2568 = vadd.xlane.f32.xlu1 %v2567_v7  ;;  %v2571_v9 = vadd.f32 %v2570_v15, %v2553_v43 }
 0x68c   : > { %v2572_v2 = vadd.f32 %v2571_v9, %v2554_v6 }
 0x68d   : > { %v7076_v8 = vpop.permute.xlu1 %2639 }
 0x68e   : > { %2573 = vadd.xlane.f32.xlu0 %v2572_v2  ;;  %v1472_v2 = vld [vmem:[%s5726_s28] sm:$0xff] }
 0x691   : > { %v7078_v39 = vpop.permute.xlu1 %2644 }
 0x70f   : > { %v2559_v4 = vpop.xlane.xlu1 %2558 }
 0x710   : > { %v2575_v58 = vmul.f32 0.001953125, %v2559_v4  ;;  %v1473_v4 = vld [vmem:[%s5726_s28 + $0x8] sm:$0xff] }
 0x712   : > { %v2579_v12 = vadd.f32 1e-05, %v2575_v58 }
 0x714   : > { %5413 = vrsqrt.f32 %v2579_v12  ;;  %v2564_v35 = vpop.xlane.xlu0 %2563 }
 0x715   : > { %v2576_v38 = vmul.f32 0.001953125, %v2564_v35  ;;  %v1474_v35 = vld [vmem:[%s5726_s28 + $0x10] sm:$0xff] }
 0x717   : > { %v2580_v1 = vadd.f32 1e-05, %v2576_v38  ;;  %v2569_v7 = vpop.xlane.xlu1 %2568 }
 0x718   : > { %v2577_v43 = vmul.f32 0.001953125, %v2569_v7  ;;  %v1475_v7 = vld [vmem:[%s5726_s28 + $0x18] sm:$0xff] }
 0x719   : > { %5415 = vrsqrt.f32 %v2580_v1 }
 0x71a   : > { %v2581_v15 = vadd.f32 1e-05, %v2577_v43 }
 0x71b   : > { %v2574_v6 = vpop.xlane.xlu0 %2573 }
 0x71c   : > { %5417 = vrsqrt.f32 %v2581_v15  ;;  %v2578_v9 = vmul.f32 0.001953125, %v2574_v6 }
 0x71e   : > { %v5414_v50 = vpop.eup %5413  ;;  %v2582_v32 = vadd.f32 1e-05, %v2578_v9 }
 0x71f   : > { %v2587_v40 = vmul.f32 %v5414_v50, %v1472_v2 }
 0x720   : > { %5419 = vrsqrt.f32 %v2582_v32 }
 0x721   : > { %2593 = vperm.xlu1 %5410, %v2587_v40  }
 0x723   : > { %v5416_v58 = vpop.eup %5415 }
 0x724   : > { %v2588_v12 = vmul.f32 %v5416_v58, %v1473_v4 }
 0x726   : > { %v5418_v38 = vpop.eup %5417  ;;  %2598 = vperm.xlu0 %5411, %v2588_v12  }
 0x727   : > { %v2589_v34 = vmul.f32 %v5418_v38, %v1474_v35 }
 0x729   : > { %2603 = vperm.xlu1 %5410, %v2589_v34  }
 0x72a   : > { %v5420_v1 = vpop.eup %5419 }
 0x72b   : > { %v2590_v43 = vmul.f32 %v5420_v1, %v1475_v7 }
 0x72d   : > { %2608 = vperm.xlu1 %5410, %v2590_v43  }
 0x7a0   : > { %v2594_v15 = vpop.permute.xlu1 %2593 }
 0x7a1   : > { %v2611_v6 = vmul.f32 %v2594_v15, %v7012_v46  ;;  %v2612_v9 = vmul.f32 %v2594_v15, %v7014_v31  ;;  %v2613_v32 = vmul.f32 %v2594_v15, %v7016_v25  ;;  %v2614_v40 = vmul.f32 %v2594_v15, %v7018_v28 }
 0x7a3   : > { %v2647_v50 = vadd.f32 %v2630_v21, %v2611_v6  ;;  %v2648_v2 = vadd.f32 %v2630_v21, %v2612_v9  ;;  %v2650_v4 = vadd.f32 %v2630_v21, %v2614_v40  ;;  %v2649_v58 = vadd.f32 %v2630_v21, %v2613_v32 }
 0x7a5   : > { %v2599_v12 = vpop.permute.xlu0 %2598  ;;  %v2679_v35 = vmul.f32 0.70710677, %v2647_v50  ;;  %v2680_v38 = vmul.f32 0.70710677, %v2648_v2  ;;  %v2682_v7 = vmul.f32 0.70710677, %v2650_v4 }
 0x7a6   : > { %v2615_v34 = vmul.f32 %v2599_v12, %v7024_v62  ;;  %v2616_v1 = vmul.f32 %v2599_v12, %v7026_v37  ;;  %v2618_v46 = vmul.f32 %v2599_v12, %v7038_v19  ;;  %v2617_v31 = vmul.f32 %v2599_v12, %v7030_v0 }
 0x7a7   : > { %5421 = verf.f32 %v2679_v35  ;;  %v2681_v43 = vmul.f32 0.70710677, %v2649_v58  ;;  %v2663_v40 = vmul.f32 0.5, %v2647_v50  ;;  %v2664_v0 = vmul.f32 0.5, %v2648_v2 }
 0x7a8   : > { %v2651_v25 = vadd.f32 %v2635_v26, %v2615_v34  ;;  %5423 = verf.f32 %v2680_v38  ;;  %v2652_v28 = vadd.f32 %v2635_v26, %v2616_v1  ;;  %v2654_v15 = vadd.f32 %v2635_v26, %v2618_v46 }
 0x7a9   : > { %5425 = verf.f32 %v2682_v7  ;;  %v2653_v21 = vadd.f32 %v2635_v26, %v2617_v31 }
 0x7aa   : > { %v2683_v6 = vmul.f32 0.70710677, %v2651_v25  ;;  %v2684_v9 = vmul.f32 0.70710677, %v2652_v28  ;;  %v2686_v32 = vmul.f32 0.70710677, %v2654_v15 }
 0x7ab   : > { %v2685_v62 = vmul.f32 0.70710677, %v2653_v21  ;;  %v2667_v31 = vmul.f32 0.5, %v2651_v25  ;;  %v2665_v25 = vmul.f32 0.5, %v2649_v58  ;;  %v2669_v58 = vmul.f32 0.5, %v2653_v21 }
 0x7ac   : > { %5427 = verf.f32 %v2683_v6 }
 0x7ad   : > { %5429 = verf.f32 %v2681_v43 }
 0x7ae   : > { %5431 = verf.f32 %v2684_v9  ;;  %v2666_v9 = vmul.f32 0.5, %v2650_v4 }
 0x7af   : > { %5433 = verf.f32 %v2686_v32 }
 0x7b0   : > { %5435 = verf.f32 %v2685_v62 }
 0x7b1   : > { %v5422_v37 = vpop.eup %5421 }
 0x7b2   : > { %v5424_v19 = vpop.eup %5423  ;;  %v2711_v35 = vadd.f32 1.0, %v5422_v37 }
 0x7b3   : > { %v2712_v12 = vadd.f32 1.0, %v5424_v19  ;;  %v5426_v38 = vpop.eup %5425  ;;  %v2668_v19 = vmul.f32 0.5, %v2652_v28 }
 0x7b4   : > { %v7092_v34 = vmul.f32 %v2711_v35, %v2663_v40  ;;  %v2714_v7 = vadd.f32 1.0, %v5426_v38 }
 0x7b5   : > { %v7094_v26 = vmul.f32 %v2712_v12, %v2664_v0  ;;  %v2670_v12 = vmul.f32 0.5, %v2654_v15  ;;  %v2604_v15 = vpop.permute.xlu1 %2603 }
 0x7b6   : > { %8689 = vst [vmem:[#allocation27_spill] sm:$0xff] %v7092_v34  ;;  %v5428_v1 = vpop.eup %5427  ;;  %2763 = vrot.lane.b32.xlu1 %v7092_v34, %s5575_s2  ;;  %v7102_v37 = vmul.f32 %v2714_v7, %v2666_v9  ;;  %v2619_v21 = vmul.f32 %v2604_v15, %v7040_v45  ;;  %v2620_v7 = vmul.f32 %v2604_v15, %v7042_v41 }
 0x7b7   : > { %8690 = vst [vmem:[#allocation28_spill] sm:$0xff] %v7094_v26  ;;  %v5430_v46 = vpop.eup %5429  ;;  %v2715_v43 = vadd.f32 1.0, %v5428_v1  ;;  %2771 = vrot.lane.b32.xlu0 %v7094_v26, %s5575_s2  ;;  %v2622_v45 = vmul.f32 %v2604_v15, %v7048_v57 }
 0x7b8   : > { %v5432_v6 = vpop.eup %5431  ;;  %v2713_v62 = vadd.f32 1.0, %v5430_v46  ;;  %8692 = vst [vmem:[#allocation30_spill] sm:$0xff] %v7102_v37  ;;  %v2655_v46 = vadd.f32 %v7076_v8, %v2619_v21 }
 0x7b9   : > { %v2716_v50 = vadd.f32 1.0, %v5432_v6  ;;  %v7100_v2 = vmul.f32 %v2715_v43, %v2667_v31  ;;  %v5434_v32 = vpop.eup %5433  ;;  %v2609_v31 = vpop.permute.xlu1 %2608  ;;  %v2656_v6 = vadd.f32 %v7076_v8, %v2620_v7 }
 0x7ba   : > { %v2718_v40 = vadd.f32 1.0, %v5434_v32  ;;  %v5436_v35 = vpop.eup %5435  ;;  %v7110_v0 = vmul.f32 %v2713_v62, %v2665_v25  ;;  %v2623_v43 = vmul.f32 %v2609_v31, %v7058_v42  ;;  %v2687_v9 = vmul.f32 0.70710677, %v2655_v46 }
 0x7bb   : > { %8691 = vst [vmem:[#allocation29_spill] sm:$0xff] %v7100_v2  ;;  %2765 = vrot.lane.b32.xlu1 %v7100_v2, %s5575_s2  ;;  %2787 = vrot.lane.b32.xlu0 %v7102_v37, %s5575_s2  ;;  %v7108_v4 = vmul.f32 %v2716_v50, %v2668_v19  ;;  %v2717_v28 = vadd.f32 1.0, %v5436_v35  ;;  %v2621_v50 = vmul.f32 %v2604_v15, %v7044_v3  ;;  %v2688_v57 = vmul.f32 0.70710677, %v2656_v6 }
 0x7bc   : > { %8694 = vst [vmem:[#allocation32_spill] sm:$0xff] %v7110_v0  ;;  %v7116_v38 = vmul.f32 %v2718_v40, %v2670_v12  ;;  %v2624_v41 = vmul.f32 %v2609_v31, %v7060_v56  ;;  %v7223_v32 = vadd.f32 %v7078_v39, %v2623_v43  ;;  %v7228_v42 = vadd.f32 %v7076_v8, %v2622_v45 }
 0x7bd   : > { %8693 = vst [vmem:[#allocation31_spill] sm:$0xff] %v7108_v4  ;;  %v7122_v1 = vmul.f32 %v2717_v28, %v2669_v58  ;;  %5437 = verf.f32 %v2687_v9  ;;  %v7231_v62 = vadd.f32 %v7076_v8, %v2621_v50  ;;  %v2626_v3 = vmul.f32 %v2609_v31, %v7066_v20 }
 0x7be   : > { %8695 = vst [vmem:[#allocation33_spill] sm:$0xff] %v7116_v38  ;;  %v7237_v56 = vadd.f32 %v7078_v39, %v2624_v41  ;;  %v2691_v19 = vmul.f32 0.70710677, %v7223_v32  ;;  %v2690_v25 = vmul.f32 0.70710677, %v7228_v42  ;;  %5439 = verf.f32 %v2688_v57 }
 0x7bf   : > { %2773 = vrot.lane.b32.xlu1 %v7108_v4, %s5575_s2  ;;  %2779 = vrot.lane.b32.xlu0 %v7110_v0, %s5575_s2  ;;  %8696 = vst [vmem:[#allocation34_spill] sm:$0xff] %v7122_v1  ;;  %v2689_v40 = vmul.f32 0.70710677, %v7231_v62  ;;  %v2625_v8 = vmul.f32 %v2609_v31, %v7062_v36  ;;  %v7248_v20 = vadd.f32 %v7078_v39, %v2626_v3  ;;  %v2671_v45 = vmul.f32 0.5, %v2655_v46 }
 0x7c0   : > { %v2692_v35 = vmul.f32 0.70710677, %v7237_v56  ;;  %5441 = verf.f32 %v2691_v19 }
 0x7c1   : > { %5443 = verf.f32 %v2690_v25  ;;  %v7256_v15 = vadd.f32 %v7078_v39, %v2625_v8  ;;  %v2694_v36 = vmul.f32 0.70710677, %v7248_v20 }
 0x7c2   : > { %5445 = verf.f32 %v2689_v40 }
 0x7c3   : > { %2789 = vrot.lane.b32.xlu1 %v7116_v38, %s5575_s2  ;;  %2827 = vrot.lane.b32.xlu0 %v7092_v34, %s5576_s15  ;;  %5447 = verf.f32 %v2692_v35  ;;  %v2693_v9 = vmul.f32 0.70710677, %v7256_v15  ;;  %v2672_v35 = vmul.f32 0.5, %v2656_v6  ;;  %v2675_v6 = vmul.f32 0.5, %v7223_v32 }
 0x7c4   : > { %5449 = verf.f32 %v2694_v36 }
 0x7c5   : > { %5451 = verf.f32 %v2693_v9 }
 0x7c7   : > { %2781 = vrot.lane.b32.xlu1 %v7122_v1, %s5575_s2  ;;  %2835 = vrot.lane.b32.xlu0 %v7094_v26, %s5576_s15  ;;  %v5438_v58 = vpop.eup %5437 }
 0x7c8   : > { %v2719_v7 = vadd.f32 1.0, %v5438_v58  ;;  %v5440_v43 = vpop.eup %5439 }
 0x7c9   : > { %v2720_v57 = vadd.f32 1.0, %v5440_v43 }
 0x7ca   : > { %v5442_v41 = vpop.eup %5441  ;;  %v7268_v3 = vmul.f32 %v2719_v7, %v2671_v45 }
 0x7cb   : > { %2829 = vrot.lane.b32.xlu1 %v7100_v2, %s5576_s15  ;;  %2851 = vrot.lane.b32.xlu0 %v7102_v37, %s5576_s15  ;;  %v5444_v40 = vpop.eup %5443  ;;  %v2723_v7 = vadd.f32 1.0, %v5442_v41 }
 0x7cc   : > { %v5446_v36 = vpop.eup %5445 }
 0x7cd   : > { %v2721_v32 = vadd.f32 1.0, %v5446_v36  ;;  %v2676_v36 = vmul.f32 0.5, %v7237_v56 }
 0x7cf   : > { %2837 = vrot.lane.b32.xlu1 %v7108_v4, %s5576_s15  ;;  %2843 = vrot.lane.b32.xlu0 %v7110_v0, %s5576_s15 }
 0x7d3   : > { %2853 = vrot.lane.b32.xlu1 %v7116_v38, %s5576_s15  ;;  %2891 = vrot.lane.b32.xlu0 %v7092_v34, %s5577_s8 }
 0x7d7   : > { %2845 = vrot.lane.b32.xlu1 %v7122_v1, %s5576_s15  ;;  %2899 = vrot.lane.b32.xlu0 %v7094_v26, %s5577_s8 }
 0x7db   : > { %2893 = vrot.lane.b32.xlu1 %v7100_v2, %s5577_s8  ;;  %2915 = vrot.lane.b32.xlu0 %v7102_v37, %s5577_s8 }
 0x7df   : > { %2901 = vrot.lane.b32.xlu1 %v7108_v4, %s5577_s8  ;;  %2907 = vrot.lane.b32.xlu0 %v7110_v0, %s5577_s8 }
 0x7e3   : > { %2917 = vrot.lane.b32.xlu1 %v7116_v38, %s5577_s8  ;;  %2955 = vrot.lane.b32.xlu0 %v7092_v34, %s5578_s17 }
 0x7e7   : > { %2909 = vrot.lane.b32.xlu1 %v7122_v1, %s5577_s8  ;;  %2963 = vrot.lane.b32.xlu0 %v7094_v26, %s5578_s17 }
 0x7eb   : > { %2957 = vrot.lane.b32.xlu1 %v7100_v2, %s5578_s17  ;;  %2979 = vrot.lane.b32.xlu0 %v7102_v37, %s5578_s17 }
 0x7ef   : > { %2965 = vrot.lane.b32.xlu1 %v7108_v4, %s5578_s17  ;;  %2971 = vrot.lane.b32.xlu0 %v7110_v0, %s5578_s17 }
 0x7f3   : > { %2981 = vrot.lane.b32.xlu1 %v7116_v38, %s5578_s17  ;;  %3027 = vrot.lane.b32.xlu0 %v7094_v26, %s5579_s7 }
 0x7f7   : > { %2973 = vrot.lane.b32.xlu1 %v7122_v1, %s5578_s17  ;;  %3035 = vrot.lane.b32.xlu0 %v7110_v0, %s5579_s7 }
 0x7fb   : > { %3029 = vrot.lane.b32.xlu1 %v7108_v4, %s5579_s7  ;;  %3019 = vrot.lane.b32.xlu0 %v7092_v34, %s5579_s7 }
 0x7ff   : > { %3037 = vrot.lane.b32.xlu1 %v7122_v1, %s5579_s7  ;;  %3043 = vrot.lane.b32.xlu0 %v7102_v37, %s5579_s7 }
 0x803   : > { %3021 = vrot.lane.b32.xlu1 %v7100_v2, %s5579_s7  ;;  %3091 = vrot.lane.b32.xlu0 %v7094_v26, %s5580_s9 }
 0x807   : > { %3045 = vrot.lane.b32.xlu1 %v7116_v38, %s5579_s7  ;;  %3099 = vrot.lane.b32.xlu0 %v7110_v0, %s5580_s9 }
 0x80b   : > { %3093 = vrot.lane.b32.xlu1 %v7108_v4, %s5580_s9  ;;  %3083 = vrot.lane.b32.xlu0 %v7092_v34, %s5580_s9 }
 0x80f   : > { %3101 = vrot.lane.b32.xlu1 %v7122_v1, %s5580_s9  ;;  %3107 = vrot.lane.b32.xlu0 %v7102_v37, %s5580_s9 }
 0x813   : > { %3085 = vrot.lane.b32.xlu1 %v7100_v2, %s5580_s9  ;;  %3155 = vrot.lane.b32.xlu0 %v7094_v26, %s5581_s25 }
 0x817   : > { %3109 = vrot.lane.b32.xlu1 %v7116_v38, %s5580_s9  ;;  %3163 = vrot.lane.b32.xlu0 %v7110_v0, %s5581_s25 }
 0x81b   : > { %3157 = vrot.lane.b32.xlu1 %v7108_v4, %s5581_s25  ;;  %3147 = vrot.lane.b32.xlu0 %v7092_v34, %s5581_s25 }
 0x81f   : > { %3165 = vrot.lane.b32.xlu1 %v7122_v1, %s5581_s25  ;;  %3171 = vrot.lane.b32.xlu0 %v7102_v37, %s5581_s25 }
 0x823   : > { %3149 = vrot.lane.b32.xlu1 %v7100_v2, %s5581_s25  ;;  %3219 = vrot.lane.b32.xlu0 %v7094_v26, %s5582_s23 }
 0x827   : > { %3173 = vrot.lane.b32.xlu1 %v7116_v38, %s5581_s25  ;;  %3227 = vrot.lane.b32.xlu0 %v7110_v0, %s5582_s23  ;;  %v2722_v0 = vadd.f32 1.0, %v5444_v40 }
 0x828   : > { %v2764_v12 = vpop.permute.xlu1 %2763 }
 0x829   : > { %v2772_v28 = vpop.permute.xlu0 %2771 }
 0x82a   : > { %v2803_v39 = vsel %vm1514_vm10, %v2764_v12, %v2772_v28 }
 0x82b   : > { %3221 = vrot.lane.b32.xlu1 %v7108_v4, %s5582_s23  ;;  %3211 = vrot.lane.b32.xlu0 %v7092_v34, %s5582_s23  ;;  %v2812_v46 = vmul.f32 %v2803_v39, %v6329_v18  ;;  %v7280_v39 = vmul.f32 %v2720_v57, %v2672_v35  ;;  %v2674_v57 = vmul.f32 0.5, %v7228_v42 }
 0x82d   : > { %v2766_v21 = vpop.permute.xlu1 %2765  ;;  %v2788_v31 = vpop.permute.xlu0 %2787 }
 0x82e   : > { %v2807_v58 = vsel %vm1514_vm10, %v2788_v31, %v2764_v12 }
 0x82f   : > { %3229 = vrot.lane.b32.xlu1 %v7122_v1, %s5582_s23  ;;  %3235 = vrot.lane.b32.xlu0 %v7102_v37, %s5582_s23  ;;  %v5448_v1 = vpop.eup %5447  ;;  %v2811_v12 = vmul.f32 %v2807_v58, %v6343_v51  ;;  %v7300_v58 = vmul.f32 %v2722_v0, %v2674_v57  ;;  %v2673_v0 = vmul.f32 0.5, %v7231_v62 }
 0x830   : > { %v2724_v40 = vadd.f32 1.0, %v5448_v1  ;;  %v5450_v35 = vpop.eup %5449 }
 0x831   : > { %v2774_v50 = vpop.permute.xlu1 %2773  ;;  %v2780_v25 = vpop.permute.xlu0 %2779 }
 0x832   : > { %v2804_v19 = vsel %vm1514_vm10, %v2766_v21, %v2774_v50  ;;  %v2799_v9 = vsel %vm1514_vm10, %v2772_v28, %v2780_v25 }
 0x833   : > { %v2816_v8 = vmul.f32 %v2804_v19, %v6329_v18  ;;  %3213 = vrot.lane.b32.xlu1 %v7100_v2, %s5582_s23  ;;  %2767 = vrot.lane.b32.xlu0 %v7268_v3, %s5575_s2 }
 0x835   : > { %v2790_v43 = vpop.permute.xlu1 %2789  ;;  %v5079_v45 = vpack.c.bf16 %v2816_v8, %v2812_v46  ;;  %v7284_v37 = vpop.permute.xlu0 %2827  ;;  %v7298_v46 = vmul.f32 %v2723_v7, %v2675_v6 }
 0x836   : > { %v2808_v19 = vsel %vm1514_vm10, %v2790_v43, %v2766_v21  ;;  %v2795_v21 = vsel %vm1514_vm10, %v2780_v25, %v2788_v31 }
 0x837   : > { %v2815_v41 = vmul.f32 %v2808_v19, %v6343_v51  ;;  %3237 = vrot.lane.b32.xlu1 %v7116_v38, %s5582_s23  ;;  %5080 = vmatprep.subr.bf16.mxu0 %v5079_v45  ;;  %v2813_v19 = vmul.f32 %v2799_v9, %v6361_v16  ;;  %v2814_v1 = vmul.f32 %v2795_v21, %v6351_v27  ;;  %v5452_v9 = vpop.eup %5451  ;;  %v2678_v21 = vmul.f32 0.5, %v7248_v20 }
 0x838   : > { %2775 = vrot.lane.b32.xlu0 %v7280_v39, %s5575_s2  ;;  %v2725_v62 = vadd.f32 1.0, %v5452_v9 }
 0x839   : > { %v5081_v8 = vpack.c.bf16 %v2815_v41, %v2811_v12  ;;  %v2782_v28 = vpop.permute.xlu1 %2781  ;;  %v7307_v25 = vpop.permute.xlu0 %2835  ;;  %v7322_v41 = vmul.f32 %v2721_v32, %v2673_v0  ;;  %v2677_v32 = vmul.f32 0.5, %v7256_v15 }
 0x83a   : > { %v2796_v42 = vsel %vm1514_vm10, %v2782_v28, %v2790_v43  ;;  %v2800_v31 = vsel %vm1514_vm10, %v2774_v50, %v2782_v28  ;;  %v2726_v50 = vadd.f32 1.0, %v5450_v35  ;;  %v7318_v43 = vmul.f32 %v2724_v40, %v2676_v36 }
 0x83b   : > { %v2817_v7 = vmul.f32 %v2800_v31, %v6361_v16  ;;  %v2818_v45 = vmul.f32 %v2796_v42, %v6351_v27  ;;  %2769 = vrot.lane.b32.xlu1 %v7298_v46, %s5575_s2  ;;  %5082 = vmatpush1.bf16.msra.mxu0 %v5081_v8  ;;  %v7342_v20 = vmul.f32 %v2725_v62, %v2677_v32 }
 0x83c   : > { %2791 = vrot.lane.b32.xlu0 %v7300_v58, %s5575_s2  ;;  %v7331_v40 = vmul.f32 %v2726_v50, %v2678_v21 }
 0x83d   : > { %v5153_v6 = vpack.c.bf16 %v2817_v7, %v2813_v19  ;;  %v7320_v56 = vpop.permute.xlu1 %2829  ;;  %v5151_v12 = vpack.c.bf16 %v2818_v45, %v2814_v1  ;;  %v7324_v57 = vpop.permute.xlu0 %2851 }
 0x83f   : > { %2777 = vrot.lane.b32.xlu1 %v7318_v43, %s5575_s2  ;;  %5152 = vmatprep.subr.bf16.mxu1 %v5151_v12 }
 0x840   : > { %2783 = vrot.lane.b32.xlu0 %v7322_v41, %s5575_s2  ;;  %5154 = vmatpush1.bf16.msra.mxu1 %v5153_v6 }
 0x841   : > { %v7333_v8 = vpop.permute.xlu1 %2837  ;;  %v7335_v28 = vpop.permute.xlu0 %2843 }
 0x843   : > { %2793 = vrot.lane.b32.xlu1 %v7331_v40, %s5575_s2 }
 0x844   : > { %2831 = vrot.lane.b32.xlu0 %v7268_v3, %s5576_s15 }
 0x845   : > { %v7344_v35 = vpop.permute.xlu1 %2853  ;;  %v7346_v19 = vpop.permute.xlu0 %2891 }
 0x847   : > { %2785 = vrot.lane.b32.xlu1 %v7342_v20, %s5575_s2 }
 0x848   : > { %2839 = vrot.lane.b32.xlu0 %v7280_v39, %s5576_s15 }
 0x849   : > { %v7352_v42 = vpop.permute.xlu1 %2845  ;;  %v7354_v15 = vpop.permute.xlu0 %2899 }
 0x84b   : > { %2833 = vrot.lane.b32.xlu1 %v7298_v46, %s5576_s15 }
 0x84c   : > { %2855 = vrot.lane.b32.xlu0 %v7300_v58, %s5576_s15 }
 0x84d   : > { %v7360_v31 = vpop.permute.xlu1 %2893  ;;  %v7362_v36 = vpop.permute.xlu0 %2915 }
 0x84f   : > { %2841 = vrot.lane.b32.xlu1 %v7318_v43, %s5576_s15 }
 0x850   : > { %2847 = vrot.lane.b32.xlu0 %v7322_v41, %s5576_s15 }
 0x851   : > { %v7368_v1 = vpop.permute.xlu1 %2901  ;;  %v7370_v7 = vpop.permute.xlu0 %2907 }
 0x853   : > { %2857 = vrot.lane.b32.xlu1 %v7331_v40, %s5576_s15 }
 0x854   : > { %2895 = vrot.lane.b32.xlu0 %v7268_v3, %s5577_s8 }
 0x855   : > { %v7376_v45 = vpop.permute.xlu1 %2917  ;;  %v7378_v0 = vpop.permute.xlu0 %2955 }
 0x857   : > { %2849 = vrot.lane.b32.xlu1 %v7342_v20, %s5576_s15 }
 0x858   : > { %2903 = vrot.lane.b32.xlu0 %v7280_v39, %s5577_s8 }
 0x859   : > { %v7384_v50 = vpop.permute.xlu1 %2909  ;;  %v7386_v6 = vpop.permute.xlu0 %2963 }
 0x85b   : > { %2897 = vrot.lane.b32.xlu1 %v7298_v46, %s5577_s8 }
 0x85c   : > { %2919 = vrot.lane.b32.xlu0 %v7300_v58, %s5577_s8 }
 0x85d   : > { %v7392_v12 = vpop.permute.xlu1 %2957  ;;  %v7394_v9 = vpop.permute.xlu0 %2979 }
 0x85e   : > { %8697 = vst [vmem:[#allocation35_spill] sm:$0xff] %v7394_v9 }
 0x85f   : > { %2905 = vrot.lane.b32.xlu1 %v7318_v43, %s5577_s8 }
 0x860   : > { %2911 = vrot.lane.b32.xlu0 %v7322_v41, %s5577_s8 }
 0x861   : > { %v7400_v21 = vpop.permute.xlu1 %2965  ;;  %v7402_v62 = vpop.permute.xlu0 %2971 }
 0x862   : > { %8698 = vst [vmem:[#allocation36_spill] sm:$0xff] %v7402_v62 }
 0x863   : > { %2921 = vrot.lane.b32.xlu1 %v7331_v40, %s5577_s8 }
 0x864   : > { %2959 = vrot.lane.b32.xlu0 %v7268_v3, %s5578_s17 }
 0x865   : > { %v7408_v32 = vpop.permute.xlu1 %2981  ;;  %v7410_v38 = vpop.permute.xlu0 %3027 }
 0x866   : > { %8699 = vst [vmem:[#allocation37_spill] sm:$0xff] %v7408_v32  ;;  %8700 = vst [vmem:[#allocation38_spill] sm:$0xff] %v7410_v38 }
 0x867   : > { %2913 = vrot.lane.b32.xlu1 %v7342_v20, %s5577_s8 }
 0x868   : > { %2967 = vrot.lane.b32.xlu0 %v7280_v39, %s5578_s17 }
 0x869   : > { %v7416_v23 = vpop.permute.xlu1 %2973  ;;  %v7418_v2 = vpop.permute.xlu0 %3035 }
 0x86a   : > { %8701 = vst [vmem:[#allocation39_spill] sm:$0xff] %v7416_v23  ;;  %8702 = vst [vmem:[#allocation40_spill] sm:$0xff] %v7418_v2 }
 0x86b   : > { %2961 = vrot.lane.b32.xlu1 %v7298_v46, %s5578_s17 }
 0x86c   : > { %2983 = vrot.lane.b32.xlu0 %v7300_v58, %s5578_s17 }
 0x86d   : > { %v7424_v34 = vpop.permute.xlu1 %3029  ;;  %v7426_v4 = vpop.permute.xlu0 %3019 }
 0x86e   : > { %8703 = vst [vmem:[#allocation41_spill] sm:$0xff] %v7424_v34  ;;  %8704 = vst [vmem:[#allocation42_spill] sm:$0xff] %v7426_v4 }
 0x86f   : > { %2969 = vrot.lane.b32.xlu1 %v7318_v43, %s5578_s17 }
 0x870   : > { %2975 = vrot.lane.b32.xlu0 %v7322_v41, %s5578_s17 }
 0x871   : > { %v7432_v38 = vpop.permute.xlu1 %3037  ;;  %v7434_v26 = vpop.permute.xlu0 %3043 }
 0x872   : > { %8705 = vst [vmem:[#allocation43_spill] sm:$0xff] %v7432_v38  ;;  %8706 = vst [vmem:[#allocation44_spill] sm:$0xff] %v7434_v26 }
 0x873   : > { %2985 = vrot.lane.b32.xlu1 %v7331_v40, %s5578_s17 }
 0x874   : > { %3031 = vrot.lane.b32.xlu0 %v7280_v39, %s5579_s7 }
 0x875   : > { %v7440_v2 = vpop.permute.xlu1 %3021  ;;  %v7442_v34 = vpop.permute.xlu0 %3091 }
 0x876   : > { %8707 = vst [vmem:[#allocation45_spill] sm:$0xff] %v7440_v2  ;;  %8708 = vst [vmem:[#allocation46_spill] sm:$0xff] %v7442_v34 }
 0x877   : > { %2977 = vrot.lane.b32.xlu1 %v7342_v20, %s5578_s17 }
 0x878   : > { %3039 = vrot.lane.b32.xlu0 %v7322_v41, %s5579_s7 }
 0x879   : > { %v7448_v4 = vpop.permute.xlu1 %3045  ;;  %v7450_v38 = vpop.permute.xlu0 %3099 }
 0x87a   : > { %8709 = vst [vmem:[#allocation47_spill] sm:$0xff] %v7448_v4  ;;  %8710 = vst [vmem:[#allocation48_spill] sm:$0xff] %v7450_v38 }
 0x87b   : > { %3033 = vrot.lane.b32.xlu1 %v7318_v43, %s5579_s7 }
 0x87c   : > { %3023 = vrot.lane.b32.xlu0 %v7268_v3, %s5579_s7 }
 0x87d   : > { %v7456_v26 = vpop.permute.xlu1 %3093  ;;  %v7458_v2 = vpop.permute.xlu0 %3083 }
 0x87e   : > { %8711 = vst [vmem:[#allocation49_spill] sm:$0xff] %v7456_v26  ;;  %8712 = vst [vmem:[#allocation50_spill] sm:$0xff] %v7458_v2 }
 0x87f   : > { %3041 = vrot.lane.b32.xlu1 %v7342_v20, %s5579_s7 }
 0x880   : > { %3047 = vrot.lane.b32.xlu0 %v7300_v58, %s5579_s7 }
 0x881   : > { %v7464_v34 = vpop.permute.xlu1 %3101  ;;  %v3108_v4 = vpop.permute.xlu0 %3107 }
 0x882   : > { %8713 = vst [vmem:[#allocation51_spill] sm:$0xff] %v7464_v34  ;;  %v3115_v60 = vsel %vm1919_vm15, %v7450_v38, %v3108_v4  ;;  %v3127_v62 = vsel %vm1919_vm15, %v3108_v4, %v7458_v2 }
 0x883   : > { %3025 = vrot.lane.b32.xlu1 %v7298_v46, %s5579_s7  ;;  %v7483_v23 = vmul.f32 %v3115_v60, %v6812_v49  ;;  %v7492_v9 = vmul.f32 %v3127_v62, %v6815_v54 }
 0x884   : > { %3095 = vrot.lane.b32.xlu0 %v7280_v39, %s5580_s9 }
 0x885   : > { %v7470_v29 = vpop.permute.xlu1 %3085  ;;  %v3156_v26 = vpop.permute.xlu0 %3155  ;;  %8715 = vst [vmem:[#allocation53_spill] sm:$0xff] %v7483_v23  ;;  %8716 = vst [vmem:[#allocation54_spill] sm:$0xff] %v7492_v9 }
 0x886   : > { %8714 = vst [vmem:[#allocation52_spill] sm:$0xff] %v7470_v29 }
 0x887   : > { %3049 = vrot.lane.b32.xlu1 %v7331_v40, %s5579_s7 }
 0x888   : > { %3103 = vrot.lane.b32.xlu0 %v7322_v41, %s5580_s9 }
 0x889   : > { %v3110_v10 = vpop.permute.xlu1 %3109  ;;  %v3164_v30 = vpop.permute.xlu0 %3163 }
 0x88a   : > { %v3116_v32 = vsel %vm1919_vm15, %v7464_v34, %v3110_v10  ;;  %v3128_v38 = vsel %vm1919_vm15, %v3110_v10, %v7470_v29  ;;  %v3183_v60 = vsel %vm2000_vm0, %v3156_v26, %v3164_v30 }
 0x88b   : > { %v7495_v4 = vmul.f32 %v3116_v32, %v6812_v49  ;;  %v7498_v2 = vmul.f32 %v3128_v38, %v6815_v54  ;;  %3097 = vrot.lane.b32.xlu1 %v7318_v43, %s5580_s9  ;;  %v7519_v10 = vmul.f32 %v3183_v60, %v6857_v59 }
 0x88c   : > { %3087 = vrot.lane.b32.xlu0 %v7268_v3, %s5580_s9 }
 0x88d   : > { %8717 = vst [vmem:[#allocation55_spill] sm:$0xff] %v7495_v4  ;;  %v3158_v62 = vpop.permute.xlu1 %3157  ;;  %v3148_v49 = vpop.permute.xlu0 %3147  ;;  %8718 = vst [vmem:[#allocation56_spill] sm:$0xff] %v7519_v10 }
 0x88e   : > { %v3187_v38 = vsel %vm2000_vm0, %v3148_v49, %v3156_v26 }
 0x88f   : > { %3105 = vrot.lane.b32.xlu1 %v7342_v20, %s5580_s9  ;;  %v7537_v9 = vmul.f32 %v3187_v38, %v6865_v33 }
 0x890   : > { %3111 = vrot.lane.b32.xlu0 %v7300_v58, %s5580_s9 }
 0x891   : > { %v3166_v54 = vpop.permute.xlu1 %3165  ;;  %v3172_v34 = vpop.permute.xlu0 %3171 }
 0x892   : > { %v3184_v29 = vsel %vm2000_vm0, %v3158_v62, %v3166_v54  ;;  %v3179_v26 = vsel %vm2000_vm0, %v3164_v30, %v3172_v34  ;;  %v3191_v23 = vsel %vm2000_vm0, %v3172_v34, %v3148_v49 }
 0x893   : > { %v7522_v32 = vmul.f32 %v3184_v29, %v6857_v59  ;;  %3089 = vrot.lane.b32.xlu1 %v7298_v46, %s5580_s9 }
 0x894   : > { %3159 = vrot.lane.b32.xlu0 %v7280_v39, %s5581_s25 }
 0x895   : > { %8719 = vst [vmem:[#allocation57_spill] sm:$0xff] %v7522_v32  ;;  %v3150_v4 = vpop.permute.xlu1 %3149  ;;  %v3220_v59 = vpop.permute.xlu0 %3219 }
 0x896   : > { %v3188_v29 = vsel %vm2000_vm0, %v3150_v4, %v3158_v62  ;;  %v7549_v62 = vmul.f32 %v3179_v26, %v6874_v47 }
 0x897   : > { %v7540_v30 = vmul.f32 %v3188_v29, %v6865_v33  ;;  %3113 = vrot.lane.b32.xlu1 %v7331_v40, %s5580_s9  ;;  %v7556_v33 = vmul.f32 %v3191_v23, %v6877_v11 }
 0x898   : > { %3167 = vrot.lane.b32.xlu0 %v7322_v41, %s5581_s25  ;;  %8720 = vst [vmem:[#allocation58_spill] sm:$0xff] %v7549_v62 }
 0x899   : > { %v3174_v34 = vpop.permute.xlu1 %3173  ;;  %v3228_v60 = vpop.permute.xlu0 %3227 }
 0x89a   : > { %v3180_v38 = vsel %vm2000_vm0, %v3166_v54, %v3174_v34  ;;  %v3192_v29 = vsel %vm2000_vm0, %v3174_v34, %v3150_v4  ;;  %v3247_v26 = vsel %vm2081_vm1, %v3220_v59, %v3228_v60  ;;  %v2744_v34 = vld [vmem:[%s5741_s0 + $0x8] sm:$0xff] }
 0x89b   : > { %v7559_v10 = vmul.f32 %v3180_v38, %v6874_v47  ;;  %v7562_v32 = vmul.f32 %v3192_v29, %v6877_v11  ;;  %3161 = vrot.lane.b32.xlu1 %v7318_v43, %s5581_s25  ;;  %3351 = vmatprep.mubr.f32.mxu0 %v2744_v34  ;;  %v7584_v4 = vmul.f32 %v3247_v26, %v6921_v14 }
 0x89c   : > { %3151 = vrot.lane.b32.xlu0 %v7268_v3, %s5581_s25  ;;  %3529 = vmatprep.mubr.f32.mxu1 %v2744_v34 }
 0x89d   : > { %8721 = vst [vmem:[#allocation59_spill] sm:$0xff] %v7559_v10  ;;  %v3222_v23 = vpop.permute.xlu1 %3221  ;;  %v3212_v38 = vpop.permute.xlu0 %3211  ;;  %8722 = vst [vmem:[#allocation60_spill] sm:$0xff] %v7584_v4 }
 0x89e   : > { %v3251_v29 = vsel %vm2081_vm1, %v3212_v38, %v3220_v59 }
 0x89f   : > { %3169 = vrot.lane.b32.xlu1 %v7342_v20, %s5581_s25  ;;  %v7602_v10 = vmul.f32 %v3251_v29, %v6932_v5 }
 0x8a0   : > { %3175 = vrot.lane.b32.xlu0 %v7300_v58, %s5581_s25 }
 0x8a1   : > { %v3230_v49 = vpop.permute.xlu1 %3229  ;;  %v3236_v11 = vpop.permute.xlu0 %3235  ;;  %8724 = vst [vmem:[#allocation62_spill] sm:$0xff] %v7602_v10 }
 0x8a2   : > { %v3248_v54 = vsel %vm2081_vm1, %v3222_v23, %v3230_v49  ;;  %v3243_v59 = vsel %vm2081_vm1, %v3228_v60, %v3236_v11  ;;  %v3255_v34 = vsel %vm2081_vm1, %v3236_v11, %v3212_v38  ;;  %v2867_v11 = vsel %vm1595_vm11, %v7284_v37, %v7307_v25 }
 0x8a3   : > { %v7587_v47 = vmul.f32 %v3248_v54, %v6921_v14  ;;  %3153 = vrot.lane.b32.xlu1 %v7298_v46, %s5581_s25 }
 0x8a4   : > { %3223 = vrot.lane.b32.xlu0 %v7280_v39, %s5582_s23 }
 0x8a5   : > { %8723 = vst [vmem:[#allocation61_spill] sm:$0xff] %v7587_v47  ;;  %v3214_v62 = vpop.permute.xlu1 %3213  ;;  %v2768_v14 = vpop.permute.xlu0 %2767 }
 0x8a6   : > { %v3252_v54 = vsel %vm2081_vm1, %v3214_v62, %v3222_v23 }
 0x8a7   : > { %v7605_v60 = vmul.f32 %v3252_v54, %v6932_v5  ;;  %3177 = vrot.lane.b32.xlu1 %v7331_v40, %s5581_s25  ;;  %v7618_v54 = vmul.f32 %v3243_v59, %v6944_v55  ;;  %v7621_v5 = vmul.f32 %v3255_v34, %v6948_v63 }
 0x8a8   : > { %3231 = vrot.lane.b32.xlu0 %v7322_v41, %s5582_s23 }
 0x8a9   : > { %8725 = vst [vmem:[#allocation63_spill] sm:$0xff] %v7605_v60  ;;  %v3238_v38 = vpop.permute.xlu1 %3237  ;;  %8726 = vst [vmem:[#allocation64_spill] sm:$0xff] %v7618_v54  ;;  %v2876_v60 = vmul.f32 %v2867_v11, %v6424_v48 }
 0x8aa   : > { %v3244_v23 = vsel %vm2081_vm1, %v3230_v49, %v3238_v38  ;;  %v3256_v29 = vsel %vm2081_vm1, %v3238_v38, %v3214_v62  ;;  %v2776_v26 = vpop.permute.xlu0 %2775  ;;  %8727 = vst [vmem:[#allocation65_spill] sm:$0xff] %v7621_v5 }
 0x8ab   : > { %v7624_v4 = vmul.f32 %v3244_v23, %v6944_v55  ;;  %v7627_v47 = vmul.f32 %v3256_v29, %v6948_v63  ;;  %3225 = vrot.lane.b32.xlu1 %v7318_v43, %s5582_s23  ;;  %v2805_v38 = vsel %vm1514_vm10, %v2768_v14, %v2776_v26  ;;  %v2868_v29 = vsel %vm1595_vm11, %v7320_v56, %v7333_v8 }
 0x8ac   : > { %3215 = vrot.lane.b32.xlu0 %v7268_v3, %s5582_s23  ;;  %v2820_v63 = vmul.f32 %v2805_v38, %v6329_v18  ;;  %v2880_v5 = vmul.f32 %v2868_v29, %v6424_v48 }
 0x8ad   : > { %8728 = vst [vmem:[#allocation66_spill] sm:$0xff] %v7624_v4  ;;  %8729 = vst [vmem:[#allocation67_spill] sm:$0xff] %v7627_v47  ;;  %v2770_v62 = vpop.permute.xlu1 %2769  ;;  %v2871_v4 = vsel %vm1595_vm11, %v7324_v57, %v7284_v37  ;;  %v2860_v37 = vsel %vm1595_vm11, %v7352_v42, %v7344_v35 }
 0x8ae   : > { %v2792_v34 = vpop.permute.xlu0 %2791  ;;  %v5087_v29 = vpack.c.bf16 %v2880_v5, %v2876_v60 }
 0x8af   : > { %3233 = vrot.lane.b32.xlu1 %v7342_v20, %s5582_s23  ;;  %v2809_v54 = vsel %vm1514_vm10, %v2792_v34, %v2768_v14 }
 0x8b0   : > { %3239 = vrot.lane.b32.xlu0 %v7300_v58, %s5582_s23  ;;  %v2819_v38 = vmul.f32 %v2809_v54, %v6343_v51 }
 0x8b1   : > { %v2778_v23 = vpop.permute.xlu1 %2777 }
 0x8b2   : > { %v2806_v49 = vsel %vm1514_vm10, %v2770_v62, %v2778_v23  ;;  %v2784_v59 = vpop.permute.xlu0 %2783 }
 0x8b3   : > { %v2824_v55 = vmul.f32 %v2806_v49, %v6329_v18  ;;  %3217 = vrot.lane.b32.xlu1 %v7298_v46, %s5582_s23  ;;  %v2872_v18 = vsel %vm1595_vm11, %v7344_v35, %v7320_v56  ;;  %v2797_v56 = vsel %vm1514_vm10, %v2784_v59, %v2792_v34  ;;  %v2801_v11 = vsel %vm1514_vm10, %v2776_v26, %v2784_v59 }
 0x8b4   : > { %v2859_v35 = vsel %vm1595_vm11, %v7335_v28, %v7324_v57  ;;  %v2879_v54 = vmul.f32 %v2872_v18, %v6437_v44  ;;  %v2821_v57 = vmul.f32 %v2801_v11, %v6361_v16  ;;  %v2822_v18 = vmul.f32 %v2797_v56, %v6351_v27 }
 0x8b5   : > { %v2794_v47 = vpop.permute.xlu1 %2793  ;;  %v5083_v10 = vpack.c.bf16 %v2824_v55, %v2820_v63  ;;  %v2875_v63 = vmul.f32 %v2871_v4, %v6437_v44  ;;  %v2882_v4 = vmul.f32 %v2860_v37, %v6453_v24 }
 0x8b6   : > { %v2810_v49 = vsel %vm1514_vm10, %v2794_v47, %v2770_v62  ;;  %v2832_v14 = vpop.permute.xlu0 %2831 }
 0x8b7   : > { %v2823_v55 = vmul.f32 %v2810_v49, %v6343_v51  ;;  %3241 = vrot.lane.b32.xlu1 %v7331_v40, %s5582_s23  ;;  %5084 = vmatprep.subr.bf16.mxu0 %v5083_v10  ;;  %v2864_v10 = vsel %vm1595_vm11, %v7333_v8, %v7352_v42  ;;  %v2863_v8 = vsel %vm1595_vm11, %v7307_v25, %v7335_v28 }
 0x8b8   : > { %v5089_v42 = vpack.c.bf16 %v2879_v54, %v2875_v63  ;;  %v2932_v63 = vsel %vm1676_vm12, %v7360_v31, %v7368_v1 }
 0x8b9   : > { %v5085_v51 = vpack.c.bf16 %v2823_v55, %v2819_v38  ;;  %v2786_v62 = vpop.permute.xlu1 %2785  ;;  %v2881_v38 = vmul.f32 %v2864_v10, %v6446_v17  ;;  %v2935_v10 = vsel %vm1676_vm12, %v7362_v36, %v7346_v19 }
 0x8ba   : > { %v2798_v26 = vsel %vm1514_vm10, %v2786_v62, %v2794_v47  ;;  %v2802_v59 = vsel %vm1514_vm10, %v2778_v23, %v2786_v62  ;;  %v2840_v34 = vpop.permute.xlu0 %2839  ;;  %v2878_v47 = vmul.f32 %v2859_v35, %v6453_v24  ;;  %v2931_v62 = vsel %vm1676_vm12, %v7346_v19, %v7354_v15 }
 0x8bb   : > { %v2825_v5 = vmul.f32 %v2802_v59, %v6361_v16  ;;  %v2826_v60 = vmul.f32 %v2798_v26, %v6351_v27  ;;  %5086 = vmatpush1.bf16.msra.mxu0 %v5085_v51  ;;  %v2877_v27 = vmul.f32 %v2863_v8, %v6446_v17  ;;  %v2869_v56 = vsel %vm1595_vm11, %v2832_v14, %v2840_v34 }
 0x8bc   : > { %5088 = vmatprep.subr.bf16.mxu0 %v5087_v29  ;;  %v5159_v16 = vpack.c.bf16 %v2882_v4, %v2878_v47  ;;  %v2884_v54 = vmul.f32 %v2869_v56, %v6424_v48  ;;  %v2944_v4 = vmul.f32 %v2932_v63, %v6518_v13  ;;  %v2924_v19 = vsel %vm1676_vm12, %v7384_v50, %v7376_v45 }
 0x8bd   : > { %v5157_v23 = vpack.c.bf16 %v2825_v5, %v2821_v57  ;;  %v2834_v49 = vpop.permute.xlu1 %2833  ;;  %v5155_v37 = vpack.c.bf16 %v2826_v60, %v2822_v18  ;;  %v5161_v28 = vpack.c.bf16 %v2881_v38, %v2877_v27  ;;  %v2939_v8 = vmul.f32 %v2935_v10, %v6531_v61 }
 0x8be   : > { %v2856_v55 = vpop.permute.xlu0 %2855  ;;  %v2946_v38 = vmul.f32 %v2924_v19, %v6547_v53 }
 0x8bf   : > { %5090 = vmatpush1.bf16.msra.mxu0 %v5089_v42  ;;  %5156 = vmatprep.subr.bf16.mxu1 %v5155_v37  ;;  %v2873_v29 = vsel %vm1595_vm11, %v2856_v55, %v2832_v14  ;;  %v2940_v14 = vmul.f32 %v2931_v62, %v6518_v13  ;;  %v2923_v42 = vsel %vm1676_vm12, %v7370_v7, %v7362_v36 }
 0x8c0   : > { %5158 = vmatpush1.bf16.msra.mxu1 %v5157_v23  ;;  %v2883_v5 = vmul.f32 %v2873_v29, %v6437_v44  ;;  %v2996_v29 = vsel %vm1757_vm13, %v7392_v12, %v7400_v21 }
 0x8c1   : > { %v2842_v25 = vpop.permute.xlu1 %2841  ;;  %5160 = vmatprep.subr.bf16.mxu1 %v5159_v16  ;;  %v5095_v37 = vpack.c.bf16 %v2944_v4, %v2940_v14  ;;  %v8730_v14 = vld [vmem:[#allocation35_spill] sm:$0xff] }
 0x8c2   : > { %v2870_v11 = vsel %vm1595_vm11, %v2834_v49, %v2842_v25  ;;  %v2848_v35 = vpop.permute.xlu0 %2847  ;;  %v2999_v19 = vsel %vm1757_vm13, %v8730_v14, %v7378_v0 }
 0x8c3   : > { %v2888_v51 = vmul.f32 %v2870_v11, %v6424_v48  ;;  %v2936_v48 = vsel %vm1676_vm12, %v7376_v45, %v7360_v31  ;;  %v2861_v31 = vsel %vm1595_vm11, %v2848_v35, %v2856_v55  ;;  %v2865_v47 = vsel %vm1595_vm11, %v2840_v34, %v2848_v35 }
 0x8c4   : > { %5162 = vmatpush1.bf16.msra.mxu1 %v5161_v28  ;;  %v2943_v45 = vmul.f32 %v2936_v48, %v6531_v61  ;;  %v2885_v36 = vmul.f32 %v2865_v47, %v6446_v17  ;;  %v2886_v27 = vmul.f32 %v2861_v31, %v6453_v24  ;;  %v2995_v48 = vsel %vm1757_vm13, %v7378_v0, %v7386_v6 }
 0x8c5   : > { %v2858_v26 = vpop.permute.xlu1 %2857  ;;  %v5091_v59 = vpack.c.bf16 %v2888_v51, %v2884_v54 }
 0x8c6   : > { %v2874_v57 = vsel %vm1595_vm11, %v2858_v26, %v2834_v49  ;;  %v2896_v18 = vpop.permute.xlu0 %2895  ;;  %v5097_v63 = vpack.c.bf16 %v2943_v45, %v2939_v8 }
 0x8c7   : > { %v2887_v60 = vmul.f32 %v2874_v57, %v6437_v44  ;;  %5092 = vmatprep.subr.bf16.mxu0 %v5091_v59  ;;  %v2928_v44 = vsel %vm1676_vm12, %v7368_v1, %v7384_v50  ;;  %v2927_v1 = vsel %vm1676_vm12, %v7354_v15, %v7370_v7  ;;  %v2942_v50 = vmul.f32 %v2923_v42, %v6547_v53 }
 0x8c8   : > { %v2945_v54 = vmul.f32 %v2928_v44, %v6540_v52  ;;  %v8734_v44 = vld [vmem:[#allocation8_spill] sm:$0xff] }
 0x8c9   : > { %v5093_v23 = vpack.c.bf16 %v2887_v60, %v2883_v5  ;;  %v2850_v49 = vpop.permute.xlu1 %2849  ;;  %v8731_v5 = vld [vmem:[#allocation7_spill] sm:$0xff] }
 0x8ca   : > { %v2862_v34 = vsel %vm1595_vm11, %v2850_v49, %v2858_v26  ;;  %v2866_v55 = vsel %vm1595_vm11, %v2842_v25, %v2850_v49  ;;  %v2904_v16 = vpop.permute.xlu0 %2903  ;;  %v3008_v60 = vmul.f32 %v2996_v29, %v8731_v5 }
 0x8cb   : > { %v2889_v56 = vmul.f32 %v2866_v55, %v6446_v17  ;;  %v2890_v28 = vmul.f32 %v2862_v34, %v6453_v24  ;;  %5094 = vmatpush1.bf16.msra.mxu0 %v5093_v23  ;;  %v5167_v17 = vpack.c.bf16 %v2946_v38, %v2942_v50  ;;  %v2941_v24 = vmul.f32 %v2927_v1, %v6540_v52  ;;  %v8733_v23 = vld [vmem:[#allocation39_spill] sm:$0xff]  ;;  %v8735_v55 = vld [vmem:[#allocation36_spill] sm:$0xff]  ;;  %v8736_v50 = vld [vmem:[#allocation10_spill] sm:$0xff] }
 0x8cc   : > { %5096 = vmatprep.subr.bf16.mxu0 %v5095_v37  ;;  %v2933_v62 = vsel %vm1676_vm12, %v2896_v18, %v2904_v16  ;;  %v3003_v38 = vmul.f32 %v2999_v19, %v8734_v44 }
 0x8cd   : > { %v5165_v25 = vpack.c.bf16 %v2889_v56, %v2885_v36  ;;  %v2898_v11 = vpop.permute.xlu1 %2897  ;;  %v5163_v35 = vpack.c.bf16 %v2890_v28, %v2886_v27  ;;  %v5169_v7 = vpack.c.bf16 %v2945_v54, %v2941_v24  ;;  %v2948_v26 = vmul.f32 %v2933_v62, %v6518_v13 }
 0x8ce   : > { %v2920_v51 = vpop.permute.xlu0 %2919  ;;  %v2987_v36 = vsel %vm1757_vm13, %v8735_v55, %v8730_v14 }
 0x8cf   : > { %5098 = vmatpush1.bf16.msra.mxu0 %v5097_v63  ;;  %5164 = vmatprep.subr.bf16.mxu1 %v5163_v35  ;;  %v2937_v57 = vsel %vm1676_vm12, %v2920_v51, %v2896_v18  ;;  %v3004_v18 = vmul.f32 %v2995_v48, %v8731_v5  ;;  %v3006_v24 = vmul.f32 %v2987_v36, %v8736_v50  ;;  %v8740_v36 = vld [vmem:[#allocation28_spill] sm:$0xff] }
 0x8d0   : > { %5166 = vmatpush1.bf16.msra.mxu1 %v5165_v25  ;;  %v2947_v49 = vmul.f32 %v2937_v57, %v6531_v61 }
 0x8d1   : > { %v2906_v15 = vpop.permute.xlu1 %2905  ;;  %5168 = vmatprep.subr.bf16.mxu1 %v5167_v17  ;;  %v5103_v1 = vpack.c.bf16 %v3008_v60, %v3004_v18 }
 0x8d2   : > { %v2934_v10 = vsel %vm1676_vm12, %v2898_v11, %v2906_v15  ;;  %v2912_v4 = vpop.permute.xlu0 %2911 }
 0x8d3   : > { %v2952_v59 = vmul.f32 %v2934_v10, %v6518_v13  ;;  %v8732_v13 = vld [vmem:[#allocation37_spill] sm:$0xff]  ;;  %v2929_v34 = vsel %vm1676_vm12, %v2904_v16, %v2912_v4 }
 0x8d4   : > { %5170 = vmatpush1.bf16.msra.mxu1 %v5169_v7  ;;  %v3000_v47 = vsel %vm1757_vm13, %v8732_v13, %v7392_v12  ;;  %v2988_v0 = vsel %vm1757_vm13, %v8733_v23, %v8732_v13  ;;  %v2925_v12 = vsel %vm1676_vm12, %v2912_v4, %v2920_v51  ;;  %v2949_v35 = vmul.f32 %v2929_v34, %v6540_v52  ;;  %v8737_v10 = vld [vmem:[#allocation9_spill] sm:$0xff] }
 0x8d5   : > { %v2922_v8 = vpop.permute.xlu1 %2921  ;;  %v5099_v31 = vpack.c.bf16 %v2952_v59, %v2948_v26  ;;  %v3007_v27 = vmul.f32 %v3000_v47, %v8734_v44  ;;  %v3010_v63 = vmul.f32 %v2988_v0, %v8736_v50  ;;  %v2950_v54 = vmul.f32 %v2925_v12, %v6547_v53 }
 0x8d6   : > { %v2938_v42 = vsel %vm1676_vm12, %v2922_v8, %v2898_v11  ;;  %v2960_v45 = vpop.permute.xlu0 %2959 }
 0x8d7   : > { %v2951_v37 = vmul.f32 %v2938_v42, %v6531_v61  ;;  %5100 = vmatprep.subr.bf16.mxu0 %v5099_v31  ;;  %v2992_v61 = vsel %vm1757_vm13, %v7400_v21, %v8733_v23  ;;  %v2991_v21 = vsel %vm1757_vm13, %v7386_v6, %v8735_v55  ;;  %v5105_v62 = vpack.c.bf16 %v3007_v27, %v3003_v38  ;;  %v8739_v38 = vld [vmem:[#allocation41_spill] sm:$0xff]  ;;  %v8741_v27 = vld [vmem:[#allocation31_spill] sm:$0xff] }
 0x8d8   : > { %v3009_v4 = vmul.f32 %v2992_v61, %v8737_v10 }
 0x8d9   : > { %v5101_v56 = vpack.c.bf16 %v2951_v37, %v2947_v49  ;;  %v2914_v28 = vpop.permute.xlu1 %2913  ;;  %v8738_v37 = vld [vmem:[#allocation43_spill] sm:$0xff] }
 0x8da   : > { %v2926_v16 = vsel %vm1676_vm12, %v2914_v28, %v2922_v8  ;;  %v2930_v25 = vsel %vm1676_vm12, %v2906_v15, %v2914_v28  ;;  %v2968_v11 = vpop.permute.xlu0 %2967  ;;  %v3056_v12 = vsel %vm1838_vm14, %v8739_v38, %v8738_v37 }
 0x8db   : > { %v2953_v51 = vmul.f32 %v2930_v25, %v6540_v52  ;;  %v2954_v17 = vmul.f32 %v2926_v16, %v6547_v53  ;;  %5102 = vmatpush1.bf16.msra.mxu0 %v5101_v56  ;;  %v5175_v52 = vpack.c.bf16 %v3010_v63, %v3006_v24  ;;  %v3005_v53 = vmul.f32 %v2991_v21, %v8737_v10  ;;  %v8742_v16 = vld [vmem:[#allocation40_spill] sm:$0xff]  ;;  %v8743_v25 = vld [vmem:[#allocation38_spill] sm:$0xff] }
 0x8dc   : > { %5104 = vmatprep.subr.bf16.mxu0 %v5103_v1  ;;  %v2997_v59 = vsel %vm1757_vm13, %v2960_v45, %v2968_v11  ;;  %v5111_v56 = vpack.c.bf16 %v8741_v27, %v8740_v36 }
 0x8dd   : > { %v5173_v15 = vpack.c.bf16 %v2953_v51, %v2949_v35  ;;  %v2962_v7 = vpop.permute.xlu1 %2961  ;;  %v5171_v29 = vpack.c.bf16 %v2954_v17, %v2950_v54  ;;  %v5177_v48 = vpack.c.bf16 %v3009_v4, %v3005_v53  ;;  %v3012_v19 = vmul.f32 %v2997_v59, %v8731_v5  ;;  %v8744_v51 = vld [vmem:[#allocation27_spill] sm:$0xff]  ;;  %v8745_v17 = vld [vmem:[#allocation29_spill] sm:$0xff] }
 0x8de   : > { %v2984_v26 = vpop.permute.xlu0 %2983  ;;  %v5113_v21 = vpack.c.bf16 %v8745_v17, %v8744_v51  ;;  %v8750_v53 = vld [vmem:[#allocation33_spill] sm:$0xff]  ;;  %v8762_v17 = vld [vmem:[#allocation15_spill] sm:$0xff] }
 0x8df   : > { %5106 = vmatpush1.bf16.msra.mxu0 %v5105_v62  ;;  %5172 = vmatprep.subr.bf16.mxu1 %v5171_v29  ;;  %v3001_v8 = vsel %vm1757_vm13, %v2984_v26, %v2960_v45  ;;  %v8746_v62 = vld [vmem:[#allocation42_spill] sm:$0xff]  ;;  %v8748_v29 = vld [vmem:[#allocation45_spill] sm:$0xff] }
 0x8e0   : > { %5174 = vmatpush1.bf16.msra.mxu1 %v5173_v15  ;;  %v3011_v18 = vmul.f32 %v3001_v8, %v8734_v44  ;;  %v3059_v15 = vsel %vm1838_vm14, %v8746_v62, %v8743_v25 }
 0x8e1   : > { %v2970_v6 = vpop.permute.xlu1 %2969  ;;  %5176 = vmatprep.subr.bf16.mxu1 %v5175_v52  ;;  %v8749_v52 = vld [vmem:[#allocation30_spill] sm:$0xff] }
 0x8e2   : > { %v2998_v57 = vsel %vm1757_vm13, %v2962_v7, %v2970_v6  ;;  %v2976_v14 = vpop.permute.xlu0 %2975  ;;  %v5183_v59 = vpack.c.bf16 %v8750_v53, %v8749_v52  ;;  %v8765_v53 = vld [vmem:[#allocation16_spill] sm:$0xff] }
 0x8e3   : > { %v3016_v60 = vmul.f32 %v2998_v57, %v8731_v5  ;;  %v2989_v0 = vsel %vm1757_vm13, %v2976_v14, %v2984_v26  ;;  %v2993_v5 = vsel %vm1757_vm13, %v2968_v11, %v2976_v14  ;;  %v3055_v11 = vsel %vm1838_vm14, %v8743_v25, %v8742_v16  ;;  %v8752_v57 = vld [vmem:[#allocation34_spill] sm:$0xff] }
 0x8e4   : > { %5178 = vmatpush1.bf16.msra.mxu1 %v5177_v48  ;;  %v3013_v28 = vmul.f32 %v2993_v5, %v8737_v10  ;;  %v3014_v1 = vmul.f32 %v2989_v0, %v8736_v50  ;;  %v5115_v26 = vpack.c.bf16 %v7318_v43, %v7280_v39  ;;  %v8751_v48 = vld [vmem:[#allocation32_spill] sm:$0xff] }
 0x8e5   : > { %v2986_v31 = vpop.permute.xlu1 %2985  ;;  %v5107_v13 = vpack.c.bf16 %v3016_v60, %v3012_v19  ;;  %v5185_v14 = vpack.c.bf16 %v8752_v57, %v8751_v48  ;;  %v8753_v60 = vld [vmem:[#allocation47_spill] sm:$0xff]  ;;  %v8754_v43 = vld [vmem:[#allocation12_spill] sm:$0xff] }
 0x8e6   : > { %v3002_v47 = vsel %vm1757_vm13, %v2986_v31, %v2962_v7  ;;  %v3032_v42 = vpop.permute.xlu0 %3031  ;;  %v8747_v7 = vld [vmem:[#allocation11_spill] sm:$0xff]  ;;  %v3064_v8 = vsel %vm1838_vm14, %v8753_v60, %v8748_v29  ;;  %v3052_v0 = vsel %vm1838_vm14, %v8738_v37, %v8753_v60 }
 0x8e7   : > { %v3015_v23 = vmul.f32 %v3002_v47, %v8734_v44  ;;  %5108 = vmatprep.subr.bf16.mxu0 %v5107_v13  ;;  %v3068_v19 = vmul.f32 %v3055_v11, %v8747_v7 }
 0x8e9   : > { %v5109_v49 = vpack.c.bf16 %v3015_v23, %v3011_v18  ;;  %v2978_v45 = vpop.permute.xlu1 %2977  ;;  %v5187_v18 = vpack.c.bf16 %v7331_v40, %v7300_v58 }
 0x8ea   : > { %v2990_v34 = vsel %vm1757_vm13, %v2978_v45, %v2986_v31  ;;  %v2994_v44 = vsel %vm1757_vm13, %v2970_v6, %v2978_v45  ;;  %v7861_v55 = vpop.permute.xlu0 %3039  ;;  %v5117_v6 = vpack.c.bf16 %v7298_v46, %v7268_v3  ;;  %v3067_v31 = vmul.f32 %v3059_v15, %v8754_v43  ;;  %v8755_v3 = vld [vmem:[#allocation44_spill] sm:$0xff] }
 0x8eb   : > { %v3017_v61 = vmul.f32 %v2994_v44, %v8737_v10  ;;  %v3018_v63 = vmul.f32 %v2990_v34, %v8736_v50  ;;  %5110 = vmatpush1.bf16.msra.mxu0 %v5109_v49  ;;  %v3072_v50 = vmul.f32 %v3056_v12, %v8747_v7  ;;  %v3060_v10 = vsel %vm1838_vm14, %v8748_v29, %v8739_v38  ;;  %v8756_v38 = vld [vmem:[#allocation14_spill] sm:$0xff]  ;;  %v8757_v34 = vld [vmem:[#allocation51_spill] sm:$0xff]  ;;  %v8758_v44 = vld [vmem:[#allocation49_spill] sm:$0xff] }
 0x8ec   : > { %5112 = vmatprep.subr.bf16.mxu0 %v5111_v56  ;;  %v3057_v39 = vsel %vm1838_vm14, %v3032_v42, %v7861_v55  ;;  %v3063_v46 = vsel %vm1838_vm14, %v8755_v3, %v8746_v62  ;;  %v3071_v13 = vmul.f32 %v3060_v10, %v8754_v43  ;;  %v3051_v23 = vsel %vm1838_vm14, %v8742_v16, %v8755_v3  ;;  %v8761_v16 = vld [vmem:[#allocation46_spill] sm:$0xff] }
 0x8ed   : > { %v5181_v35 = vpack.c.bf16 %v3017_v61, %v3013_v28  ;;  %v3034_v54 = vpop.permute.xlu1 %3033  ;;  %v5179_v24 = vpack.c.bf16 %v3018_v63, %v3014_v1  ;;  %v5119_v45 = vpack.c.bf16 %v3072_v50, %v3068_v19  ;;  %v3074_v12 = vmul.f32 %v3064_v8, %v8756_v38  ;;  %v8759_v1 = vld [vmem:[#allocation13_spill] sm:$0xff]  ;;  %v8760_v63 = vld [vmem:[#allocation48_spill] sm:$0xff]  ;;  %v8764_v62 = vld [vmem:[#allocation50_spill] sm:$0xff] }
 0x8ee   : > { %v3024_v4 = vpop.permute.xlu0 %3023  ;;  %v3120_v58 = vsel %vm1919_vm15, %v8758_v44, %v8757_v34  ;;  %v3076_v40 = vmul.f32 %v3057_v39, %v8747_v7  ;;  %v3070_v27 = vmul.f32 %v3063_v46, %v8756_v38  ;;  %v5189_v56 = vpack.c.bf16 %v7342_v20, %v7322_v41 }
 0x8ef   : > { %5114 = vmatpush1.bf16.msra.mxu0 %v5113_v21  ;;  %5180 = vmatprep.subr.bf16.mxu1 %v5179_v24  ;;  %v3061_v37 = vsel %vm1838_vm14, %v3024_v4, %v3032_v42  ;;  %v5121_v28 = vpack.c.bf16 %v3071_v13, %v3067_v31  ;;  %v3073_v61 = vmul.f32 %v3052_v0, %v8759_v1  ;;  %v8763_v21 = vld [vmem:[#allocation52_spill] sm:$0xff]  ;;  %v8766_v0 = vld [vmem:[#allocation54_spill] sm:$0xff] }
 0x8f0   : > { %5116 = vmatprep.subr.bf16.mxu0 %v5115_v26  ;;  %5182 = vmatpush1.bf16.msra.mxu1 %v5181_v35  ;;  %v3119_v25 = vsel %vm1919_vm15, %v8761_v16, %v8760_v63  ;;  %v3069_v51 = vmul.f32 %v3051_v23, %v8759_v1  ;;  %v3136_v42 = vmul.f32 %v3120_v58, %v8762_v17  ;;  %v8769_v58 = vld [vmem:[#allocation53_spill] sm:$0xff] }
 0x8f1   : > { %v3042_v47 = vpop.permute.xlu1 %3041  ;;  %5184 = vmatprep.subr.bf16.mxu1 %v5183_v59  ;;  %v3124_v41 = vsel %vm1919_vm15, %v8763_v21, %v8758_v44  ;;  %v3123_v15 = vsel %vm1919_vm15, %v8764_v62, %v8761_v16  ;;  %v5191_v29 = vpack.c.bf16 %v3074_v12, %v3070_v27  ;;  %v3132_v10 = vmul.f32 %v3119_v25, %v8762_v17  ;;  %v8768_v44 = vld [vmem:[#allocation55_spill] sm:$0xff]  ;;  %v8774_v62 = vld [vmem:[#allocation56_spill] sm:$0xff] }
 0x8f2   : > { %v3058_v5 = vsel %vm1838_vm14, %v3034_v54, %v3042_v47  ;;  %v3048_v49 = vpop.permute.xlu0 %3047  ;;  %v5193_v52 = vpack.c.bf16 %v3073_v61, %v3069_v51  ;;  %v3135_v59 = vmul.f32 %v3124_v41, %v8765_v53  ;;  %v3131_v57 = vmul.f32 %v3123_v15, %v8765_v53  ;;  %v8771_v51 = vld [vmem:[#allocation17_spill] sm:$0xff] }
 0x8f3   : > { %v3080_v36 = vmul.f32 %v3058_v5, %v8747_v7  ;;  %5118 = vmatpush1.bf16.msra.mxu0 %v5117_v6  ;;  %v3075_v7 = vmul.f32 %v3061_v37, %v8754_v43  ;;  %v3053_v26 = vsel %vm1838_vm14, %v7861_v55, %v3048_v49  ;;  %v5127_v60 = vpack.c.bf16 %v3136_v42, %v3132_v10  ;;  %v8772_v42 = vld [vmem:[#allocation18_spill] sm:$0xff] }
 0x8f4   : > { %5120 = vmatprep.subr.bf16.mxu0 %v5119_v45  ;;  %5186 = vmatpush1.bf16.msra.mxu1 %v5185_v14  ;;  %v5129_v31 = vpack.c.bf16 %v3135_v59, %v3131_v57  ;;  %v8767_v5 = vpack.c.bf16 %v7498_v2, %v8766_v0  ;;  %v8783_v0 = vld [vmem:[#allocation21_spill] sm:$0xff] }
 0x8f5   : > { %v3026_v11 = vpop.permute.xlu1 %3025  ;;  %5188 = vmatprep.subr.bf16.mxu1 %v5187_v18  ;;  %v5123_v35 = vpack.c.bf16 %v3080_v36, %v3076_v40  ;;  %v8770_v40 = vpack.c.bf16 %v8768_v44, %v8769_v58  ;;  %v8785_v44 = vld [vmem:[#allocation61_spill] sm:$0xff]  ;;  %v8786_v58 = vld [vmem:[#allocation60_spill] sm:$0xff] }
 0x8f6   : > { %v3062_v20 = vsel %vm1838_vm14, %v3026_v11, %v3034_v54  ;;  %v3096_v24 = vpop.permute.xlu0 %3095  ;;  %v3065_v54 = vsel %vm1838_vm14, %v3048_v49, %v3024_v4  ;;  %v3077_v4 = vmul.f32 %v3053_v26, %v8759_v1  ;;  %v8776_v26 = vpack.c.bf16 %v7540_v30, %v7537_v9  ;;  %v8779_v30 = vld [vmem:[#allocation59_spill] sm:$0xff] }
 0x8f7   : > { %v3079_v50 = vmul.f32 %v3062_v20, %v8754_v43  ;;  %5122 = vmatpush1.bf16.msra.mxu0 %v5121_v28  ;;  %v3078_v8 = vmul.f32 %v3065_v54, %v8756_v38 }
 0x8f8   : > { %5124 = vmatprep.subr.bf16.mxu0 %v5123_v35  ;;  %5190 = vmatpush1.bf16.msra.mxu1 %v5189_v56 }
 0x8f9   : > { %v5125_v6 = vpack.c.bf16 %v3079_v50, %v3075_v7  ;;  %v3050_v48 = vpop.permute.xlu1 %3049  ;;  %5192 = vmatprep.subr.bf16.mxu1 %v5191_v29 }
 0x8fa   : > { %v3054_v14 = vsel %vm1838_vm14, %v3042_v47, %v3050_v48  ;;  %v3066_v19 = vsel %vm1838_vm14, %v3050_v48, %v3026_v11  ;;  %v3104_v55 = vpop.permute.xlu0 %3103  ;;  %v8778_v48 = vld [vmem:[#allocation19_spill] sm:$0xff] }
 0x8fb   : > { %v3081_v39 = vmul.f32 %v3054_v14, %v8759_v1  ;;  %v3082_v43 = vmul.f32 %v3066_v19, %v8756_v38  ;;  %5126 = vmatpush1.bf16.msra.mxu0 %v5125_v6  ;;  %v3121_v18 = vsel %vm1919_vm15, %v3096_v24, %v3104_v55  ;;  %v8780_v19 = vld [vmem:[#allocation58_spill] sm:$0xff] }
 0x8fc   : > { %5128 = vmatprep.subr.bf16.mxu0 %v5127_v60  ;;  %5194 = vmatpush1.bf16.msra.mxu1 %v5193_v52  ;;  %v3140_v38 = vmul.f32 %v3121_v18, %v8762_v17 }
 0x8fd   : > { %v5197_v3 = vpack.c.bf16 %v3081_v39, %v3077_v4  ;;  %v3098_v46 = vpop.permute.xlu1 %3097  ;;  %v5195_v13 = vpack.c.bf16 %v3082_v43, %v3078_v8  ;;  %v8782_v8 = vld [vmem:[#allocation20_spill] sm:$0xff] }
 0x8fe   : > { %v3088_v47 = vpop.permute.xlu0 %3087 }
 0x8ff   : > { %5130 = vmatpush1.bf16.msra.mxu0 %v5129_v31  ;;  %5196 = vmatprep.subr.bf16.mxu1 %v5195_v13  ;;  %v3125_v34 = vsel %vm1919_vm15, %v3088_v47, %v3096_v24  ;;  %v8773_v24 = vld [vmem:[#allocation57_spill] sm:$0xff] }
 0x900   : > { %5198 = vmatpush1.bf16.msra.mxu1 %v5197_v3  ;;  %v3139_v56 = vmul.f32 %v3125_v34, %v8765_v53  ;;  %v8775_v15 = vpack.c.bf16 %v8773_v24, %v8774_v62  ;;  %v2743_v34 = vld [vmem:[%s5741_s0] sm:$0xff]  ;;  %v2749_v24 = vld [vmem:[%s5741_s0 + $0x30] sm:$0xff] }
 0x901   : > { %v3106_v23 = vpop.permute.xlu1 %3105  ;;  %5200 = vmatprep.subr.bf16.mxu1 %v8767_v5 }
 0x902   : > { %v3122_v49 = vsel %vm1919_vm15, %v3098_v46, %v3106_v23  ;;  %v3112_v45 = vpop.permute.xlu0 %3111 }
 0x903   : > { %v3144_v12 = vmul.f32 %v3122_v49, %v8762_v17  ;;  %v3117_v1 = vsel %vm1919_vm15, %v3104_v55, %v3112_v45  ;;  %v3129_v61 = vsel %vm1919_vm15, %v3112_v45, %v3088_v47  ;;  %v8781_v55 = vpack.c.bf16 %v8779_v30, %v8780_v19  ;;  %v8784_v49 = vld [vmem:[#allocation22_spill] sm:$0xff]  ;;  %v8799_v19 = vld [vmem:[#allocation25_spill] sm:$0xff] }
 0x904   : > { %5202 = vmatpush1.bf16.msra.mxu1 %v8770_v40  ;;  %v3141_v17 = vmul.f32 %v3117_v1, %v8771_v51  ;;  %v3142_v21 = vmul.f32 %v3129_v61, %v8772_v42  ;;  %v8787_v40 = vpack.c.bf16 %v8785_v44, %v8786_v58  ;;  %v8789_v1 = vld [vmem:[#allocation62_spill] sm:$0xff] }
 0x905   : > { %v3090_v36 = vpop.permute.xlu1 %3089  ;;  %v5131_v27 = vpack.c.bf16 %v3144_v12, %v3140_v38 }
 0x906   : > { %v3126_v2 = vsel %vm1919_vm15, %v3090_v36, %v3098_v46  ;;  %v3160_v37 = vpop.permute.xlu0 %3159 }
 0x907   : > { %v3143_v28 = vmul.f32 %v3126_v2, %v8765_v53  ;;  %5132 = vmatprep.subr.bf16.mxu0 %v5131_v27  ;;  %v8777_v53 = vpack.c.bf16 %v7562_v32, %v7556_v33 }
 0x909   : > { %v5133_v63 = vpack.c.bf16 %v3143_v28, %v3139_v56  ;;  %v3114_v16 = vpop.permute.xlu1 %3113  ;;  %v8788_v28 = vld [vmem:[#allocation63_spill] sm:$0xff] }
 0x90a   : > { %v3118_v25 = vsel %vm1919_vm15, %v3106_v23, %v3114_v16  ;;  %v3130_v11 = vsel %vm1919_vm15, %v3114_v16, %v3090_v36  ;;  %v3168_v35 = vpop.permute.xlu0 %3167  ;;  %v8790_v61 = vpack.c.bf16 %v8788_v28, %v8789_v1 }
 0x90b   : > { %v3145_v41 = vmul.f32 %v3118_v25, %v8771_v51  ;;  %v3146_v20 = vmul.f32 %v3130_v11, %v8772_v42  ;;  %5134 = vmatpush1.bf16.msra.mxu0 %v5133_v63  ;;  %v3185_v54 = vsel %vm2000_vm0, %v3160_v37, %v3168_v35  ;;  %v2746_v63 = vld [vmem:[%s5741_s0 + $0x18] sm:$0xff] }
 0x90c   : > { %5136 = vmatprep.subr.bf16.mxu0 %v8775_v15  ;;  %v3204_v57 = vmul.f32 %v3185_v54, %v8778_v48  ;;  %v2750_v25 = vld [vmem:[%s5741_s0 + $0x38] sm:$0xff]  ;;  %v2753_v54 = vld [vmem:[%s5741_s0 + $0x50] sm:$0xff] }
 0x90d   : > { %v5205_v7 = vpack.c.bf16 %v3145_v41, %v3141_v17  ;;  %v3162_v50 = vpop.permute.xlu1 %3161  ;;  %v5203_v29 = vpack.c.bf16 %v3146_v20, %v3142_v21  ;;  %v8792_v51 = vld [vmem:[#allocation65_spill] sm:$0xff]  ;;  %v8794_v21 = vld [vmem:[#allocation23_spill] sm:$0xff] }
 0x90e   : > { %v3152_v10 = vpop.permute.xlu0 %3151 }
 0x90f   : > { %5138 = vmatpush1.bf16.msra.mxu0 %v8776_v26  ;;  %5204 = vmatprep.subr.bf16.mxu1 %v5203_v29  ;;  %v3189_v9 = vsel %vm2000_vm0, %v3152_v10, %v3160_v37  ;;  %v2747_v37 = vld [vmem:[%s5741_s0 + $0x20] sm:$0xff] }
 0x910   : > { %5206 = vmatpush1.bf16.msra.mxu1 %v5205_v7  ;;  %v3203_v39 = vmul.f32 %v3189_v9, %v8782_v8  ;;  %v8795_v7 = vld [vmem:[#allocation66_spill] sm:$0xff] }
 0x911   : > { %v3170_v52 = vpop.permute.xlu1 %3169  ;;  %5208 = vmatprep.subr.bf16.mxu1 %v8777_v53  ;;  %v8798_v53 = vld [vmem:[#allocation24_spill] sm:$0xff] }
 0x912   : > { %v3186_v59 = vsel %vm2000_vm0, %v3162_v50, %v3170_v52  ;;  %v3176_v6 = vpop.permute.xlu0 %3175 }
 0x913   : > { %v3208_v14 = vmul.f32 %v3186_v59, %v8778_v48  ;;  %v3181_v31 = vsel %vm2000_vm0, %v3168_v35, %v3176_v6  ;;  %v3193_v3 = vsel %vm2000_vm0, %v3176_v6, %v3152_v10  ;;  %v8791_v35 = vld [vmem:[#allocation67_spill] sm:$0xff] }
 0x914   : > { %5210 = vmatpush1.bf16.msra.mxu1 %v8781_v55  ;;  %v3205_v5 = vmul.f32 %v3181_v31, %v8783_v0  ;;  %v3206_v45 = vmul.f32 %v3193_v3, %v8784_v49  ;;  %v8793_v17 = vpack.c.bf16 %v8791_v35, %v8792_v51  ;;  %v8801_v31 = vmov 0.0  }
 0x915   : > { %v3154_v60 = vpop.permute.xlu1 %3153  ;;  %v5139_v4 = vpack.c.bf16 %v3208_v14, %v3204_v57  ;;  %v2752_v57 = vld [vmem:[%s5741_s0 + $0x48] sm:$0xff] }
 0x916   : > { %v3190_v33 = vsel %vm2000_vm0, %v3154_v60, %v3162_v50  ;;  %v3224_v32 = vpop.permute.xlu0 %3223  ;;  %v8796_v50 = vld [vmem:[#allocation64_spill] sm:$0xff] }
 0x917   : > { %v3207_v43 = vmul.f32 %v3190_v33, %v8782_v8  ;;  %5140 = vmatprep.subr.bf16.mxu0 %v5139_v4  ;;  %v8797_v29 = vpack.c.bf16 %v8795_v7, %v8796_v50  ;;  %v8800_v33 = vld [vmem:[#allocation26_spill] sm:$0xff] }
 0x919   : > { %v5141_v46 = vpack.c.bf16 %v3207_v43, %v3203_v39  ;;  %v3178_v13 = vpop.permute.xlu1 %3177  ;;  %v2745_v43 = vld [vmem:[%s5741_s0 + $0x10] sm:$0xff] }
 0x91a   : > { %v3182_v47 = vsel %vm2000_vm0, %v3170_v52, %v3178_v13  ;;  %v3194_v18 = vsel %vm2000_vm0, %v3178_v13, %v3154_v60  ;;  %v3232_v23 = vpop.permute.xlu0 %3231  ;;  %v2751_v13 = vld [vmem:[%s5741_s0 + $0x40] sm:$0xff] }
 0x91b   : > { %v3209_v38 = vmul.f32 %v3182_v47, %v8783_v0  ;;  %v3210_v12 = vmul.f32 %v3194_v18, %v8784_v49  ;;  %5142 = vmatpush1.bf16.msra.mxu0 %v5141_v46  ;;  %v3249_v16 = vsel %vm2081_vm1, %v3224_v32, %v3232_v23  ;;  %v2754_v47 = vld [vmem:[%s5741_s0 + $0x58] sm:$0xff] }
 0x91c   : > { %5144 = vmatprep.subr.bf16.mxu0 %v8787_v40  ;;  %v3268_v41 = vmul.f32 %v3249_v16, %v8794_v21 }
 0x91d   : > { %v5213_v36 = vpack.c.bf16 %v3209_v38, %v3205_v5  ;;  %v3226_v27 = vpop.permute.xlu1 %3225  ;;  %v5211_v2 = vpack.c.bf16 %v3210_v12, %v3206_v45 }
 0x91e   : > { %v3216_v56 = vpop.permute.xlu0 %3215  ;;  %3352 = vmatmul.mubr.f32.vlgmr.msra.gmra.mrb[8].mxu0 %v2743_v34 }
 0x91f   : > { %5146 = vmatpush1.bf16.msra.mxu0 %v8790_v61  ;;  %5212 = vmatprep.subr.bf16.mxu1 %v5211_v2  ;;  %v3253_v62 = vsel %vm2081_vm1, %v3216_v56, %v3224_v32 }
 0x920   : > { %5214 = vmatpush1.bf16.msra.mxu1 %v5213_v36  ;;  %3357 = vmatprep.mubr.f32.mxu0 %v2747_v37  ;;  %v3267_v59 = vmul.f32 %v3253_v62, %v8798_v53 }
 0x921   : > { %v3234_v11 = vpop.permute.xlu1 %3233  ;;  %5216 = vmatprep.subr.bf16.mxu1 %v8793_v17 }
 0x922   : > { %v3250_v42 = vsel %vm2081_vm1, %v3226_v27, %v3234_v11  ;;  %3358 = vmatmul.mubr.f32.gmra.mrb[10].mxu0 %v2746_v63  ;;  %v3240_v15 = vpop.permute.xlu0 %3239 }
 0x923   : > { %v3272_v20 = vmul.f32 %v3250_v42, %v8794_v21  ;;  %3530 = vmatmul.mubr.f32.vlgmr.msra.gmra.mrb[8].mxu1 %v2743_v34  ;;  %3363 = vmatprep.mubr.f32.mxu0 %v2750_v25  ;;  %v3245_v6 = vsel %vm2081_vm1, %v3232_v23, %v3240_v15  ;;  %v3257_v14 = vsel %vm2081_vm1, %v3240_v15, %v3216_v56 }
 0x924   : > { %5218 = vmatpush1.bf16.msra.mxu1 %v8797_v29  ;;  %3535 = vmatprep.mubr.f32.mxu1 %v2747_v37  ;;  %v3269_v55 = vmul.f32 %v3245_v6, %v8799_v19  ;;  %v3270_v32 = vmul.f32 %v3257_v14, %v8800_v33 }
 0x925   : > { %v3218_v10 = vpop.permute.xlu1 %3217  ;;  %v5147_v26 = vpack.c.bf16 %v3272_v20, %v3268_v41 }
 0x926   : > { %v3254_v52 = vsel %vm2081_vm1, %v3218_v10, %v3226_v27  ;;  %3364 = vmatmul.mubr.f32.gmra.mrb[12].mxu0 %v2749_v24 }
 0x927   : > { %v3271_v48 = vmul.f32 %v3254_v52, %v8798_v53  ;;  %5148 = vmatprep.subr.bf16.mxu0 %v5147_v26  ;;  %3536 = vmatmul.mubr.f32.gmra.mrb[10].mxu1 %v2746_v63 }
 0x928   : > { %3369 = vmatprep.mubr.f32.mxu0 %v2753_v54  ;;  %3541 = vmatprep.mubr.f32.mxu1 %v2750_v25 }
 0x929   : > { %v5149_v9 = vpack.c.bf16 %v3271_v48, %v3267_v59  ;;  %v3242_v30 = vpop.permute.xlu1 %3241 }
 0x92a   : > { %v3246_v60 = vsel %vm2081_vm1, %v3234_v11, %v3242_v30  ;;  %v3258_v4 = vsel %vm2081_vm1, %v3242_v30, %v3218_v10  ;;  %3370 = vmatmul.mubr.f32.gmra.mrb[14].mxu0 %v2752_v57 }
 0x92b   : > { %v3273_v8 = vmul.f32 %v3246_v60, %v8799_v19  ;;  %v3274_v39 = vmul.f32 %v3258_v4, %v8800_v33  ;;  %5150 = vmatpush1.bf16.msra.mxu0 %v5149_v9  ;;  %3542 = vmatmul.mubr.f32.gmra.mrb[12].mxu1 %v2749_v24 }
 0x92c   : > { %3440 = vmatprep.mubr.f32.mxu0 %v8801_v31  ;;  %3547 = vmatprep.mubr.f32.mxu1 %v2753_v54 }
 0x92d   : > { %v5221_v3 = vpack.c.bf16 %v3273_v8, %v3269_v55  ;;  %v5219_v46 = vpack.c.bf16 %v3274_v39, %v3270_v32 }
 0x92e   : > { %4767 = vmatmul.mubr.msk.f32.vlgmr.msra.gmra.mrb[8].mxu0 %vm2130_vm2, %v2745_v43 }
 0x92f   : > { %3548 = vmatmul.mubr.f32.gmra.mrb[14].mxu1 %v2752_v57  ;;  %5220 = vmatprep.subr.bf16.mxu1 %v5219_v46 }
 0x930   : > { %5222 = vmatpush1.bf16.msra.mxu1 %v5221_v3  ;;  %3446 = vmatprep.mubr.f32.mxu0 %v8801_v31 }
 0x931   : > { %3618 = vmatprep.mubr.f32.mxu1 %v8801_v31 }
 0x932   : > { %4768 = vmatmul.mubr.msk.f32.gmra.mrb[10].mxu0 %vm2130_vm2, %v2748_v22 }
 0x933   : > { %4771 = vmatmul.mubr.msk.f32.vlgmr.msra.gmra.mrb[8].mxu1 %vm2130_vm2, %v2745_v43  ;;  %3452 = vmatprep.mubr.f32.mxu0 %v8801_v31 }
 0x934   : > { %3624 = vmatprep.mubr.f32.mxu1 %v8801_v31 }
 0x936   : > { %4769 = vmatmul.mubr.msk.f32.gmra.mrb[12].mxu0 %vm2130_vm2, %v2751_v13 }
 0x937   : > { %4772 = vmatmul.mubr.msk.f32.gmra.mrb[10].mxu1 %vm2130_vm2, %v2748_v22  ;;  %3458 = vmatprep.mubr.f32.mxu0 %v8801_v31 }
 0x938   : > { %3630 = vmatprep.mubr.f32.mxu1 %v8801_v31 }
 0x93a   : > { %4770 = vmatmul.mubr.msk.f32.gmra.mrb[14].mxu0 %vm2130_vm2, %v2754_v47 }
 0x93b   : > { %4773 = vmatmul.mubr.msk.f32.gmra.mrb[12].mxu1 %vm2130_vm2, %v2751_v13 }
 0x93c   : > { %3636 = vmatprep.mubr.f32.mxu1 %v8801_v31 }
 0x93f   : > { %4774 = vmatmul.mubr.msk.f32.gmra.mrb[14].mxu1 %vm2130_vm2, %v2754_v47 }
 0xa01   : > { %v3442_v18 = vpop.f32.mrb[8].mxu0 }
 0xa02   : > { %v3444_v23 = vpop.f32.mrb[9].mxu0 }
 0xa03   : > { %v3643_v0 = vadd.f32 %v3444_v23, %v3442_v18 }
 0xa05   : > { %v3448_v5 = vpop.f32.mrb[10].mxu0 }
 0xa06   : > { %v3450_v49 = vpop.f32.mrb[11].mxu0  ;;  %v3620_v45 = vpop.f32.mrb[8].mxu1 }
 0xa07   : > { %v3648_v38 = vadd.f32 %v3450_v49, %v3448_v5  ;;  %v3644_v12 = vadd.f32 %v3643_v0, %v3620_v45  ;;  %v3622_v34 = vpop.f32.mrb[9].mxu1 }
 0xa09   : > { %v3645_v44 = vadd.f32 %v3644_v12, %v3622_v34  ;;  %v3454_v58 = vpop.f32.mrb[12].mxu0 }
 0xa0a   : > { %v3456_v40 = vpop.f32.mrb[13].mxu0  ;;  %v3626_v36 = vpop.f32.mrb[10].mxu1 }
 0xa0b   : > { %v3653_v27 = vadd.f32 %v3456_v40, %v3454_v58  ;;  %v3649_v2 = vadd.f32 %v3648_v38, %v3626_v36  ;;  %3646 = vadd.xlane.f32.xlu0 %v3645_v44  ;;  %v3628_v37 = vpop.f32.mrb[11].mxu1 }
 0xa0d   : > { %v3650_v56 = vadd.f32 %v3649_v2, %v3628_v37  ;;  %v3460_v28 = vpop.f32.mrb[14].mxu0 }
 0xa0e   : > { %v3462_v1 = vpop.f32.mrb[15].mxu0  ;;  %v3632_v61 = vpop.f32.mrb[12].mxu1 }
 0xa0f   : > { %v3658_v63 = vadd.f32 %v3462_v1, %v3460_v28  ;;  %v3654_v16 = vadd.f32 %v3653_v27, %v3632_v61  ;;  %3651 = vadd.xlane.f32.xlu1 %v3650_v56  ;;  %v3634_v25 = vpop.f32.mrb[13].mxu1 }
 0xa11   : > { %v3655_v11 = vadd.f32 %v3654_v16, %v3634_v25 }
 0xa12   : > { %v3638_v35 = vpop.f32.mrb[14].mxu1 }
 0xa13   : > { %v3659_v51 = vadd.f32 %v3658_v63, %v3638_v35  ;;  %3656 = vadd.xlane.f32.xlu0 %v3655_v11  ;;  %v3640_v17 = vpop.f32.mrb[15].mxu1  ;;  %v3855_v63 = vld [vmem:[%s8556_s1 + $0x180] sm:$0xff] }
 0xa14   : > { %v3807_v11 = vld [vmem:[%s8556_s1] sm:$0xff] }
 0xa15   : > { %v3660_v42 = vadd.f32 %v3659_v51, %v3640_v17 }
 0xa17   : > { %3661 = vadd.xlane.f32.xlu0 %v3660_v42  ;;  %v3839_v42 = vld [vmem:[%s8556_s1 + $0x100] sm:$0xff] }
 0xa98   : > { %v3647_v21 = vpop.xlane.xlu0 %3646 }
 0xa99   : > { %v3663_v41 = vmul.f32 0.001953125, %v3647_v21  ;;  %v3840_v21 = vld [vmem:[%s8556_s1 + $0x108] sm:$0xff] }
 0xa9b   : > { %v8094_v20 = vsub.f32 %v3442_v18, %v3663_v41  ;;  %v8096_v24 = vsub.f32 %v3444_v23, %v3663_v41  ;;  %v8098_v62 = vsub.f32 %v3620_v45, %v3663_v41  ;;  %v8100_v7 = vsub.f32 %v3622_v34, %v3663_v41  ;;  %v3825_v41 = vld [vmem:[%s8556_s1 + $0x90] sm:$0xff] }
 0xa9c   : > { %v3652_v15 = vpop.xlane.xlu1 %3651 }
 0xa9d   : > { %v3664_v50 = vmul.f32 0.001953125, %v3652_v15  ;;  %v3683_v29 = vmul.f32 %v8094_v20, %v8094_v20  ;;  %v3684_v10 = vmul.f32 %v8096_v24, %v8096_v24  ;;  %v3685_v52 = vmul.f32 %v8098_v62, %v8098_v62 }
 0xa9e   : > { %v3686_v48 = vmul.f32 %v8100_v7, %v8100_v7  ;;  %v5257_v15 = vpack.c.bf16 %v3840_v21, %v3839_v42  ;;  %v3848_v21 = vld [vmem:[%s8556_s1 + $0x148] sm:$0xff] }
 0xa9f   : > { %v8106_v26 = vsub.f32 %v3448_v5, %v3664_v50  ;;  %v8108_v54 = vsub.f32 %v3450_v49, %v3664_v50  ;;  %v3699_v53 = vadd.f32 %v3684_v10, %v3683_v29  ;;  %v8112_v59 = vsub.f32 %v3626_v36, %v3664_v50  ;;  %v3857_v29 = vld [vmem:[%s8556_s1 + $0x190] sm:$0xff]  ;;  %v3858_v10 = vld [vmem:[%s8556_s1 + $0x198] sm:$0xff] }
 0xaa0   : > { %v3657_v6 = vpop.xlane.xlu0 %3656  ;;  %v8120_v19 = vsub.f32 %v3628_v37, %v3664_v50  ;;  %v3826_v50 = vld [vmem:[%s8556_s1 + $0x98] sm:$0xff] }
 0xaa1   : > { %v3665_v57 = vmul.f32 0.001953125, %v3657_v6  ;;  %v3700_v14 = vadd.f32 %v3699_v53, %v3685_v52  ;;  %v3687_v9 = vmul.f32 %v8106_v26, %v8106_v26  ;;  %v3688_v30 = vmul.f32 %v8108_v54, %v8108_v54  ;;  %v3809_v6 = vld [vmem:[%s8556_s1 + $0x10] sm:$0xff] }
 0xaa2   : > { %v3689_v8 = vmul.f32 %v8112_v59, %v8112_v59  ;;  %v3690_v13 = vmul.f32 %v8120_v19, %v8120_v19  ;;  %v5227_v52 = vpack.c.bf16 %v3826_v50, %v3825_v41  ;;  %v5259_v53 = vpack.c.bf16 %v3858_v10, %v3857_v29  ;;  %v3833_v41 = vld [vmem:[%s8556_s1 + $0xd0] sm:$0xff]  ;;  %v3866_v29 = vld [vmem:[%s8556_s1 + $0x1d8] sm:$0xff] }
 0xaa3   : > { %v8122_v55 = vsub.f32 %v3454_v58, %v3665_v57  ;;  %v8124_v60 = vsub.f32 %v3456_v40, %v3665_v57  ;;  %v8126_v4 = vsub.f32 %v3632_v61, %v3665_v57  ;;  %v3701_v33 = vadd.f32 %v3700_v14, %v3686_v48  ;;  %v3824_v61 = vld [vmem:[%s8556_s1 + $0x88] sm:$0xff]  ;;  %v3810_v48 = vld [vmem:[%s8556_s1 + $0x18] sm:$0xff]  ;;  %v3865_v50 = vld [vmem:[%s8556_s1 + $0x1d0] sm:$0xff] }
 0xaa4   : > { %v3662_v32 = vpop.xlane.xlu0 %3661  ;;  %v3704_v39 = vadd.f32 %v3688_v30, %v3687_v9  ;;  %v8130_v43 = vsub.f32 %v3634_v25, %v3665_v57  ;;  %v3856_v25 = vld [vmem:[%s8556_s1 + $0x188] sm:$0xff]  ;;  %v3841_v57 = vld [vmem:[%s8556_s1 + $0x110] sm:$0xff]  ;;  %v5229_v14 = vpack.c.bf16 %v3810_v48, %v3809_v6  ;;  %v3842_v9 = vld [vmem:[%s8556_s1 + $0x118] sm:$0xff] }
 0xaa5   : > { %v3666_v3 = vmul.f32 0.001953125, %v3662_v32  ;;  %3702 = vadd.xlane.f32.xlu1 %v3701_v33  ;;  %v3691_v46 = vmul.f32 %v8122_v55, %v8122_v55  ;;  %v3692_v22 = vmul.f32 %v8124_v60, %v8124_v60  ;;  %v3693_v18 = vmul.f32 %v8126_v4, %v8126_v4  ;;  %v3827_v30 = vld [vmem:[%s8556_s1 + $0xa0] sm:$0xff]  ;;  %v3828_v33 = vld [vmem:[%s8556_s1 + $0xa8] sm:$0xff]  ;;  %v3817_v6 = vld [vmem:[%s8556_s1 + $0x50] sm:$0xff] }
 0xaa6   : > { %v3705_v47 = vadd.f32 %v3704_v39, %v3689_v8  ;;  %v3694_v38 = vmul.f32 %v8130_v43, %v8130_v43  ;;  %v5255_v51 = vpack.c.bf16 %v3856_v25, %v3855_v63  ;;  %v5261_v32 = vpack.c.bf16 %v3842_v9, %v3841_v57  ;;  %v3859_v39 = vld [vmem:[%s8556_s1 + $0x1a0] sm:$0xff]  ;;  %v3864_v63 = vld [vmem:[%s8556_s1 + $0x1c8] sm:$0xff]  ;;  %v3818_v48 = vld [vmem:[%s8556_s1 + $0x58] sm:$0xff] }
 0xaa7   : > { %v8140_v23 = vsub.f32 %v3460_v28, %v3666_v3  ;;  %v8142_v0 = vsub.f32 %v3462_v1, %v3666_v3  ;;  %v8144_v5 = vsub.f32 %v3638_v35, %v3666_v3  ;;  %v3709_v49 = vadd.f32 %v3692_v22, %v3691_v46  ;;  %v2759_v28 = vld [vmem:[%s5751_s29] sm:$0xff]  ;;  %v3808_v35 = vld [vmem:[%s8556_s1 + $0x8] sm:$0xff]  ;;  %v3849_v57 = vld [vmem:[%s8556_s1 + $0x150] sm:$0xff] }
 0xaa8   : > { %v3706_v45 = vadd.f32 %v3705_v47, %v3690_v13  ;;  %v8148_v34 = vsub.f32 %v3640_v17, %v3666_v3  ;;  %v3823_v1 = vld [vmem:[%s8556_s1 + $0x80] sm:$0xff]  ;;  %v5225_v17 = vpack.c.bf16 %v3808_v35, %v3807_v11  ;;  %5256 = vmatprep.subr.bf16.mxu1 %v5255_v51  ;;  %v5231_v8 = vpack.c.bf16 %v3828_v33, %v3827_v30  ;;  %v3860_v3 = vld [vmem:[%s8556_s1 + $0x1a8] sm:$0xff]  ;;  %v3850_v9 = vld [vmem:[%s8556_s1 + $0x158] sm:$0xff] }
 0xaa9   : > { %v3710_v12 = vadd.f32 %v3709_v49, %v3693_v18  ;;  %v3695_v44 = vmul.f32 %v8140_v23, %v8140_v23  ;;  %v3696_v58 = vmul.f32 %v8142_v0, %v8142_v0  ;;  %v3697_v36 = vmul.f32 %v8144_v5, %v8144_v5  ;;  %5258 = vmatpush3.bf16.msra.mxu1 %v5257_v15  ;;  %v3811_v46 = vld [vmem:[%s8556_s1 + $0x20] sm:$0xff]  ;;  %v3812_v13 = vld [vmem:[%s8556_s1 + $0x28] sm:$0xff]  ;;  %v3834_v15 = vld [vmem:[%s8556_s1 + $0xd8] sm:$0xff] }
 0xaaa   : > { %3707 = vadd.xlane.f32.xlu0 %v3706_v45  ;;  %v3698_v2 = vmul.f32 %v8148_v34, %v8148_v34  ;;  %v5223_v16 = vpack.c.bf16 %v3824_v61, %v3823_v1  ;;  %5260 = vmatprep.subr.bf16.mxu1 %v5259_v53  ;;  %v5263_v22 = vpack.c.bf16 %v3860_v3, %v3859_v39  ;;  %v3843_v47 = vld [vmem:[%s8556_s1 + $0x120] sm:$0xff]  ;;  %v3844_v18 = vld [vmem:[%s8556_s1 + $0x128] sm:$0xff]  ;;  %v3829_v45 = vld [vmem:[%s8556_s1 + $0xb0] sm:$0xff] }
 0xaab   : > { %v3711_v40 = vadd.f32 %v3710_v12, %v3694_v38  ;;  %v3714_v27 = vadd.f32 %v3696_v58, %v3695_v44  ;;  %v5233_v49 = vpack.c.bf16 %v3812_v13, %v3811_v46  ;;  %v3830_v38 = vld [vmem:[%s8556_s1 + $0xb8] sm:$0xff]  ;;  %v3861_v12 = vld [vmem:[%s8556_s1 + $0x1b0] sm:$0xff]  ;;  %v5265_v44 = vpack.c.bf16 %v3844_v18, %v3843_v47  ;;  %v3832_v1 = vld [vmem:[%s8556_s1 + $0xc8] sm:$0xff] }
 0xaac   : > { %5224 = vmatprep.subr.bf16.mxu0 %v5223_v16  ;;  %v5235_v58 = vpack.c.bf16 %v3830_v38, %v3829_v45  ;;  %v3863_v61 = vld [vmem:[%s8556_s1 + $0x1c0] sm:$0xff]  ;;  %v3816_v51 = vld [vmem:[%s8556_s1 + $0x48] sm:$0xff]  ;;  %v5243_v53 = vpack.c.bf16 %v3834_v15, %v3833_v41  ;;  %v5245_v39 = vpack.c.bf16 %v3818_v48, %v3817_v6  ;;  %v5277_v3 = vpack.c.bf16 %v3850_v9, %v3849_v57  ;;  %v3853_v6 = vld [vmem:[%s8556_s1 + $0x170] sm:$0xff] }
 0xaad   : > { %3712 = vadd.xlane.f32.xlu1 %v3711_v40  ;;  %v3715_v37 = vadd.f32 %v3714_v27, %v3697_v36  ;;  %5226 = vmatpush3.bf16.msra.mxu0 %v5225_v17  ;;  %v3862_v40 = vld [vmem:[%s8556_s1 + $0x1b8] sm:$0xff]  ;;  %v3813_v36 = vld [vmem:[%s8556_s1 + $0x30] sm:$0xff]  ;;  %v3815_v35 = vld [vmem:[%s8556_s1 + $0x40] sm:$0xff]  ;;  %v5271_v42 = vpack.c.bf16 %v3864_v63, %v3863_v61 }
 0xaae   : > { %5228 = vmatprep.subr.bf16.mxu0 %v5227_v52  ;;  %5262 = vmatpush3.bf16.msra.mxu1 %v5261_v32  ;;  %v3814_v27 = vld [vmem:[%s8556_s1 + $0x38] sm:$0xff]  ;;  %v3847_v17 = vld [vmem:[%s8556_s1 + $0x140] sm:$0xff]  ;;  %v5241_v10 = vpack.c.bf16 %v3816_v51, %v3815_v35  ;;  %v3836_v33 = vld [vmem:[%s8556_s1 + $0xe8] sm:$0xff] }
 0xaaf   : > { %v3716_v56 = vadd.f32 %v3715_v37, %v3698_v2  ;;  %5264 = vmatprep.subr.bf16.mxu1 %v5263_v22  ;;  %v5267_v2 = vpack.c.bf16 %v3862_v40, %v3861_v12  ;;  %v3845_v37 = vld [vmem:[%s8556_s1 + $0x130] sm:$0xff]  ;;  %v5237_v16 = vpack.c.bf16 %v3814_v27, %v3813_v36  ;;  %v5273_v52 = vpack.c.bf16 %v3848_v21, %v3847_v17  ;;  %v3835_v30 = vld [vmem:[%s8556_s1 + $0xe0] sm:$0xff]  ;;  %v3820_v13 = vld [vmem:[%s8556_s1 + $0x68] sm:$0xff] }
 0xab0   : > { %v3867_v32 = vld [vmem:[%s8556_s1 + $0x1e0] sm:$0xff]  ;;  %v5247_v46 = vpack.c.bf16 %v3836_v33, %v3835_v30  ;;  %v2757_v35 = vld [vmem:[%s5746_s26 + $0x10] sm:$0xff]  ;;  %v3854_v48 = vld [vmem:[%s8556_s1 + $0x178] sm:$0xff] }
 0xab1   : > { %3717 = vadd.xlane.f32.xlu0 %v3716_v56  ;;  %5230 = vmatpush3.bf16.msra.mxu0 %v5229_v14  ;;  %v3846_v56 = vld [vmem:[%s8556_s1 + $0x138] sm:$0xff]  ;;  %v5275_v14 = vpack.c.bf16 %v3866_v29, %v3865_v50  ;;  %v3819_v22 = vld [vmem:[%s8556_s1 + $0x60] sm:$0xff]  ;;  %v3837_v17 = vld [vmem:[%s8556_s1 + $0xf0] sm:$0xff] }
 0xab2   : > { %5232 = vmatprep.subr.bf16.mxu0 %v5231_v8  ;;  %5266 = vmatpush3.bf16.msra.mxu1 %v5265_v44  ;;  %v5269_v25 = vpack.c.bf16 %v3846_v56, %v3845_v37  ;;  %v3868_v8 = vld [vmem:[%s8556_s1 + $0x1e8] sm:$0xff]  ;;  %v3851_v18 = vld [vmem:[%s8556_s1 + $0x160] sm:$0xff]  ;;  %v5249_v45 = vpack.c.bf16 %v3820_v13, %v3819_v22  ;;  %v3869_v21 = vld [vmem:[%s8556_s1 + $0x1f0] sm:$0xff] }
 0xab3   : > { %5268 = vmatprep.subr.bf16.mxu1 %v5267_v2  ;;  %v5279_v47 = vpack.c.bf16 %v3868_v8, %v3867_v32  ;;  %v2755_v61 = vld [vmem:[%s5746_s26] sm:$0xff]  ;;  %v3870_v50 = vld [vmem:[%s8556_s1 + $0x1f8] sm:$0xff]  ;;  %v3821_v29 = vld [vmem:[%s8556_s1 + $0x70] sm:$0xff] }
 0xab4   : > { %v2760_v30 = vld [vmem:[%s5751_s29 + $0x8] sm:$0xff]  ;;  %v2758_v33 = vld [vmem:[%s5746_s26 + $0x18] sm:$0xff]  ;;  %v2761_v8 = vld [vmem:[%s5751_s29 + $0x10] sm:$0xff] }
 0xab5   : > { %5234 = vmatpush3.bf16.msra.mxu0 %v5233_v49  ;;  %v3852_v49 = vld [vmem:[%s8556_s1 + $0x168] sm:$0xff] }
 0xab6   : > { %5236 = vmatprep.subr.bf16.mxu0 %v5235_v58  ;;  %5270 = vmatpush3.bf16.msra.mxu1 %v5269_v25  ;;  %v5281_v38 = vpack.c.bf16 %v3852_v49, %v3851_v18 }
 0xab7   : > { %5272 = vmatprep.subr.bf16.mxu1 %v5271_v42  ;;  %v3838_v42 = vld [vmem:[%s8556_s1 + $0xf8] sm:$0xff] }
 0xab8   : > { %v5251_v15 = vpack.c.bf16 %v3838_v42, %v3837_v17 }
 0xab9   : > { %5238 = vmatpush3.bf16.msra.mxu0 %v5237_v16 }
 0xaba   : > { %5274 = vmatpush3.bf16.msra.mxu1 %v5273_v52  ;;  %v5283_v52 = vpack.c.bf16 %v3870_v50, %v3869_v21 }
 0xabb   : > { %5276 = vmatprep.subr.bf16.mxu1 %v5275_v14  ;;  %v5285_v14 = vpack.c.bf16 %v3854_v48, %v3853_v6 }
 0xabe   : > { %5278 = vmatpush3.bf16.msra.mxu1 %v5277_v3  ;;  %v2762_v3 = vld [vmem:[%s5751_s29 + $0x18] sm:$0xff] }
 0xabf   : > { %5280 = vmatprep.subr.bf16.mxu1 %v5279_v47 }
 0xac2   : > { %5282 = vmatpush3.bf16.msra.mxu1 %v5281_v38 }
 0xac3   : > { %5284 = vmatprep.subr.bf16.mxu1 %v5283_v52 }
 0xac6   : > { %5286 = vmatpush3.bf16.msra.mxu1 %v5285_v14 }
 0xac7   : > { %3773 = vperm.xlu0 %5411, %v2759_v28   ;;  %v3831_v28 = vld [vmem:[%s8556_s1 + $0xc0] sm:$0xff] }
 0xac8   : > { %v5239_v11 = vpack.c.bf16 %v3832_v1, %v3831_v28 }
 0xaca   : > { %5240 = vmatprep.subr.bf16.mxu0 %v5239_v11  ;;  %v2756_v11 = vld [vmem:[%s5746_s26 + $0x8] sm:$0xff] }
 0xacb   : > { %5242 = vmatpush3.bf16.msra.mxu0 %v5241_v10  ;;  %v3822_v10 = vld [vmem:[%s8556_s1 + $0x78] sm:$0xff] }
 0xacc   : > { %5244 = vmatprep.subr.bf16.mxu0 %v5243_v53  ;;  %v5253_v53 = vpack.c.bf16 %v3822_v10, %v3821_v29 }
 0xacf   : > { %5246 = vmatpush3.bf16.msra.mxu0 %v5245_v39 }
 0xad0   : > { %5248 = vmatprep.subr.bf16.mxu0 %v5247_v46 }
 0xad3   : > { %5250 = vmatpush3.bf16.msra.mxu0 %v5249_v45 }
 0xad4   : > { %5252 = vmatprep.subr.bf16.mxu0 %v5251_v15 }
 0xad7   : > { %5254 = vmatpush3.bf16.msra.mxu0 %v5253_v53 }
 0xb32   : > { %v3703_v12 = vpop.xlane.xlu1 %3702 }
 0xb33   : > { %v3719_v44 = vmul.f32 0.001953125, %v3703_v12 }
 0xb35   : > { %v3723_v58 = vadd.f32 1e-05, %v3719_v44 }
 0xb37   : > { %5453 = vrsqrt.f32 %v3723_v58  ;;  %v3708_v40 = vpop.xlane.xlu0 %3707 }
 0xb38   : > { %v3720_v36 = vmul.f32 0.001953125, %v3708_v40 }
 0xb3a   : > { %v3724_v27 = vadd.f32 1e-05, %v3720_v36  ;;  %v3713_v2 = vpop.xlane.xlu1 %3712 }
 0xb3b   : > { %v3721_v37 = vmul.f32 0.001953125, %v3713_v2 }
 0xb3c   : > { %5455 = vrsqrt.f32 %v3724_v27 }
 0xb3d   : > { %v3725_v56 = vadd.f32 1e-05, %v3721_v37 }
 0xb3e   : > { %v3718_v28 = vpop.xlane.xlu0 %3717 }
 0xb3f   : > { %5457 = vrsqrt.f32 %v3725_v56  ;;  %v3722_v1 = vmul.f32 0.001953125, %v3718_v28 }
 0xb41   : > { %v5454_v63 = vpop.eup %5453  ;;  %v3726_v16 = vadd.f32 1e-05, %v3722_v1 }
 0xb42   : > { %v3731_v25 = vmul.f32 %v5454_v63, %v2755_v61 }
 0xb43   : > { %5459 = vrsqrt.f32 %v3726_v16 }
 0xb44   : > { %3737 = vperm.xlu1 %5410, %v3731_v25  }
 0xb46   : > { %v5456_v51 = vpop.eup %5455  ;;  %v3774_v49 = vpop.permute.xlu0 %3773 }
 0xb47   : > { %v3732_v41 = vmul.f32 %v5456_v51, %v2756_v11 }
 0xb49   : > { %v5458_v57 = vpop.eup %5457  ;;  %3742 = vperm.xlu1 %5410, %v3732_v41  }
 0xb4a   : > { %v3733_v9 = vmul.f32 %v5458_v57, %v2757_v35 }
 0xb4c   : > { %3747 = vperm.xlu0 %5411, %v3733_v9  }
 0xb4d   : > { %v5460_v32 = vpop.eup %5459  ;;  %3778 = vperm.xlu1 %5410, %v2760_v30  }
 0xb4e   : > { %v3734_v39 = vmul.f32 %v5460_v32, %v2758_v33 }
 0xb50   : > { %3752 = vperm.xlu0 %5411, %v3734_v39  }
 0xb51   : > { %3783 = vperm.xlu1 %5410, %v2761_v8  }
 0xb55   : > { %3788 = vperm.xlu1 %5410, %v2762_v3  }
 0xbc3   : > { %v3738_v46 = vpop.permute.xlu1 %3737 }
 0xbc4   : > { %v3755_v22 = vmul.f32 %v3738_v46, %v8094_v20  ;;  %v3756_v13 = vmul.f32 %v3738_v46, %v8096_v24  ;;  %v3757_v47 = vmul.f32 %v3738_v46, %v8098_v62  ;;  %v3758_v18 = vmul.f32 %v3738_v46, %v8100_v7 }
 0xbc6   : > { %v8362_v45 = vadd.f32 %v3774_v49, %v3755_v22  ;;  %v8364_v38 = vadd.f32 %v3774_v49, %v3757_v47  ;;  %v8366_v12 = vadd.f32 %v3774_v49, %v3756_v13  ;;  %v8368_v44 = vadd.f32 %v3774_v49, %v3758_v18 }
 0xbc8   : > { %v3743_v58 = vpop.permute.xlu1 %3742  ;;  %3935 = vmatprep.mubr.f32.mxu0 %v8366_v12  ;;  %4020 = vmatprep.mubr.f32.mxu1 %v8368_v44 }
 0xbc9   : > { %3936 = vmatmul.mubr.f32.vlgmr.msra.gmra.mrb[16].mxu0 %v8362_v45  ;;  %4021 = vmatmul.mubr.f32.vlgmr.msra.gmra.mrb[16].mxu1 %v8364_v38  ;;  %v3759_v20 = vmul.f32 %v3743_v58, %v8106_v26  ;;  %v3760_v24 = vmul.f32 %v3743_v58, %v8108_v54  ;;  %v3761_v62 = vmul.f32 %v3743_v58, %v8112_v59 }
 0xbca   : > { %v3762_v7 = vmul.f32 %v3743_v58, %v8120_v19 }
 0xbcb   : > { %v3748_v40 = vpop.permute.xlu0 %3747 }
 0xbcc   : > { %v3779_v36 = vpop.permute.xlu1 %3778  ;;  %v3763_v28 = vmul.f32 %v3748_v40, %v8122_v55  ;;  %v3764_v26 = vmul.f32 %v3748_v40, %v8124_v60  ;;  %v3766_v54 = vmul.f32 %v3748_v40, %v8130_v43  ;;  %v3765_v19 = vmul.f32 %v3748_v40, %v8126_v4 }
 0xbcd   : > { %v8378_v27 = vadd.f32 %v3779_v36, %v3760_v24  ;;  %v8380_v2 = vadd.f32 %v3779_v36, %v3762_v7  ;;  %v8382_v37 = vadd.f32 %v3779_v36, %v3759_v20  ;;  %v8384_v56 = vadd.f32 %v3779_v36, %v3761_v62  ;;  %v4041_v24 = vld [vmem:[%s5761_s24] sm:$0xf]  ;;  %s8802_s24 = sld [smem:[#allocation69_spill]] }
 0xbce   : > { %v4120_v62 = vld [vmem:[%s5756_s21] sm:$0xff] }
 0xbcf   : > { %3940 = vmatprep.mubr.f32.mxu0 %v8378_v27  ;;  %4025 = vmatprep.mubr.f32.mxu1 %v8380_v2  ;;  %v3753_v59 = vpop.permute.xlu0 %3752 }
 0xbd0   : > { %v3784_v1 = vpop.permute.xlu1 %3783  ;;  %3941 = vmatmul.mubr.f32.gmra.mrb[18].mxu0 %v8382_v37  ;;  %4026 = vmatmul.mubr.f32.gmra.mrb[18].mxu1 %v8384_v56  ;;  %v3767_v60 = vmul.f32 %v3753_v59, %v8140_v23  ;;  %v3768_v16 = vmul.f32 %v3753_v59, %v8142_v0  ;;  %v3769_v25 = vmul.f32 %v3753_v59, %v8144_v5  ;;  %v5585_v5 = vmov 0.0|0.0  }
 0xbd1   : > { %v8394_v61 = vadd.f32 %v3784_v1, %v3764_v26  ;;  %v8396_v63 = vadd.f32 %v3784_v1, %v3766_v54  ;;  %v8398_v55 = vadd.f32 %v3784_v1, %v3763_v28  ;;  %v8401_v43 = vadd.f32 %v3784_v1, %v3765_v19  ;;  %5287 = vmatprep.subr.bf16.mxu0 %v5585_v5  ;;  %v4121_v19 = vld [vmem:[%s5756_s21 + $0x8] sm:$0xff]  ;;  %v4122_v1 = vld [vmem:[%s5756_s21 + $0x10] sm:$0xff] }
 0xbd2   : > { %v3770_v4 = vmul.f32 %v3753_v59, %v8148_v34 }
 0xbd3   : > { %3945 = vmatprep.mubr.f32.mxu0 %v8394_v61  ;;  %4030 = vmatprep.mubr.f32.mxu1 %v8396_v63 }
 0xbd4   : > { %v3789_v11 = vpop.permute.xlu1 %3788  ;;  %3946 = vmatmul.mubr.f32.gmra.mrb[20].mxu0 %v8398_v55  ;;  %4031 = vmatmul.mubr.f32.gmra.mrb[20].mxu1 %v8401_v43 }
 0xbd5   : > { %v8410_v35 = vadd.f32 %v3789_v11, %v3767_v60  ;;  %v8412_v23 = vadd.f32 %v3789_v11, %v3768_v16  ;;  %v8414_v51 = vadd.f32 %v3789_v11, %v3769_v25  ;;  %v8416_v0 = vadd.f32 %v3789_v11, %v3770_v4  ;;  %v4123_v60 = vld [vmem:[%s5756_s21 + $0x18] sm:$0xff]  ;;  %v4250_v16 = vld [vmem:[%s8802_s24] sm:$0xff]  ;;  %s5588_s21 = smov [#allocation2]  }
 0xbd6   : > { %v5587_v25 = vmov 1983009808   ;;  %s4603_s0 = sshll.u32 %s5588_s21, 4  ;;  %s4604_s0 = int_to_ptr.vmem [resolvable:$true] %s4603_s0 }
 0xbd7   : > { %3950 = vmatprep.mubr.f32.mxu0 %v8412_v23  ;;  %4035 = vmatprep.mubr.f32.mxu1 %v8416_v0  ;;  %v4254_v4 = vunpack.c.l.s4 %v5587_v25  ;;  %v5514_v25 = vld [vmem:[#allocation2 + $0x18] sm:$0xff]  ;;  %s5527_s18 = scalar_lea.vmem %s4604_s0, 2048  ;;  %p5534_p9 = scmp.lt.s32.totalorder %s4604_s0, %s4604_s0 }
 0xbd8   : > { %3951 = vmatmul.mubr.f32.gmra.mrb[22].mxu0 %v8410_v35  ;;  %4036 = vmatmul.mubr.f32.gmra.mrb[22].mxu1 %v8414_v51  ;;  %p5528_p6 = scmp.ne.s32.totalorder %s4604_s0, %s5527_s18  ;;  %p5535_p10 = scmp.lt.s32.totalorder %s5527_s18, %s5527_s18 }
 0xbd9   : > { %4908 = vmatprep.mubr.msk.f32.mxu0 %vm5586_vm3, %v8801_v31  ;;  %4913 = vmatprep.mubr.msk.f32.mxu1 %vm4124_vm4, %v4120_v62  ;;  %v4255_v11 = vunpack.c.0.s8 %v4254_v4 }
 0xbda   : > { %p5529_p7 = pnand %p5528_p6, %p5330_p5  ;;  %p5536_p11 = por %p5535_p10, %p5534_p9 }
 0xbdc   : > { %p5530_p8 = pneg %p5529_p7 }
 0xbde   : > { %p5537_p12 = pnand %p5536_p11, %p5530_p8 }
 0xc9c   : > { %v4834_v34 = vpop.f32.mrb[16].mxu0  ;;  %v4878_v17 = vpop.f32.mrb[16].mxu1 }
 0xc9d   : > { %v4835_v42 = vpop.f32.mrb[17].mxu0  ;;  %v4879_v41 = vpop.f32.mrb[17].mxu1 }
 0xc9e   : > { %v4836_v21 = vadd.f32 %v4835_v42, %v4834_v34  ;;  %v4880_v15 = vadd.f32 %v4879_v41, %v4878_v17  ;;  %v8803_v34 = vld [vmem:[#allocation6_spill] sm:$0xff] }
 0xc9f   : > { %v4258_v17 = vsub.s32 %v4255_v11, %v8803_v34 }
 0xca0   : > { %v4023_v50 = vadd.f32 %v4880_v15, %v4836_v21 }
 0xca1   : > { %v4259_v42 = vrot.slane %v4250_v16, %v4258_v17 }
 0xca3   : > { %v4837_v29 = vpop.f32.mrb[18].mxu0  ;;  %v4881_v10 = vpop.f32.mrb[18].mxu1  ;;  %v4267_v41 = vcombine.high %v4259_v42, %v4259_v42 }
 0xca4   : > { %v4838_v52 = vpop.f32.mrb[19].mxu0  ;;  %v4882_v53 = vpop.f32.mrb[19].mxu1 }
 0xca5   : > { %v4839_v6 = vadd.f32 %v4838_v52, %v4837_v29  ;;  %v4883_v48 = vadd.f32 %v4882_v53, %v4881_v10 }
 0xca7   : > { %v4028_v57 = vadd.f32 %v4883_v48, %v4839_v6  ;;  %v4840_v14 = vpop.f32.mrb[20].mxu0  ;;  %v4884_v9 = vpop.f32.mrb[20].mxu1 }
 0xca8   : > { %v4841_v30 = vpop.f32.mrb[21].mxu0  ;;  %v4885_v33 = vpop.f32.mrb[21].mxu1 }
 0xca9   : > { %v5288_v32 = vpack.c.bf16 %v4028_v57, %v4023_v50  ;;  %v4842_v8 = vadd.f32 %v4841_v30, %v4840_v14  ;;  %v4886_v39 = vadd.f32 %v4885_v33, %v4884_v9 }
 0xcab   : > { %v4033_v3 = vadd.f32 %v4886_v39, %v4842_v8  ;;  %v4843_v46 = vpop.f32.mrb[22].mxu0  ;;  %v4887_v22 = vpop.f32.mrb[22].mxu1  ;;  %5289 = vmatpush3.bf16.msra.mxu0 %v5288_v32 }
 0xcac   : > { %v4844_v13 = vpop.f32.mrb[23].mxu0  ;;  %v4888_v47 = vpop.f32.mrb[23].mxu1  ;;  %5290 = vmatprep.subr.bf16.mxu0 %v5585_v5  ;;  %v4252_v5 = vcombine.high %v4250_v16, %v4250_v16 }
 0xcad   : > { %v4845_v18 = vadd.f32 %v4844_v13, %v4843_v46  ;;  %v4889_v49 = vadd.f32 %v4888_v47, %v4887_v22 }
 0xcae   : > { %v4266_v21 = vrot.slane %v4252_v5, %v4258_v17 }
 0xcaf   : > { %v4038_v58 = vadd.f32 %v4889_v49, %v4845_v18 }
 0xcb0   : > { %v4268_v15 = vcombine.high %v4266_v21, %v4266_v21 }
 0xcb1   : > { %v5291_v20 = vpack.c.bf16 %v4038_v58, %v4033_v3 }
 0xcb3   : > { %5292 = vmatpush3.bf16.msra.mxu0 %v5291_v20 }
 0xcb4   : > { %4781 = vmatprep.subr.msk.mxu0 %vm4282_vm6, %v4267_v41 }
 0xcb6   : > { %4909 = vmatmul.mubr.msk.f32.vlgmr.msra.gmra.mrb[24].mxu0 %vm2130_vm2, %v4041_v24 }
 0xcb7   : > { %4355 = vmatprep.mubr.f32.mxu0 %v8801_v31  ;;  %4782 = vmatpush1.msk.msra.mxu0 %vm4282_vm6, %v4259_v42 }
 0xd89   : > { %v4111_v7 = vpop.f32.mrb[24].mxu0 }
 0xd8a   : > { %v4116_v40 = vmul.f32 0.70710677, %v4111_v7  ;;  %v4910_v36 = vpop.f32.mrb[25].mxu0  ;;  %v4115_v26 = vmul.f32 0.5, %v4111_v7 }
 0xd8c   : > { %5461 = verf.f32 %v4116_v40 }
 0xd96   : > { %v5462_v28 = vpop.eup %5461 }
 0xd97   : > { %v4118_v54 = vadd.f32 1.0, %v5462_v28 }
 0xd99   : > { %v4119_v59 = vmul.f32 %v4118_v54, %v4115_v26 }
 0xd9b   : > { %4911 = vmatprep.subr.msk.mxu1 %vm4137_vm5, %v4119_v59 }
 0xd9c   : > { %4912 = vmatpush3.msk.msra.mxu1 %vm4137_vm5, %v4119_v59  ;;  %v5511_v59 = vld [vmem:[#allocation2] sm:$0xff] }
 0xd9d   : > { %4914 = vmatmul.mubr.msk.f32.vlgmr.msra.gmra.mrb[24].mxu1 %vm4124_vm4, %v4121_v19  ;;  %4787 = vmatprep.subr.msk.mxu1 %vm4282_vm6, %v4268_v15 }
 0xd9e   : > { %4916 = vmatprep.mubr.msk.f32.mxu1 %vm4124_vm4, %v4122_v1  ;;  %4788 = vmatpush1.msk.msra.mxu1 %vm4282_vm6, %v4266_v21 }
 0xda1   : > { %4917 = vmatmul.mubr.msk.f32.gmra.mrb[26].mxu1 %vm4124_vm4, %v4123_v60  ;;  %v5513_v60 = vld [vmem:[#allocation2 + $0x8] sm:$0xff] }
 0xda2   : > { %4444 = vmatprep.mubr.f32.mxu1 %v8801_v31 }
 0xe70   : > { %v4915_v50 = vpop.f32.mrb[24].mxu1 }
 0xe71   : > { %v4227_v29 = vsub.f32 0.0, %v4915_v50  ;;  %v4207_v10 = vpop.f32.mrb[25].mxu1 }
 0xe72   : > { %v4226_v52 = vsub.f32 0.0, %v4207_v10  ;;  %v5515_v10 = vld [vmem:[#allocation2 + $0x20] sm:$0xff] }
 0xe73   : > { %v4232_v53 = vmul.f32 1.442695, %v4227_v29 }
 0xe74   : > { %v4230_v6 = vmul.f32 1.442695, %v4226_v52  ;;  %v4918_v48 = vpop.f32.mrb[26].mxu1 }
 0xe75   : > { %5463 = vpow2.f32 %v4232_v53  ;;  %v4217_v57 = vpop.f32.mrb[27].mxu1  ;;  %v4229_v14 = vsub.f32 0.0, %v4918_v48  ;;  %v5516_v53 = vld [vmem:[#allocation2 + $0x30] sm:$0xff] }
 0xe76   : > { %5465 = vpow2.f32 %v4230_v6  ;;  %v4228_v9 = vsub.f32 0.0, %v4217_v57  ;;  %v5517_v57 = vld [vmem:[#allocation2 + $0x28] sm:$0xff] }
 0xe77   : > { %v4236_v33 = vmul.f32 1.442695, %v4229_v14 }
 0xe78   : > { %v4234_v30 = vmul.f32 1.442695, %v4228_v9 }
 0xe7a   : > { %5467 = vpow2.f32 %v4234_v30 }
 0xe7b   : > { %5469 = vpow2.f32 %v4236_v33 }
 0xe7f   : > { %v5464_v32 = vpop.eup %5463 }
 0xe80   : > { %v5466_v8 = vpop.eup %5465  ;;  %v4239_v3 = vadd.f32 1.0, %v5464_v32 }
 0xe81   : > { %v4238_v39 = vadd.f32 1.0, %v5466_v8 }
 0xe83   : > { %5471 = vrcp.f32 %v4238_v39 }
 0xe84   : > { %v5468_v46 = vpop.eup %5467  ;;  %5473 = vrcp.f32 %v4239_v3  ;;  %v5520_v3 = vld [vmem:[#allocation2 + $0x50] sm:$0xff] }
 0xe85   : > { %v4240_v22 = vadd.f32 1.0, %v5468_v46  ;;  %v5470_v13 = vpop.eup %5469 }
 0xe86   : > { %v4241_v47 = vadd.f32 1.0, %v5470_v13 }
 0xe87   : > { %5475 = vrcp.f32 %v4240_v22 }
 0xe88   : > { %5477 = vrcp.f32 %v4241_v47 }
 0xe8d   : > { %v5472_v18 = vpop.eup %5471 }
 0xe8e   : > { %4783 = vmatmul.mubr.msk.f32.vlgmr.msra.gmra.mrb[26].mxu0 %vm4269_vm7, %v5472_v18  ;;  %4789 = vmatmul.mubr.msk.f32.vlgmr.msra.gmra.mrb[28].mxu1 %vm4269_vm7, %v5472_v18  ;;  %v5474_v49 = vpop.eup %5473 }
 0xe8f   : > { %4361 = vmatprep.mubr.f32.mxu0 %v8801_v31  ;;  %4450 = vmatprep.mubr.f32.mxu1 %v8801_v31 }
 0xe91   : > { %v5476_v58 = vpop.eup %5475 }
 0xe92   : > { %4784 = vmatmul.mubr.msk.f32.gmra.mrb[28].mxu0 %vm4269_vm7, %v5474_v49  ;;  %4790 = vmatmul.mubr.msk.f32.gmra.mrb[30].mxu1 %vm4269_vm7, %v5474_v49  ;;  %v5478_v20 = vpop.eup %5477 }
 0xe93   : > { %4367 = vmatprep.mubr.f32.mxu0 %v8801_v31  ;;  %4456 = vmatprep.mubr.f32.mxu1 %v8801_v31 }
 0xe96   : > { %4785 = vmatmul.mubr.msk.f32.gmra.mrb[30].mxu0 %vm4269_vm7, %v5476_v58  ;;  %4791 = vmatmul.mubr.msk.f32.gmra.mrb[32].mxu1 %vm4269_vm7, %v5476_v58 }
 0xe97   : > { %4373 = vmatprep.mubr.f32.mxu0 %v8801_v31  ;;  %4462 = vmatprep.mubr.f32.mxu1 %v8801_v31  ;;  %v5512_v31 = vld [vmem:[#allocation2 + $0x10] sm:$0xff] }
 0xe9a   : > { %4786 = vmatmul.mubr.msk.f32.gmra.mrb[32].mxu0 %vm4269_vm7, %v5478_v20  ;;  %4792 = vmatmul.mubr.msk.f32.gmra.mrb[34].mxu1 %vm4269_vm7, %v5478_v20 }
 0xf61   : > { %v4357_v24 = vpop.f32.mrb[26].mxu0  ;;  %v4446_v62 = vpop.f32.mrb[28].mxu1 }
 0xf62   : > { %v4469_v7 = vmul.f32 %v4357_v24, %v8362_v45  ;;  %v4471_v40 = vmul.f32 %v4446_v62, %v8364_v38  ;;  %v4359_v36 = vpop.f32.mrb[27].mxu0  ;;  %v4448_v28 = vpop.f32.mrb[29].mxu1 }
 0xf63   : > { %v4470_v26 = vmul.f32 %v4359_v36, %v8366_v12  ;;  %v4472_v54 = vmul.f32 %v4448_v28, %v8368_v44 }
 0xf64   : > { %v8457_v19 = vadd.f32 %v5511_v59, %v4469_v7  ;;  %v8459_v1 = vadd.f32 %v5512_v31, %v4471_v40  ;;  %v5521_v7 = vld [vmem:[#allocation2 + $0x48] sm:$0xff] }
 0xf65   : > { %v8461_v16 = vadd.f32 %v5513_v60, %v4470_v26  ;;  %v8463_v4 = vadd.f32 %v5514_v25, %v4472_v54  ;;  %v4363_v45 = vpop.f32.mrb[28].mxu0  ;;  %v4452_v38 = vpop.f32.mrb[30].mxu1  ;;  %v5524_v26 = vld [vmem:[#allocation2 + $0x70] sm:$0xff] }
 0xf66   : > { %v4517_v11 = vmul.f32 0.70710677, %v8457_v19  ;;  %v4519_v12 = vmul.f32 0.70710677, %v8459_v1  ;;  %v4473_v34 = vmul.f32 %v4363_v45, %v8382_v37  ;;  %v4475_v17 = vmul.f32 %v4452_v38, %v8384_v56  ;;  %v4365_v42 = vpop.f32.mrb[29].mxu0  ;;  %v4454_v21 = vpop.f32.mrb[31].mxu1 }
 0xf67   : > { %v4518_v44 = vmul.f32 0.70710677, %v8461_v16  ;;  %v4520_v5 = vmul.f32 0.70710677, %v8463_v4  ;;  %v4474_v41 = vmul.f32 %v4365_v42, %v8378_v27  ;;  %v4476_v15 = vmul.f32 %v4454_v21, %v8380_v2  ;;  %v5518_v27 = vld [vmem:[#allocation2 + $0x38] sm:$0xff] }
 0xf68   : > { %5479 = verf.f32 %v4517_v11  ;;  %v8473_v52 = vadd.f32 %v5515_v10, %v4473_v34  ;;  %v8475_v6 = vadd.f32 %v5516_v53, %v4475_v17  ;;  %v4503_v38 = vmul.f32 0.5, %v8459_v1 }
 0xf69   : > { %5481 = verf.f32 %v4519_v12  ;;  %v4369_v50 = vpop.f32.mrb[30].mxu0  ;;  %v4458_v29 = vpop.f32.mrb[32].mxu1  ;;  %v8478_v14 = vadd.f32 %v5517_v57, %v4474_v41  ;;  %v8480_v9 = vadd.f32 %v5518_v27, %v4476_v15  ;;  %v4504_v21 = vmul.f32 0.5, %v8463_v4  ;;  %v5525_v15 = vld [vmem:[#allocation2 + $0x68] sm:$0xff] }
 0xf6a   : > { %5483 = verf.f32 %v4518_v44  ;;  %v4477_v37 = vmul.f32 %v4369_v50, %v8398_v55  ;;  %v4371_v48 = vpop.f32.mrb[31].mxu0  ;;  %v4460_v56 = vpop.f32.mrb[33].mxu1  ;;  %v4479_v2 = vmul.f32 %v4458_v29, %v8401_v43  ;;  %v4521_v30 = vmul.f32 0.70710677, %v8473_v52  ;;  %v5519_v55 = vld [vmem:[#allocation2 + $0x40] sm:$0xff] }
 0xf6b   : > { %5485 = verf.f32 %v4520_v5  ;;  %v4523_v33 = vmul.f32 0.70710677, %v8475_v6  ;;  %v4522_v32 = vmul.f32 0.70710677, %v8478_v14  ;;  %v4524_v8 = vmul.f32 0.70710677, %v8480_v9 }
 0xf6c   : > { %5487 = verf.f32 %v4521_v30  ;;  %v8487_v39 = vadd.f32 %v5519_v55, %v4477_v37  ;;  %v8489_v46 = vadd.f32 %v5520_v3, %v4479_v2  ;;  %v4478_v22 = vmul.f32 %v4371_v48, %v8394_v61  ;;  %v5522_v61 = vld [vmem:[#allocation2 + $0x58] sm:$0xff] }
 0xf6d   : > { %v4375_v13 = vpop.f32.mrb[32].mxu0  ;;  %v4464_v47 = vpop.f32.mrb[34].mxu1  ;;  %5489 = verf.f32 %v4523_v33  ;;  %v4480_v43 = vmul.f32 %v4460_v56, %v8396_v63  ;;  %v4501_v63 = vmul.f32 0.5, %v8457_v19  ;;  %v4502_v19 = vmul.f32 0.5, %v8461_v16  ;;  %v5526_v2 = vld [vmem:[#allocation2 + $0x78] sm:$0xff] }
 0xf6e   : > { %v4481_v18 = vmul.f32 %v4375_v13, %v8410_v35  ;;  %v4483_v49 = vmul.f32 %v4464_v47, %v8414_v51  ;;  %v4377_v58 = vpop.f32.mrb[33].mxu0  ;;  %v4466_v20 = vpop.f32.mrb[35].mxu1  ;;  %5491 = verf.f32 %v4522_v32  ;;  %v4525_v24 = vmul.f32 0.70710677, %v8487_v39  ;;  %v5523_v35 = vld [vmem:[#allocation2 + $0x60] sm:$0xff] }
 0xf6f   : > { %5493 = verf.f32 %v4524_v8  ;;  %v4527_v62 = vmul.f32 0.70710677, %v8489_v46  ;;  %v8497_v40 = vadd.f32 %v5521_v7, %v4478_v22  ;;  %v8499_v36 = vadd.f32 %v5522_v61, %v4480_v43 }
 0xf70   : > { %5495 = verf.f32 %v4525_v24  ;;  %v8502_v51 = vadd.f32 %v5523_v35, %v4481_v18  ;;  %v8504_v54 = vadd.f32 %v5524_v26, %v4483_v49  ;;  %v4482_v25 = vmul.f32 %v4377_v58, %v8412_v23 }
 0xf71   : > { %5497 = verf.f32 %v4527_v62  ;;  %v4526_v60 = vmul.f32 0.70710677, %v8497_v40  ;;  %v4528_v12 = vmul.f32 0.70710677, %v8499_v36  ;;  %v4484_v10 = vmul.f32 %v4466_v20, %v8416_v0 }
 0xf72   : > { %v5480_v28 = vpop.eup %5479  ;;  %v4529_v17 = vmul.f32 0.70710677, %v8502_v51  ;;  %v4531_v1 = vmul.f32 0.70710677, %v8504_v54  ;;  %v8514_v16 = vadd.f32 %v5525_v15, %v4482_v25  ;;  %v4505_v37 = vmul.f32 0.5, %v8473_v52 }
 0xf73   : > { %v5482_v59 = vpop.eup %5481  ;;  %v4549_v31 = vadd.f32 1.0, %v5480_v28  ;;  %5499 = verf.f32 %v4526_v60  ;;  %v4507_v57 = vmul.f32 0.5, %v8475_v6  ;;  %v4500_v30 = vadd.f32 %v5526_v2, %v4484_v10 }
 0xf74   : > { %v5484_v45 = vpop.eup %5483  ;;  %v4551_v11 = vadd.f32 1.0, %v5482_v59  ;;  %5501 = verf.f32 %v4528_v12  ;;  %v4530_v48 = vmul.f32 0.70710677, %v8514_v16  ;;  %v4506_v8 = vmul.f32 0.5, %v8478_v14 }
 0xf75   : > { %v5486_v44 = vpop.eup %5485  ;;  %v4565_v5 = vmul.f32 %v4549_v31, %v4501_v63  ;;  %v4550_v34 = vadd.f32 1.0, %v5484_v45  ;;  %5503 = verf.f32 %v4529_v17  ;;  %v4508_v52 = vmul.f32 0.5, %v8480_v9 }
 0xf76   : > { %v4567_v42 = vmul.f32 %v4551_v11, %v4503_v38  ;;  %v4552_v41 = vadd.f32 1.0, %v5486_v44  ;;  %v5488_v50 = vpop.eup %5487  ;;  %5505 = verf.f32 %v4531_v1  ;;  %v4532_v13 = vmul.f32 0.70710677, %v4500_v30 }
 0xf77   : > { %4581 = vst [vmem:[#allocation2] sm:$0xff] %v4565_v5  ;;  %v4566_v23 = vmul.f32 %v4550_v34, %v4502_v19  ;;  %v5490_v53 = vpop.eup %5489  ;;  %v4553_v4 = vadd.f32 1.0, %v5488_v50  ;;  %5507 = verf.f32 %v4530_v48  ;;  %v4509_v6 = vmul.f32 0.5, %v8487_v39 }
 0xf78   : > { %4583 = vst [vmem:[#allocation2 + $0x10] sm:$0xff] %v4567_v42  ;;  %v4568_v29 = vmul.f32 %v4552_v41, %v4504_v21  ;;  %v5492_v56 = vpop.eup %5491  ;;  %v4555_v27 = vadd.f32 1.0, %v5490_v53  ;;  %v4511_v58 = vmul.f32 0.5, %v8489_v46  ;;  %5509 = verf.f32 %v4532_v13 }
 0xf79   : > { %4582 = vst [vmem:[#allocation2 + $0x8] sm:$0xff] %v4566_v23  ;;  %v5494_v33 = vpop.eup %5493  ;;  %v4569_v32 = vmul.f32 %v4553_v4, %v4505_v37  ;;  %v4554_v0 = vadd.f32 1.0, %v5492_v56  ;;  %v4510_v7 = vmul.f32 0.5, %v8497_v40  ;;  %v4512_v39 = vmul.f32 0.5, %v8499_v36 }
 0xf7a   : > { %4584 = vst [vmem:[#allocation2 + $0x18] sm:$0xff] %v4568_v29  ;;  %v5496_v55 = vpop.eup %5495  ;;  %v4571_v3 = vmul.f32 %v4555_v27, %v4507_v57  ;;  %v4556_v22 = vadd.f32 1.0, %v5494_v33  ;;  %v4513_v46 = vmul.f32 0.5, %v8502_v51  ;;  %v4515_v25 = vmul.f32 0.5, %v8504_v54 }
 0xf7b   : > { %v5498_v47 = vpop.eup %5497  ;;  %4585 = vst [vmem:[#allocation2 + $0x20] sm:$0xff] %v4569_v32  ;;  %v4570_v43 = vmul.f32 %v4554_v0, %v4506_v8  ;;  %v4557_v18 = vadd.f32 1.0, %v5496_v55  ;;  %v4514_v36 = vmul.f32 0.5, %v8514_v16  ;;  %v4516_v12 = vmul.f32 0.5, %v4500_v30 }
 0xf7c   : > { %4587 = vst [vmem:[#allocation2 + $0x30] sm:$0xff] %v4571_v3  ;;  %v4572_v49 = vmul.f32 %v4556_v22, %v4508_v52  ;;  %v4559_v20 = vadd.f32 1.0, %v5498_v47 }
 0xf7d   : > { %v5500_v14 = vpop.eup %5499  ;;  %4586 = vst [vmem:[#allocation2 + $0x28] sm:$0xff] %v4570_v43  ;;  %v4573_v24 = vmul.f32 %v4557_v18, %v4509_v6 }
 0xf7e   : > { %v5502_v62 = vpop.eup %5501  ;;  %4588 = vst [vmem:[#allocation2 + $0x38] sm:$0xff] %v4572_v49  ;;  %v4575_v9 = vmul.f32 %v4559_v20, %v4511_v58  ;;  %v4558_v61 = vadd.f32 1.0, %v5500_v14 }
 0xf7f   : > { %v5504_v28 = vpop.eup %5503  ;;  %4589 = vst [vmem:[#allocation2 + $0x40] sm:$0xff] %v4573_v24  ;;  %v4560_v63 = vadd.f32 1.0, %v5502_v62 }
 0xf80   : > { %4591 = vst [vmem:[#allocation2 + $0x50] sm:$0xff] %v4575_v9  ;;  %v4574_v35 = vmul.f32 %v4558_v61, %v4510_v7  ;;  %v4561_v26 = vadd.f32 1.0, %v5504_v28  ;;  %v5506_v59 = vpop.eup %5505 }
 0xf81   : > { %v4576_v31 = vmul.f32 %v4560_v63, %v4512_v39  ;;  %v4563_v45 = vadd.f32 1.0, %v5506_v59  ;;  %v5508_v40 = vpop.eup %5507 }
 0xf82   : > { %4590 = vst [vmem:[#allocation2 + $0x48] sm:$0xff] %v4574_v35  ;;  %v4577_v60 = vmul.f32 %v4561_v26, %v4513_v46  ;;  %v4562_v11 = vadd.f32 1.0, %v5508_v40  ;;  %v5510_v51 = vpop.eup %5509 }
 0xf83   : > { %4592 = vst [vmem:[#allocation2 + $0x58] sm:$0xff] %v4576_v31  ;;  %v4579_v38 = vmul.f32 %v4563_v45, %v4515_v25  ;;  %v4564_v44 = vadd.f32 1.0, %v5510_v51 }
 0xf84   : > { %4593 = vst [vmem:[#allocation2 + $0x60] sm:$0xff] %v4577_v60  ;;  %v4578_v19 = vmul.f32 %v4562_v11, %v4514_v36 }
 0xf85   : > { %4595 = vst [vmem:[#allocation2 + $0x70] sm:$0xff] %v4579_v38  ;;  %v4580_v54 = vmul.f32 %v4564_v44, %v4516_v12 }
 0xf86   : > { %4594 = vst [vmem:[#allocation2 + $0x68] sm:$0xff] %v4578_v19 }
 0xf87   : > { %4596 = vst [vmem:[#allocation2 + $0x78] sm:$0xff] %v4580_v54 }
 0xf88   : > { %5540 = shalt.err (!%p5537_p12)
}
 0xf89   : > { %s8804_s27 = sld [smem:[#allocation73_spill]] }
 0xf8f   : > { %s5541_s30 = scalar_lea.hbm %s8804_s27, 2048 }
 0xf90   : > { %p5542_p13 = scmp.ne.s32.totalorder %s8804_s27, %s5541_s30  ;;  %p5547_p2 = scmp.lt.u32.totalorder %s5541_s30, %s8804_s27 }
 0xf92   : > { %p5543_p0 = pnand %p5542_p13, %p5330_p5 }
 0xf94   : > { %p5544_p1 = pneg %p5543_p0 }
 0xf96   : > { %p5549_p3 = pnand %p5547_p2, %p5544_p1 }
 0xf98   : > { %5552 = shalt.err (!%p5549_p3)
}
 0xf99   : > { %s5589_s8 = smov 512   ;;  %s5590_s17 = smov 32  }
 0xf9a   : > { %5327 = dma.vmem_to_hbm [thread:$0]  (%p5330_p5), %s4604_s0, 2048, %s8804_s27, [#allocation3], %s5589_s8, %s5589_s8, %s5590_s17  }
 0xf9b   : > { %5558 = dma.done.wait (%p5330_p5), [#allocation3], 2048  }
 0xf9c   : > { %5560 = vsyncadd (%p5330_p5), [#allocation3], 4294965248 }
 0xf9d PF: > { %s8805_s25 = sld [smem:[#allocation5_spill]] }
 0xfa3   : > { %s26_s18 = sadd.s32 1, %s8805_s25  }
 0xfa4   : > { %p23_p4 = scmp.ge.s32.totalorder %s26_s18, 4  }
 0xfa6   :  { %25 = sbr.rel (!%p23_p4) target bundleno = 8 (0x8), region = 132 }
 0xfad   :  { %4619 = vsyncpa [#allocation3], 1 }
 0xfae   :  { %4621 = vsyncpa [#allocation3 + $0x1], 1 }

</bundles_post_ra>
